<compile_context>
chip_gen: v7x
topology: tpu7x:2x2x1
jax: 0.10.0
libtpu: 0.0.40
codegen_flags: <defaults>
</compile_context>

<pallas_src>
import jax
import jax.numpy as jnp
from jax.experimental import pallas as pl
from jax.experimental.pallas import tpu as pltpu

_BN_EPS = 1e-5
_LANE = 128
_VMEM_LIMIT = 32 * 1024 * 1024  # safe on v5e (128MiB), v6e (128MiB), v7x (64MiB)


# ----------------------------------------------------------------------------
# small helpers
# ----------------------------------------------------------------------------
def _round_up(x, m):
    return (x + m - 1) // m * m


def _pad_axis(x, axis, new_size):
    pad = new_size - x.shape[axis]
    if pad == 0:
        return x
    cfg = [(0, 0)] * x.ndim
    cfg[axis] = (0, pad)
    return jnp.pad(x, cfg)


# ----------------------------------------------------------------------------
# Pallas kernels
# ----------------------------------------------------------------------------
def _matmul_bias_kernel(x_ref, w_ref, b_ref, o_ref):
    # x: [tm, K] bf16, w: [K, N] bf16, b: [1, N] f32 -> o: [tm, N] f32
    o_ref[...] = (
        jnp.dot(x_ref[...], w_ref[...], preferred_element_type=jnp.float32)
        + b_ref[...]
    )


def _conv3d_slab_kernel(x0_ref, x1_ref, x2_ref, w_ref, y_ref, s_ref, q_ref):
    # x*_ref: [H+2, W+2, Ci] bf16 -- three consecutive padded depth slices
    # w_ref : [27, Ci, Co] bf16   -- (kd, kh, kw) flattened conv weights
    # y_ref : [H, W, Co] f32      -- conv output for this (n, d) slab
    # s_ref, q_ref: [1, Co] f32   -- per-slab channel sum / sum of squares
    H, W, Co = y_ref.shape
    Ci = x0_ref.shape[-1]
    acc = jnp.zeros((H * W, Co), jnp.float32)
    x_slabs = (x0_ref, x1_ref, x2_ref)
    for kd in range(3):
        xr = x_slabs[kd][...]
        for kh in range(3):
            for kw in range(3):
                patch = xr[kh:kh + H, kw:kw + W, :].reshape(H * W, Ci)
                acc = acc + jnp.dot(
                    patch, w_ref[kd * 9 + kh * 3 + kw],
                    preferred_element_type=jnp.float32)
    y_ref[...] = acc.reshape(H, W, Co)
    s_ref[...] = jnp.sum(acc, axis=0, keepdims=True)
    q_ref[...] = jnp.sum(acc * acc, axis=0, keepdims=True)


def _bn_relu_kernel(y_ref, scale_ref, shift_ref, o_ref):
    # f32 epilogue (v5e has no bf16 VPU); cast only on the final store.
    y = y_ref[...]
    o_ref[...] = jnp.maximum(y * scale_ref[...] + shift_ref[...], 0.0).astype(
        o_ref.dtype)


# ----------------------------------------------------------------------------
# pallas_call wrappers
# ----------------------------------------------------------------------------
def _matmul_bias(x, w, b, *, tile_m=256):
    # x: [M, K] bf16, w: [K, N] bf16 (resident), b: [1, N] f32 -> [M, N] f32
    M, K = x.shape
    N = w.shape[1]
    tile_m = min(tile_m, _round_up(M, 8))
    Mp = _round_up(M, tile_m)
    x = _pad_axis(x, 0, Mp)
    out = pl.pallas_call(
        _matmul_bias_kernel,
        out_shape=jax.ShapeDtypeStruct((Mp, N), jnp.float32),
        grid=(Mp // tile_m,),
        in_specs=[
            pl.BlockSpec((tile_m, K), lambda i: (i, 0)),
            pl.BlockSpec((K, N), lambda i: (0, 0)),
            pl.BlockSpec((1, N), lambda i: (0, 0)),
        ],
        out_specs=pl.BlockSpec((tile_m, N), lambda i: (i, 0)),
        compiler_params=pltpu.CompilerParams(
            dimension_semantics=("parallel",),
            vmem_limit_bytes=_VMEM_LIMIT,
        ),
    )(x, w, b)
    return out[:M]


def _conv3d_3x3x3(xp, w27):
    # xp : [N, D+2, H+2, W+2, Ci] bf16, spatially pre-padded by 1 each side
    # w27: [27, Ci, Co] bf16
    # returns (conv [N, D, H, W, Co] f32,
    #          per-(n,d) channel sums [N, D, 1, Co] f32,
    #          per-(n,d) channel sums of squares [N, D, 1, Co] f32)
    N, Dp, Hp, Wp, Ci = xp.shape
    D, H, W = Dp - 2, Hp - 2, Wp - 2
    Co = w27.shape[-1]

    def x_spec(off):
        return pl.BlockSpec(
            (None, None, Hp, Wp, Ci),
            lambda n, d, o=off: (n, d + o, 0, 0, 0))

    y, s, q = pl.pallas_call(
        _conv3d_slab_kernel,
        out_shape=(
            jax.ShapeDtypeStruct((N, D, H, W, Co), jnp.float32),
            jax.ShapeDtypeStruct((N, D, 1, Co), jnp.float32),
            jax.ShapeDtypeStruct((N, D, 1, Co), jnp.float32),
        ),
        grid=(N, D),
        in_specs=[
            x_spec(0), x_spec(1), x_spec(2),
            pl.BlockSpec((27, Ci, Co), lambda n, d: (0, 0, 0)),  # resident
        ],
        out_specs=(
            pl.BlockSpec((None, None, H, W, Co), lambda n, d: (n, d, 0, 0, 0)),
            pl.BlockSpec((None, None, 1, Co), lambda n, d: (n, d, 0, 0)),
            pl.BlockSpec((None, None, 1, Co), lambda n, d: (n, d, 0, 0)),
        ),
        compiler_params=pltpu.CompilerParams(
            dimension_semantics=("parallel", "parallel"),
            vmem_limit_bytes=_VMEM_LIMIT,
        ),
    )(xp, xp, xp, w27)
    return y, s, q


def _bn_relu(y, scale, shift, out_dtype, *, tile_m=512):
    # y: [M, C] f32, scale/shift: [1, C] f32 -> [M, C] out_dtype
    M, C = y.shape
    tile_m = min(tile_m, _round_up(M, 8))
    Mp = _round_up(M, tile_m)
    y = _pad_axis(y, 0, Mp)
    out = pl.pallas_call(
        _bn_relu_kernel,
        out_shape=jax.ShapeDtypeStruct((Mp, C), out_dtype),
        grid=(Mp // tile_m,),
        in_specs=[
            pl.BlockSpec((tile_m, C), lambda i: (i, 0)),
            pl.BlockSpec((1, C), lambda i: (0, 0)),
            pl.BlockSpec((1, C), lambda i: (0, 0)),
        ],
        out_specs=pl.BlockSpec((tile_m, C), lambda i: (i, 0)),
        compiler_params=pltpu.CompilerParams(
            dimension_semantics=("parallel",),
            vmem_limit_bytes=_VMEM_LIMIT,
        ),
    )(y, scale, shift)
    return out[:M]


# ----------------------------------------------------------------------------
# plain-JAX glue (tiny reductions / layout only)
# ----------------------------------------------------------------------------
def _bn_scale_shift(s, q, count, gamma_p, beta_p):
    # Cross-tile reduction of the per-slab partial sums (tiny: N*D*C elements),
    # then fold gamma/rsqrt and beta into one scale/shift pair.
    total = jnp.sum(s, axis=(0, 1, 2))
    total_sq = jnp.sum(q, axis=(0, 1, 2))
    mean = total / count
    var = jnp.maximum(total_sq / count - mean * mean, 0.0)  # biased (training BN)
    scale = gamma_p * jax.lax.rsqrt(var + _BN_EPS)
    shift = beta_p - mean * scale
    return scale[None, :], shift[None, :]


def _conv_weight_27(w, ci_p, co_p):
    # PyTorch Conv3d weight [Co, Ci, 3, 3, 3] -> [27, Ci_p, Co_p] bf16,
    # (kd, kh, kw) flattened, channels zero-padded to lane multiples.
    Co, Ci = w.shape[0], w.shape[1]
    wm = jnp.transpose(w, (2, 3, 4, 1, 0)).reshape(27, Ci, Co)
    wm = _pad_axis(_pad_axis(wm, 1, ci_p), 2, co_p)
    return wm.astype(jnp.bfloat16)


def up_forward(x1, x2, params):
    """Forward of Up(in_channels, out_channels, is_upsampling=False).

    x1: [N, Cin, D1, H1, W1]   (NCDHW)
    x2: [N, Cin//2, D2, H2, W2]
    returns [N, Cout, D2, H2, W2]
    """
    x1 = x1.astype(jnp.float32)
    x2 = x2.astype(jnp.float32)

    # --- ConvTranspose3d(Cin, Cin//2, k=2, s=2): per-voxel channel matmul ----
    x1n = jnp.transpose(x1, (0, 2, 3, 4, 1))               # [N, D1, H1, W1, Cin]
    N, D1, H1, W1, Cin = x1n.shape
    Cup = params["up_w"].shape[1]                           # Cin // 2
    Kp = _round_up(Cin, _LANE)
    Nup = Cup * 8
    Nup_p = _round_up(Nup, _LANE)

    xf = _pad_axis(x1n.reshape(N * D1 * H1 * W1, Cin), 1, Kp).astype(jnp.bfloat16)
    w_up = params["up_w"].reshape(Cin, Nup)                 # [Cin, Cup*2*2*2]
    w_up = _pad_axis(_pad_axis(w_up, 0, Kp), 1, Nup_p).astype(jnp.bfloat16)
    b_up = _pad_axis(jnp.repeat(params["up_b"], 8)[None, :], 1, Nup_p)

    y = _matmul_bias(xf, w_up, b_up)[:, :Nup]               # [M1, Cup*8] f32
    y = y.reshape(N, D1, H1, W1, Cup, 2, 2, 2)
    y = jnp.transpose(y, (0, 1, 5, 2, 6, 3, 7, 4))          # N,D1,kd,H1,kh,W1,kw,Cup
    x1_up = y.reshape(N, 2 * D1, 2 * H1, 2 * W1, Cup)       # NDHWC

    # --- F.pad to x2 spatial size, concat channels (torch.cat([x2, x1], 1)) --
    # TODO(synk): fuse pixel-shuffle / pad / concat into the upsample kernel's
    # output index_map to avoid these extra XLA copies.
    x2n = jnp.transpose(x2, (0, 2, 3, 4, 1))                # [N, D2, H2, W2, Cin//2]
    diffZ = x2n.shape[1] - x1_up.shape[1]
    diffY = x2n.shape[2] - x1_up.shape[2]
    diffX = x2n.shape[3] - x1_up.shape[3]
    x1_up = jnp.pad(
        x1_up,
        ((0, 0),
         (diffZ // 2, diffZ - diffZ // 2),
         (diffY // 2, diffY - diffY // 2),
         (diffX // 2, diffX - diffX // 2),
         (0, 0)))
    x = jnp.concatenate([x2n, x1_up], axis=-1)              # [N, D2, H2, W2, Cin]
    Nb, D2, H2, W2, _ = x.shape
    Mtot = Nb * D2 * H2 * W2

    mid = params["conv1_w"].shape[0]
    Cout = params["conv2_w"].shape[0]
    Cin_p = _round_up(Cin, _LANE)
    Cmid_p = _round_up(mid, _LANE)
    Cout_p = _round_up(Cout, _LANE)

    # --- conv1 (halo-tiled 3x3x3, bf16 MXU / f32 acc) + BN1(batch) + ReLU ----
    # Conv bias is intentionally dropped: it is exactly cancelled by the
    # training-mode BatchNorm mean subtraction.
    xp1 = _pad_axis(x, 4, Cin_p).astype(jnp.bfloat16)
    xp1 = jnp.pad(xp1, ((0, 0), (1, 1), (1, 1), (1, 1), (0, 0)))
    w1 = _conv_weight_27(params["conv1_w"], Cin_p, Cmid_p)
    y1, s1, q1 = _conv3d_3x3x3(xp1, w1)

    g1 = _pad_axis(params["bn1_gamma"], 0, Cmid_p)
    b1 = _pad_axis(params["bn1_beta"], 0, Cmid_p)
    scale1, shift1 = _bn_scale_shift(s1, q1, float(Mtot), g1, b1)
    h = _bn_relu(y1.reshape(Mtot, Cmid_p), scale1, shift1, jnp.bfloat16)
    h = h.reshape(Nb, D2, H2, W2, Cmid_p)

    # --- conv2 + BN2(batch) + ReLU -------------------------------------------
    xp2 = jnp.pad(h, ((0, 0), (1, 1), (1, 1), (1, 1), (0, 0)))
    w2 = _conv_weight_27(params["conv2_w"], Cmid_p, Cout_p)
    y2, s2, q2 = _conv3d_3x3x3(xp2, w2)

    g2 = _pad_axis(params["bn2_gamma"], 0, Cout_p)
    b2 = _pad_axis(params["bn2_beta"], 0, Cout_p)
    scale2, shift2 = _bn_scale_shift(s2, q2, float(Mtot), g2, b2)
    out = _bn_relu(y2.reshape(Mtot, Cout_p), scale2, shift2, jnp.float32)
    out = out.reshape(Nb, D2, H2, W2, Cout_p)[..., :Cout]
    return jnp.transpose(out, (0, 4, 1, 2, 3))              # back to NCDHW


# ----------------------------------------------------------------------------
# Deterministic parameter init (shapes from Up.__init__, is_upsampling=False)
# ----------------------------------------------------------------------------
def init_params(key, in_channels, out_channels):
    mid = out_channels  # DoubleConv default mid_channels = out_channels
    ks = jax.random.split(key, 8)
    s = 0.1
    return {
        # ConvTranspose3d weight: [Cin, Cin//2, 2, 2, 2]
        "up_w": s * jax.random.normal(ks[0], (in_channels, in_channels // 2, 2, 2, 2), jnp.float32),
        "up_b": s * jax.random.normal(ks[1], (in_channels // 2,), jnp.float32),
        # Conv3d #1: [mid, Cin, 3, 3, 3]  (bias unused: cancelled by BN)
        "conv1_w": s * jax.random.normal(ks[2], (mid, in_channels, 3, 3, 3), jnp.float32),
        "conv1_b": s * jax.random.normal(ks[3], (mid,), jnp.float32),
        "bn1_gamma": 1.0 + s * jax.random.normal(ks[4], (mid,), jnp.float32),
        "bn1_beta": s * jax.random.normal(ks[5], (mid,), jnp.float32),
        # Conv3d #2: [Cout, mid, 3, 3, 3]
        "conv2_w": s * jax.random.normal(ks[6], (out_channels, mid, 3, 3, 3), jnp.float32),
        "conv2_b": s * jax.random.normal(ks[7], (out_channels,), jnp.float32),
        "bn2_gamma": jnp.ones((out_channels,), jnp.float32),
        "bn2_beta": jnp.zeros((out_channels,), jnp.float32),
    }


if __name__ == "__main__":
    key = jax.random.PRNGKey(0)
    k1, k2, kp = jax.random.split(key, 3)

    N, Cin, Cout = 2, 8, 4
    D1 = H1 = W1 = 4                       # x1 spatial (coarse level)
    D2, H2, W2 = 2 * D1, 2 * H1, 2 * W1    # x2 spatial (skip connection)

    x1 = jax.random.normal(k1, (N, Cin, D1, H1, W1), jnp.float32)
    x2 = jax.random.normal(k2, (N, Cin // 2, D2, H2, W2), jnp.float32)
    params = init_params(kp, Cin, Cout)

    fwd = jax.jit(up_forward)
    out = fwd(x1, x2, params)
    jax.block_until_ready(out)

    assert out.shape == (N, Cout, D2, H2, W2), out.shape
    assert bool(jnp.all(jnp.isfinite(out)))
    assert bool(jnp.all(out >= 0.0))  # final ReLU
    print("KERNEL_OK")
</pallas_src>

<mosaic_0001>
module attributes {stable_mosaic.version = 11 : i64} {
  func.func @_matmul_bias_kernel(%arg0: i32, %arg1: memref<128x128xbf16, #tpu.memory_space<vmem>>, %arg2: memref<128x128xbf16, #tpu.memory_space<vmem>>, %arg3: memref<1x128xf32, #tpu.memory_space<vmem>>, %arg4: memref<128x128xf32, #tpu.memory_space<vmem>>) attributes {dimension_semantics = [#tpu.dimension_semantics<parallel>], iteration_bounds = array<i64: 1>, scalar_prefetch = 0 : i64, scratch_operands = 0 : i64, tpu.core_type = #tpu.core_type<tc>, window_params = [{transform_indices = @transform_0, window_bounds = array<i64: 128, 128>}, {pipeline_mode = #tpu.pipeline_mode<synchronous>, transform_indices = @transform_1, window_bounds = array<i64: 128, 128>}, {pipeline_mode = #tpu.pipeline_mode<synchronous>, transform_indices = @transform_2, window_bounds = array<i64: 1, 128>}, {transform_indices = @transform_3, window_bounds = array<i64: 128, 128>}]} {
    %c0 = arith.constant 0 : index
    %c0_0 = arith.constant 0 : index
    %0 = vector.load %arg1[%c0, %c0_0] : memref<128x128xbf16, #tpu.memory_space<vmem>>, vector<128x128xbf16>
    %c0_1 = arith.constant 0 : index
    %c0_2 = arith.constant 0 : index
    %1 = vector.load %arg2[%c0_1, %c0_2] : memref<128x128xbf16, #tpu.memory_space<vmem>>, vector<128x128xbf16>
    %cst = arith.constant dense<0.000000e+00> : vector<128x128xf32>
    %2 = tpu.matmul %0, %1, %cst {dimension_numbers = #tpu.dot_dimension_numbers<[1], [0], [0], [1], [0, 0, 1, 1], [], []>} : vector<128x128xbf16>, vector<128x128xbf16>, vector<128x128xf32> -> vector<128x128xf32>
    %c0_3 = arith.constant 0 : index
    %c0_4 = arith.constant 0 : index
    %3 = vector.load %arg3[%c0_3, %c0_4] : memref<1x128xf32, #tpu.memory_space<vmem>>, vector<1x128xf32>
    %4 = vector.broadcast %3 : vector<1x128xf32> to vector<128x128xf32>
    %5 = arith.addf %2, %4 : vector<128x128xf32>
    %c0_5 = arith.constant 0 : index
    %c0_6 = arith.constant 0 : index
    %6 = vector.load %arg4[%c0_5, %c0_6] : memref<128x128xf32, #tpu.memory_space<vmem>>, vector<128x128xf32>
    tpu.vector_store %arg4[%c0_5, %c0_6], %5 {strides = array<i32>} : memref<128x128xf32, #tpu.memory_space<vmem>>, vector<128x128xf32>,
    return
  }
  func.func @transform_0(%arg0: i32) -> (i32, i32) {
    %c0_i32 = arith.constant 0 : i32
    %c0_i32_0 = arith.constant 0 : i32
    return %arg0, %c0_i32 : i32, i32
  }
  func.func @transform_1(%arg0: i32) -> (i32, i32) {
    %c0_i32 = arith.constant 0 : i32
    %c0_i32_0 = arith.constant 0 : i32
    %c0_i32_1 = arith.constant 0 : i32
    return %c0_i32, %c0_i32_0 : i32, i32
  }
  func.func @transform_2(%arg0: i32) -> (i32, i32) {
    %c0_i32 = arith.constant 0 : i32
    %c0_i32_0 = arith.constant 0 : i32
    %c0_i32_1 = arith.constant 0 : i32
    return %c0_i32, %c0_i32_0 : i32, i32
  }
  func.func @transform_3(%arg0: i32) -> (i32, i32) {
    %c0_i32 = arith.constant 0 : i32
    %c0_i32_0 = arith.constant 0 : i32
    return %arg0, %c0_i32 : i32, i32
  }
}

module attributes {stable_mosaic.version = 11 : i64} {
  func.func @_bn_relu_kernel(%arg0: i32, %arg1: memref<512x128xf32, #tpu.memory_space<vmem>>, %arg2: memref<1x128xf32, #tpu.memory_space<vmem>>, %arg3: memref<1x128xf32, #tpu.memory_space<vmem>>, %arg4: memref<512x128xbf16, #tpu.memory_space<vmem>>) attributes {dimension_semantics = [#tpu.dimension_semantics<parallel>], iteration_bounds = array<i64: 2>, scalar_prefetch = 0 : i64, scratch_operands = 0 : i64, tpu.core_type = #tpu.core_type<tc>, window_params = [{transform_indices = @transform_0, window_bounds = array<i64: 512, 128>}, {pipeline_mode = #tpu.pipeline_mode<synchronous>, transform_indices = @transform_1, window_bounds = array<i64: 1, 128>}, {pipeline_mode = #tpu.pipeline_mode<synchronous>, transform_indices = @transform_2, window_bounds = array<i64: 1, 128>}, {transform_indices = @transform_3, window_bounds = array<i64: 512, 128>}]} {
    %c0 = arith.constant 0 : index
    %c0_0 = arith.constant 0 : index
    %0 = vector.load %arg1[%c0, %c0_0] : memref<512x128xf32, #tpu.memory_space<vmem>>, vector<512x128xf32>
    %c0_1 = arith.constant 0 : index
    %c0_2 = arith.constant 0 : index
    %1 = vector.load %arg2[%c0_1, %c0_2] : memref<1x128xf32, #tpu.memory_space<vmem>>, vector<1x128xf32>
    %2 = vector.broadcast %1 : vector<1x128xf32> to vector<512x128xf32>
    %3 = arith.mulf %0, %2 : vector<512x128xf32>
    %c0_3 = arith.constant 0 : index
    %c0_4 = arith.constant 0 : index
    %4 = vector.load %arg3[%c0_3, %c0_4] : memref<1x128xf32, #tpu.memory_space<vmem>>, vector<1x128xf32>
    %5 = vector.broadcast %4 : vector<1x128xf32> to vector<512x128xf32>
    %6 = arith.addf %3, %5 : vector<512x128xf32>
    %cst = arith.constant 0.000000e+00 : f32
    %7 = vector.broadcast %cst : f32 to vector<512x128xf32>
    %8 = arith.maximumf %6, %7 : vector<512x128xf32>
    %9 = arith.truncf %8 : vector<512x128xf32> to vector<512x128xbf16>
    %c0_5 = arith.constant 0 : index
    %c0_6 = arith.constant 0 : index
    %10 = vector.load %arg4[%c0_5, %c0_6] : memref<512x128xbf16, #tpu.memory_space<vmem>>, vector<512x128xbf16>
    tpu.vector_store %arg4[%c0_5, %c0_6], %9 {strides = array<i32>} : memref<512x128xbf16, #tpu.memory_space<vmem>>, vector<512x128xbf16>,
    return
  }
  func.func @transform_0(%arg0: i32) -> (i32, i32) {
    %c0_i32 = arith.constant 0 : i32
    %c0_i32_0 = arith.constant 0 : i32
    return %arg0, %c0_i32 : i32, i32
  }
  func.func @transform_1(%arg0: i32) -> (i32, i32) {
    %c0_i32 = arith.constant 0 : i32
    %c0_i32_0 = arith.constant 0 : i32
    %c0_i32_1 = arith.constant 0 : i32
    return %c0_i32, %c0_i32_0 : i32, i32
  }
  func.func @transform_2(%arg0: i32) -> (i32, i32) {
    %c0_i32 = arith.constant 0 : i32
    %c0_i32_0 = arith.constant 0 : i32
    %c0_i32_1 = arith.constant 0 : i32
    return %c0_i32, %c0_i32_0 : i32, i32
  }
  func.func @transform_3(%arg0: i32) -> (i32, i32) {
    %c0_i32 = arith.constant 0 : i32
    %c0_i32_0 = arith.constant 0 : i32
    return %arg0, %c0_i32 : i32, i32
  }
}

module attributes {stable_mosaic.version = 11 : i64} {
  func.func @_conv3d_slab_kernel(%arg0: i32, %arg1: i32, %arg2: memref<1x1x10x10x128xbf16, #tpu.memory_space<vmem>>, %arg3: memref<1x1x10x10x128xbf16, #tpu.memory_space<vmem>>, %arg4: memref<1x1x10x10x128xbf16, #tpu.memory_space<vmem>>, %arg5: memref<27x128x128xbf16, #tpu.memory_space<vmem>>, %arg6: memref<1x1x8x8x128xf32, #tpu.memory_space<vmem>>, %arg7: memref<1x1x1x128xf32, #tpu.memory_space<vmem>>, %arg8: memref<1x1x1x128xf32, #tpu.memory_space<vmem>>) attributes {dimension_semantics = [#tpu.dimension_semantics<parallel>, #tpu.dimension_semantics<parallel>], iteration_bounds = array<i64: 2, 8>, scalar_prefetch = 0 : i64, scratch_operands = 0 : i64, tpu.core_type = #tpu.core_type<tc>, window_params = [{transform_indices = @transform_0, window_bounds = array<i64: 1, 1, 10, 10, 128>}, {transform_indices = @transform_1, window_bounds = array<i64: 1, 1, 10, 10, 128>}, {transform_indices = @transform_2, window_bounds = array<i64: 1, 1, 10, 10, 128>}, {pipeline_mode = #tpu.pipeline_mode<synchronous>, transform_indices = @transform_3, window_bounds = array<i64: 27, 128, 128>}, {transform_indices = @transform_4, window_bounds = array<i64: 1, 1, 8, 8, 128>}, {transform_indices = @transform_5, window_bounds = array<i64: 1, 1, 1, 128>}, {transform_indices = @transform_6, window_bounds = array<i64: 1, 1, 1, 128>}]} {
    %cst = arith.constant 0.000000e+00 : f32
    %0 = vector.broadcast %cst : f32 to vector<64x128xf32>
    %c0 = arith.constant 0 : index
    %c0_0 = arith.constant 0 : index
    %c0_1 = arith.constant 0 : index
    %c0_2 = arith.constant 0 : index
    %c0_3 = arith.constant 0 : index
    %1 = vector.load %arg2[%c0, %c0_0, %c0_1, %c0_2, %c0_3] : memref<1x1x10x10x128xbf16, #tpu.memory_space<vmem>>, vector<1x1x10x10x128xbf16>
    %2 = vector.shape_cast %1 : vector<1x1x10x10x128xbf16> to vector<10x10x128xbf16>
    %3 = vector.extract_strided_slice %2 {offsets = [0, 0, 0], sizes = [8, 8, 128], strides = [1, 1, 1]} : vector<10x10x128xbf16> to vector<8x8x128xbf16>
    %4 = vector.shape_cast %3 : vector<8x8x128xbf16> to vector<64x128xbf16>
    %c0_4 = arith.constant 0 : index
    %c0_5 = arith.constant 0 : index
    %c0_6 = arith.constant 0 : index
    %5 = vector.load %arg5[%c0_4, %c0_5, %c0_6] : memref<27x128x128xbf16, #tpu.memory_space<vmem>>, vector<1x128x128xbf16>
    %6 = vector.shape_cast %5 : vector<1x128x128xbf16> to vector<128x128xbf16>
    %cst_7 = arith.constant dense<0.000000e+00> : vector<64x128xf32>
    %7 = tpu.matmul %4, %6, %cst_7 {dimension_numbers = #tpu.dot_dimension_numbers<[1], [0], [0], [1], [0, 0, 1, 1], [], []>} : vector<64x128xbf16>, vector<128x128xbf16>, vector<64x128xf32> -> vector<64x128xf32>
    %8 = arith.addf %0, %7 : vector<64x128xf32>
    %9 = vector.extract_strided_slice %2 {offsets = [0, 1, 0], sizes = [8, 8, 128], strides = [1, 1, 1]} : vector<10x10x128xbf16> to vector<8x8x128xbf16>
    %10 = vector.shape_cast %9 : vector<8x8x128xbf16> to vector<64x128xbf16>
    %c1 = arith.constant 1 : index
    %c0_8 = arith.constant 0 : index
    %c0_9 = arith.constant 0 : index
    %11 = vector.load %arg5[%c1, %c0_8, %c0_9] : memref<27x128x128xbf16, #tpu.memory_space<vmem>>, vector<1x128x128xbf16>
    %12 = vector.shape_cast %11 : vector<1x128x128xbf16> to vector<128x128xbf16>
    %cst_10 = arith.constant dense<0.000000e+00> : vector<64x128xf32>
    %13 = tpu.matmul %10, %12, %cst_10 {dimension_numbers = #tpu.dot_dimension_numbers<[1], [0], [0], [1], [0, 0, 1, 1], [], []>} : vector<64x128xbf16>, vector<128x128xbf16>, vector<64x128xf32> -> vector<64x128xf32>
    %14 = arith.addf %8, %13 : vector<64x128xf32>
    %15 = vector.extract_strided_slice %2 {offsets = [0, 2, 0], sizes = [8, 8, 128], strides = [1, 1, 1]} : vector<10x10x128xbf16> to vector<8x8x128xbf16>
    %16 = vector.shape_cast %15 : vector<8x8x128xbf16> to vector<64x128xbf16>
    %c2 = arith.constant 2 : index
    %c0_11 = arith.constant 0 : index
    %c0_12 = arith.constant 0 : index
    %17 = vector.load %arg5[%c2, %c0_11, %c0_12] : memref<27x128x128xbf16, #tpu.memory_space<vmem>>, vector<1x128x128xbf16>
    %18 = vector.shape_cast %17 : vector<1x128x128xbf16> to vector<128x128xbf16>
    %cst_13 = arith.constant dense<0.000000e+00> : vector<64x128xf32>
    %19 = tpu.matmul %16, %18, %cst_13 {dimension_numbers = #tpu.dot_dimension_numbers<[1], [0], [0], [1], [0, 0, 1, 1], [], []>} : vector<64x128xbf16>, vector<128x128xbf16>, vector<64x128xf32> -> vector<64x128xf32>
    %20 = arith.addf %14, %19 : vector<64x128xf32>
    %21 = vector.extract_strided_slice %2 {offsets = [1, 0, 0], sizes = [8, 8, 128], strides = [1, 1, 1]} : vector<10x10x128xbf16> to vector<8x8x128xbf16>
    %22 = vector.shape_cast %21 : vector<8x8x128xbf16> to vector<64x128xbf16>
    %c3 = arith.constant 3 : index
    %c0_14 = arith.constant 0 : index
    %c0_15 = arith.constant 0 : index
    %23 = vector.load %arg5[%c3, %c0_14, %c0_15] : memref<27x128x128xbf16, #tpu.memory_space<vmem>>, vector<1x128x128xbf16>
    %24 = vector.shape_cast %23 : vector<1x128x128xbf16> to vector<128x128xbf16>
    %cst_16 = arith.constant dense<0.000000e+00> : vector<64x128xf32>
    %25 = tpu.matmul %22, %24, %cst_16 {dimension_numbers = #tpu.dot_dimension_numbers<[1], [0], [0], [1], [0, 0, 1, 1], [], []>} : vector<64x128xbf16>, vector<128x128xbf16>, vector<64x128xf32> -> vector<64x128xf32>
    %26 = arith.addf %20, %25 : vector<64x128xf32>
    %27 = vector.extract_strided_slice %2 {offsets = [1, 1, 0], sizes = [8, 8, 128], strides = [1, 1, 1]} : vector<10x10x128xbf16> to vector<8x8x128xbf16>
    %28 = vector.shape_cast %27 : vector<8x8x128xbf16> to vector<64x128xbf16>
    %c4 = arith.constant 4 : index
    %c0_17 = arith.constant 0 : index
    %c0_18 = arith.constant 0 : index
    %29 = vector.load %arg5[%c4, %c0_17, %c0_18] : memref<27x128x128xbf16, #tpu.memory_space<vmem>>, vector<1x128x128xbf16>
    %30 = vector.shape_cast %29 : vector<1x128x128xbf16> to vector<128x128xbf16>
    %cst_19 = arith.constant dense<0.000000e+00> : vector<64x128xf32>
    %31 = tpu.matmul %28, %30, %cst_19 {dimension_numbers = #tpu.dot_dimension_numbers<[1], [0], [0], [1], [0, 0, 1, 1], [], []>} : vector<64x128xbf16>, vector<128x128xbf16>, vector<64x128xf32> -> vector<64x128xf32>
    %32 = arith.addf %26, %31 : vector<64x128xf32>
    %33 = vector.extract_strided_slice %2 {offsets = [1, 2, 0], sizes = [8, 8, 128], strides = [1, 1, 1]} : vector<10x10x128xbf16> to vector<8x8x128xbf16>
    %34 = vector.shape_cast %33 : vector<8x8x128xbf16> to vector<64x128xbf16>
    %c5 = arith.constant 5 : index
    %c0_20 = arith.constant 0 : index
    %c0_21 = arith.constant 0 : index
    %35 = vector.load %arg5[%c5, %c0_20, %c0_21] : memref<27x128x128xbf16, #tpu.memory_space<vmem>>, vector<1x128x128xbf16>
    %36 = vector.shape_cast %35 : vector<1x128x128xbf16> to vector<128x128xbf16>
    %cst_22 = arith.constant dense<0.000000e+00> : vector<64x128xf32>
    %37 = tpu.matmul %34, %36, %cst_22 {dimension_numbers = #tpu.dot_dimension_numbers<[1], [0], [0], [1], [0, 0, 1, 1], [], []>} : vector<64x128xbf16>, vector<128x128xbf16>, vector<64x128xf32> -> vector<64x128xf32>
    %38 = arith.addf %32, %37 : vector<64x128xf32>
    %39 = vector.extract_strided_slice %2 {offsets = [2, 0, 0], sizes = [8, 8, 128], strides = [1, 1, 1]} : vector<10x10x128xbf16> to vector<8x8x128xbf16>
    %40 = vector.shape_cast %39 : vector<8x8x128xbf16> to vector<64x128xbf16>
    %c6 = arith.constant 6 : index
    %c0_23 = arith.constant 0 : index
    %c0_24 = arith.constant 0 : index
    %41 = vector.load %arg5[%c6, %c0_23, %c0_24] : memref<27x128x128xbf16, #tpu.memory_space<vmem>>, vector<1x128x128xbf16>
    %42 = vector.shape_cast %41 : vector<1x128x128xbf16> to vector<128x128xbf16>
    %cst_25 = arith.constant dense<0.000000e+00> : vector<64x128xf32>
    %43 = tpu.matmul %40, %42, %cst_25 {dimension_numbers = #tpu.dot_dimension_numbers<[1], [0], [0], [1], [0, 0, 1, 1], [], []>} : vector<64x128xbf16>, vector<128x128xbf16>, vector<64x128xf32> -> vector<64x128xf32>
    %44 = arith.addf %38, %43 : vector<64x128xf32>
    %45 = vector.extract_strided_slice %2 {offsets = [2, 1, 0], sizes = [8, 8, 128], strides = [1, 1, 1]} : vector<10x10x128xbf16> to vector<8x8x128xbf16>
    %46 = vector.shape_cast %45 : vector<8x8x128xbf16> to vector<64x128xbf16>
    %c7 = arith.constant 7 : index
    %c0_26 = arith.constant 0 : index
    %c0_27 = arith.constant 0 : index
    %47 = vector.load %arg5[%c7, %c0_26, %c0_27] : memref<27x128x128xbf16, #tpu.memory_space<vmem>>, vector<1x128x128xbf16>
    %48 = vector.shape_cast %47 : vector<1x128x128xbf16> to vector<128x128xbf16>
    %cst_28 = arith.constant dense<0.000000e+00> : vector<64x128xf32>
    %49 = tpu.matmul %46, %48, %cst_28 {dimension_numbers = #tpu.dot_dimension_numbers<[1], [0], [0], [1], [0, 0, 1, 1], [], []>} : vector<64x128xbf16>, vector<128x128xbf16>, vector<64x128xf32> -> vector<64x128xf32>
    %50 = arith.addf %44, %49 : vector<64x128xf32>
    %51 = vector.extract_strided_slice %2 {offsets = [2, 2, 0], sizes = [8, 8, 128], strides = [1, 1, 1]} : vector<10x10x128xbf16> to vector<8x8x128xbf16>
    %52 = vector.shape_cast %51 : vector<8x8x128xbf16> to vector<64x128xbf16>
    %c8 = arith.constant 8 : index
    %c0_29 = arith.constant 0 : index
    %c0_30 = arith.constant 0 : index
    %53 = vector.load %arg5[%c8, %c0_29, %c0_30] : memref<27x128x128xbf16, #tpu.memory_space<vmem>>, vector<1x128x128xbf16>
    %54 = vector.shape_cast %53 : vector<1x128x128xbf16> to vector<128x128xbf16>
    %cst_31 = arith.constant dense<0.000000e+00> : vector<64x128xf32>
    %55 = tpu.matmul %52, %54, %cst_31 {dimension_numbers = #tpu.dot_dimension_numbers<[1], [0], [0], [1], [0, 0, 1, 1], [], []>} : vector<64x128xbf16>, vector<128x128xbf16>, vector<64x128xf32> -> vector<64x128xf32>
    %56 = arith.addf %50, %55 : vector<64x128xf32>
    %c0_32 = arith.constant 0 : index
    %c0_33 = arith.constant 0 : index
    %c0_34 = arith.constant 0 : index
    %c0_35 = arith.constant 0 : index
    %c0_36 = arith.constant 0 : index
    %57 = vector.load %arg3[%c0_32, %c0_33, %c0_34, %c0_35, %c0_36] : memref<1x1x10x10x128xbf16, #tpu.memory_space<vmem>>, vector<1x1x10x10x128xbf16>
    %58 = vector.shape_cast %57 : vector<1x1x10x10x128xbf16> to vector<10x10x128xbf16>
    %59 = vector.extract_strided_slice %58 {offsets = [0, 0, 0], sizes = [8, 8, 128], strides = [1, 1, 1]} : vector<10x10x128xbf16> to vector<8x8x128xbf16>
    %60 = vector.shape_cast %59 : vector<8x8x128xbf16> to vector<64x128xbf16>
    %c9 = arith.constant 9 : index
    %c0_37 = arith.constant 0 : index
    %c0_38 = arith.constant 0 : index
    %61 = vector.load %arg5[%c9, %c0_37, %c0_38] : memref<27x128x128xbf16, #tpu.memory_space<vmem>>, vector<1x128x128xbf16>
    %62 = vector.shape_cast %61 : vector<1x128x128xbf16> to vector<128x128xbf16>
    %cst_39 = arith.constant dense<0.000000e+00> : vector<64x128xf32>
    %63 = tpu.matmul %60, %62, %cst_39 {dimension_numbers = #tpu.dot_dimension_numbers<[1], [0], [0], [1], [0, 0, 1, 1], [], []>} : vector<64x128xbf16>, vector<128x128xbf16>, vector<64x128xf32> -> vector<64x128xf32>
    %64 = arith.addf %56, %63 : vector<64x128xf32>
    %65 = vector.extract_strided_slice %58 {offsets = [0, 1, 0], sizes = [8, 8, 128], strides = [1, 1, 1]} : vector<10x10x128xbf16> to vector<8x8x128xbf16>
    %66 = vector.shape_cast %65 : vector<8x8x128xbf16> to vector<64x128xbf16>
    %c10 = arith.constant 10 : index
    %c0_40 = arith.constant 0 : index
    %c0_41 = arith.constant 0 : index
    %67 = vector.load %arg5[%c10, %c0_40, %c0_41] : memref<27x128x128xbf16, #tpu.memory_space<vmem>>, vector<1x128x128xbf16>
    %68 = vector.shape_cast %67 : vector<1x128x128xbf16> to vector<128x128xbf16>
    %cst_42 = arith.constant dense<0.000000e+00> : vector<64x128xf32>
    %69 = tpu.matmul %66, %68, %cst_42 {dimension_numbers = #tpu.dot_dimension_numbers<[1], [0], [0], [1], [0, 0, 1, 1], [], []>} : vector<64x128xbf16>, vector<128x128xbf16>, vector<64x128xf32> -> vector<64x128xf32>
    %70 = arith.addf %64, %69 : vector<64x128xf32>
    %71 = vector.extract_strided_slice %58 {offsets = [0, 2, 0], sizes = [8, 8, 128], strides = [1, 1, 1]} : vector<10x10x128xbf16> to vector<8x8x128xbf16>
    %72 = vector.shape_cast %71 : vector<8x8x128xbf16> to vector<64x128xbf16>
    %c11 = arith.constant 11 : index
    %c0_43 = arith.constant 0 : index
    %c0_44 = arith.constant 0 : index
    %73 = vector.load %arg5[%c11, %c0_43, %c0_44] : memref<27x128x128xbf16, #tpu.memory_space<vmem>>, vector<1x128x128xbf16>
    %74 = vector.shape_cast %73 : vector<1x128x128xbf16> to vector<128x128xbf16>
    %cst_45 = arith.constant dense<0.000000e+00> : vector<64x128xf32>
    %75 = tpu.matmul %72, %74, %cst_45 {dimension_numbers = #tpu.dot_dimension_numbers<[1], [0], [0], [1], [0, 0, 1, 1], [], []>} : vector<64x128xbf16>, vector<128x128xbf16>, vector<64x128xf32> -> vector<64x128xf32>
    %76 = arith.addf %70, %75 : vector<64x128xf32>
    %77 = vector.extract_strided_slice %58 {offsets = [1, 0, 0], sizes = [8, 8, 128], strides = [1, 1, 1]} : vector<10x10x128xbf16> to vector<8x8x128xbf16>
    %78 = vector.shape_cast %77 : vector<8x8x128xbf16> to vector<64x128xbf16>
    %c12 = arith.constant 12 : index
    %c0_46 = arith.constant 0 : index
    %c0_47 = arith.constant 0 : index
    %79 = vector.load %arg5[%c12, %c0_46, %c0_47] : memref<27x128x128xbf16, #tpu.memory_space<vmem>>, vector<1x128x128xbf16>
    %80 = vector.shape_cast %79 : vector<1x128x128xbf16> to vector<128x128xbf16>
    %cst_48 = arith.constant dense<0.000000e+00> : vector<64x128xf32>
    %81 = tpu.matmul %78, %80, %cst_48 {dimension_numbers = #tpu.dot_dimension_numbers<[1], [0], [0], [1], [0, 0, 1, 1], [], []>} : vector<64x128xbf16>, vector<128x128xbf16>, vector<64x128xf32> -> vector<64x128xf32>
    %82 = arith.addf %76, %81 : vector<64x128xf32>
    %83 = vector.extract_strided_slice %58 {offsets = [1, 1, 0], sizes = [8, 8, 128], strides = [1, 1, 1]} : vector<10x10x128xbf16> to vector<8x8x128xbf16>
    %84 = vector.shape_cast %83 : vector<8x8x128xbf16> to vector<64x128xbf16>
    %c13 = arith.constant 13 : index
    %c0_49 = arith.constant 0 : index
    %c0_50 = arith.constant 0 : index
    %85 = vector.load %arg5[%c13, %c0_49, %c0_50] : memref<27x128x128xbf16, #tpu.memory_space<vmem>>, vector<1x128x128xbf16>
    %86 = vector.shape_cast %85 : vector<1x128x128xbf16> to vector<128x128xbf16>
    %cst_51 = arith.constant dense<0.000000e+00> : vector<64x128xf32>
    %87 = tpu.matmul %84, %86, %cst_51 {dimension_numbers = #tpu.dot_dimension_numbers<[1], [0], [0], [1], [0, 0, 1, 1], [], []>} : vector<64x128xbf16>, vector<128x128xbf16>, vector<64x128xf32> -> vector<64x128xf32>
    %88 = arith.addf %82, %87 : vector<64x128xf32>
    %89 = vector.extract_strided_slice %58 {offsets = [1, 2, 0], sizes = [8, 8, 128], strides = [1, 1, 1]} : vector<10x10x128xbf16> to vector<8x8x128xbf16>
    %90 = vector.shape_cast %89 : vector<8x8x128xbf16> to vector<64x128xbf16>
    %c14 = arith.constant 14 : index
    %c0_52 = arith.constant 0 : index
    %c0_53 = arith.constant 0 : index
    %91 = vector.load %arg5[%c14, %c0_52, %c0_53] : memref<27x128x128xbf16, #tpu.memory_space<vmem>>, vector<1x128x128xbf16>
    %92 = vector.shape_cast %91 : vector<1x128x128xbf16> to vector<128x128xbf16>
    %cst_54 = arith.constant dense<0.000000e+00> : vector<64x128xf32>
    %93 = tpu.matmul %90, %92, %cst_54 {dimension_numbers = #tpu.dot_dimension_numbers<[1], [0], [0], [1], [0, 0, 1, 1], [], []>} : vector<64x128xbf16>, vector<128x128xbf16>, vector<64x128xf32> -> vector<64x128xf32>
    %94 = arith.addf %88, %93 : vector<64x128xf32>
    %95 = vector.extract_strided_slice %58 {offsets = [2, 0, 0], sizes = [8, 8, 128], strides = [1, 1, 1]} : vector<10x10x128xbf16> to vector<8x8x128xbf16>
    %96 = vector.shape_cast %95 : vector<8x8x128xbf16> to vector<64x128xbf16>
    %c15 = arith.constant 15 : index
    %c0_55 = arith.constant 0 : index
    %c0_56 = arith.constant 0 : index
    %97 = vector.load %arg5[%c15, %c0_55, %c0_56] : memref<27x128x128xbf16, #tpu.memory_space<vmem>>, vector<1x128x128xbf16>
    %98 = vector.shape_cast %97 : vector<1x128x128xbf16> to vector<128x128xbf16>
    %cst_57 = arith.constant dense<0.000000e+00> : vector<64x128xf32>
    %99 = tpu.matmul %96, %98, %cst_57 {dimension_numbers = #tpu.dot_dimension_numbers<[1], [0], [0], [1], [0, 0, 1, 1], [], []>} : vector<64x128xbf16>, vector<128x128xbf16>, vector<64x128xf32> -> vector<64x128xf32>
    %100 = arith.addf %94, %99 : vector<64x128xf32>
    %101 = vector.extract_strided_slice %58 {offsets = [2, 1, 0], sizes = [8, 8, 128], strides = [1, 1, 1]} : vector<10x10x128xbf16> to vector<8x8x128xbf16>
    %102 = vector.shape_cast %101 : vector<8x8x128xbf16> to vector<64x128xbf16>
    %c16 = arith.constant 16 : index
    %c0_58 = arith.constant 0 : index
    %c0_59 = arith.constant 0 : index
    %103 = vector.load %arg5[%c16, %c0_58, %c0_59] : memref<27x128x128xbf16, #tpu.memory_space<vmem>>, vector<1x128x128xbf16>
    %104 = vector.shape_cast %103 : vector<1x128x128xbf16> to vector<128x128xbf16>
    %cst_60 = arith.constant dense<0.000000e+00> : vector<64x128xf32>
    %105 = tpu.matmul %102, %104, %cst_60 {dimension_numbers = #tpu.dot_dimension_numbers<[1], [0], [0], [1], [0, 0, 1, 1], [], []>} : vector<64x128xbf16>, vector<128x128xbf16>, vector<64x128xf32> -> vector<64x128xf32>
    %106 = arith.addf %100, %105 : vector<64x128xf32>
    %107 = vector.extract_strided_slice %58 {offsets = [2, 2, 0], sizes = [8, 8, 128], strides = [1, 1, 1]} : vector<10x10x128xbf16> to vector<8x8x128xbf16>
    %108 = vector.shape_cast %107 : vector<8x8x128xbf16> to vector<64x128xbf16>
    %c17 = arith.constant 17 : index
    %c0_61 = arith.constant 0 : index
    %c0_62 = arith.constant 0 : index
    %109 = vector.load %arg5[%c17, %c0_61, %c0_62] : memref<27x128x128xbf16, #tpu.memory_space<vmem>>, vector<1x128x128xbf16>
    %110 = vector.shape_cast %109 : vector<1x128x128xbf16> to vector<128x128xbf16>
    %cst_63 = arith.constant dense<0.000000e+00> : vector<64x128xf32>
    %111 = tpu.matmul %108, %110, %cst_63 {dimension_numbers = #tpu.dot_dimension_numbers<[1], [0], [0], [1], [0, 0, 1, 1], [], []>} : vector<64x128xbf16>, vector<128x128xbf16>, vector<64x128xf32> -> vector<64x128xf32>
    %112 = arith.addf %106, %111 : vector<64x128xf32>
    %c0_64 = arith.constant 0 : index
    %c0_65 = arith.constant 0 : index
    %c0_66 = arith.constant 0 : index
    %c0_67 = arith.constant 0 : index
    %c0_68 = arith.constant 0 : index
    %113 = vector.load %arg4[%c0_64, %c0_65, %c0_66, %c0_67, %c0_68] : memref<1x1x10x10x128xbf16, #tpu.memory_space<vmem>>, vector<1x1x10x10x128xbf16>
    %114 = vector.shape_cast %113 : vector<1x1x10x10x128xbf16> to vector<10x10x128xbf16>
    %115 = vector.extract_strided_slice %114 {offsets = [0, 0, 0], sizes = [8, 8, 128], strides = [1, 1, 1]} : vector<10x10x128xbf16> to vector<8x8x128xbf16>
    %116 = vector.shape_cast %115 : vector<8x8x128xbf16> to vector<64x128xbf16>
    %c18 = arith.constant 18 : index
    %c0_69 = arith.constant 0 : index
    %c0_70 = arith.constant 0 : index
    %117 = vector.load %arg5[%c18, %c0_69, %c0_70] : memref<27x128x128xbf16, #tpu.memory_space<vmem>>, vector<1x128x128xbf16>
    %118 = vector.shape_cast %117 : vector<1x128x128xbf16> to vector<128x128xbf16>
    %cst_71 = arith.constant dense<0.000000e+00> : vector<64x128xf32>
    %119 = tpu.matmul %116, %118, %cst_71 {dimension_numbers = #tpu.dot_dimension_numbers<[1], [0], [0], [1], [0, 0, 1, 1], [], []>} : vector<64x128xbf16>, vector<128x128xbf16>, vector<64x128xf32> -> vector<64x128xf32>
    %120 = arith.addf %112, %119 : vector<64x128xf32>
    %121 = vector.extract_strided_slice %114 {offsets = [0, 1, 0], sizes = [8, 8, 128], strides = [1, 1, 1]} : vector<10x10x128xbf16> to vector<8x8x128xbf16>
    %122 = vector.shape_cast %121 : vector<8x8x128xbf16> to vector<64x128xbf16>
    %c19 = arith.constant 19 : index
    %c0_72 = arith.constant 0 : index
    %c0_73 = arith.constant 0 : index
    %123 = vector.load %arg5[%c19, %c0_72, %c0_73] : memref<27x128x128xbf16, #tpu.memory_space<vmem>>, vector<1x128x128xbf16>
    %124 = vector.shape_cast %123 : vector<1x128x128xbf16> to vector<128x128xbf16>
    %cst_74 = arith.constant dense<0.000000e+00> : vector<64x128xf32>
    %125 = tpu.matmul %122, %124, %cst_74 {dimension_numbers = #tpu.dot_dimension_numbers<[1], [0], [0], [1], [0, 0, 1, 1], [], []>} : vector<64x128xbf16>, vector<128x128xbf16>, vector<64x128xf32> -> vector<64x128xf32>
    %126 = arith.addf %120, %125 : vector<64x128xf32>
    %127 = vector.extract_strided_slice %114 {offsets = [0, 2, 0], sizes = [8, 8, 128], strides = [1, 1, 1]} : vector<10x10x128xbf16> to vector<8x8x128xbf16>
    %128 = vector.shape_cast %127 : vector<8x8x128xbf16> to vector<64x128xbf16>
    %c20 = arith.constant 20 : index
    %c0_75 = arith.constant 0 : index
    %c0_76 = arith.constant 0 : index
    %129 = vector.load %arg5[%c20, %c0_75, %c0_76] : memref<27x128x128xbf16, #tpu.memory_space<vmem>>, vector<1x128x128xbf16>
    %130 = vector.shape_cast %129 : vector<1x128x128xbf16> to vector<128x128xbf16>
    %cst_77 = arith.constant dense<0.000000e+00> : vector<64x128xf32>
    %131 = tpu.matmul %128, %130, %cst_77 {dimension_numbers = #tpu.dot_dimension_numbers<[1], [0], [0], [1], [0, 0, 1, 1], [], []>} : vector<64x128xbf16>, vector<128x128xbf16>, vector<64x128xf32> -> vector<64x128xf32>
    %132 = arith.addf %126, %131 : vector<64x128xf32>
    %133 = vector.extract_strided_slice %114 {offsets = [1, 0, 0], sizes = [8, 8, 128], strides = [1, 1, 1]} : vector<10x10x128xbf16> to vector<8x8x128xbf16>
    %134 = vector.shape_cast %133 : vector<8x8x128xbf16> to vector<64x128xbf16>
    %c21 = arith.constant 21 : index
    %c0_78 = arith.constant 0 : index
    %c0_79 = arith.constant 0 : index
    %135 = vector.load %arg5[%c21, %c0_78, %c0_79] : memref<27x128x128xbf16, #tpu.memory_space<vmem>>, vector<1x128x128xbf16>
    %136 = vector.shape_cast %135 : vector<1x128x128xbf16> to vector<128x128xbf16>
    %cst_80 = arith.constant dense<0.000000e+00> : vector<64x128xf32>
    %137 = tpu.matmul %134, %136, %cst_80 {dimension_numbers = #tpu.dot_dimension_numbers<[1], [0], [0], [1], [0, 0, 1, 1], [], []>} : vector<64x128xbf16>, vector<128x128xbf16>, vector<64x128xf32> -> vector<64x128xf32>
    %138 = arith.addf %132, %137 : vector<64x128xf32>
    %139 = vector.extract_strided_slice %114 {offsets = [1, 1, 0], sizes = [8, 8, 128], strides = [1, 1, 1]} : vector<10x10x128xbf16> to vector<8x8x128xbf16>
    %140 = vector.shape_cast %139 : vector<8x8x128xbf16> to vector<64x128xbf16>
    %c22 = arith.constant 22 : index
    %c0_81 = arith.constant 0 : index
    %c0_82 = arith.constant 0 : index
    %141 = vector.load %arg5[%c22, %c0_81, %c0_82] : memref<27x128x128xbf16, #tpu.memory_space<vmem>>, vector<1x128x128xbf16>
    %142 = vector.shape_cast %141 : vector<1x128x128xbf16> to vector<128x128xbf16>
    %cst_83 = arith.constant dense<0.000000e+00> : vector<64x128xf32>
    %143 = tpu.matmul %140, %142, %cst_83 {dimension_numbers = #tpu.dot_dimension_numbers<[1], [0], [0], [1], [0, 0, 1, 1], [], []>} : vector<64x128xbf16>, vector<128x128xbf16>, vector<64x128xf32> -> vector<64x128xf32>
    %144 = arith.addf %138, %143 : vector<64x128xf32>
    %145 = vector.extract_strided_slice %114 {offsets = [1, 2, 0], sizes = [8, 8, 128], strides = [1, 1, 1]} : vector<10x10x128xbf16> to vector<8x8x128xbf16>
    %146 = vector.shape_cast %145 : vector<8x8x128xbf16> to vector<64x128xbf16>
    %c23 = arith.constant 23 : index
    %c0_84 = arith.constant 0 : index
    %c0_85 = arith.constant 0 : index
    %147 = vector.load %arg5[%c23, %c0_84, %c0_85] : memref<27x128x128xbf16, #tpu.memory_space<vmem>>, vector<1x128x128xbf16>
    %148 = vector.shape_cast %147 : vector<1x128x128xbf16> to vector<128x128xbf16>
    %cst_86 = arith.constant dense<0.000000e+00> : vector<64x128xf32>
    %149 = tpu.matmul %146, %148, %cst_86 {dimension_numbers = #tpu.dot_dimension_numbers<[1], [0], [0], [1], [0, 0, 1, 1], [], []>} : vector<64x128xbf16>, vector<128x128xbf16>, vector<64x128xf32> -> vector<64x128xf32>
    %150 = arith.addf %144, %149 : vector<64x128xf32>
    %151 = vector.extract_strided_slice %114 {offsets = [2, 0, 0], sizes = [8, 8, 128], strides = [1, 1, 1]} : vector<10x10x128xbf16> to vector<8x8x128xbf16>
    %152 = vector.shape_cast %151 : vector<8x8x128xbf16> to vector<64x128xbf16>
    %c24 = arith.constant 24 : index
    %c0_87 = arith.constant 0 : index
    %c0_88 = arith.constant 0 : index
    %153 = vector.load %arg5[%c24, %c0_87, %c0_88] : memref<27x128x128xbf16, #tpu.memory_space<vmem>>, vector<1x128x128xbf16>
    %154 = vector.shape_cast %153 : vector<1x128x128xbf16> to vector<128x128xbf16>
    %cst_89 = arith.constant dense<0.000000e+00> : vector<64x128xf32>
    %155 = tpu.matmul %152, %154, %cst_89 {dimension_numbers = #tpu.dot_dimension_numbers<[1], [0], [0], [1], [0, 0, 1, 1], [], []>} : vector<64x128xbf16>, vector<128x128xbf16>, vector<64x128xf32> -> vector<64x128xf32>
    %156 = arith.addf %150, %155 : vector<64x128xf32>
    %157 = vector.extract_strided_slice %114 {offsets = [2, 1, 0], sizes = [8, 8, 128], strides = [1, 1, 1]} : vector<10x10x128xbf16> to vector<8x8x128xbf16>
    %158 = vector.shape_cast %157 : vector<8x8x128xbf16> to vector<64x128xbf16>
    %c25 = arith.constant 25 : index
    %c0_90 = arith.constant 0 : index
    %c0_91 = arith.constant 0 : index
    %159 = vector.load %arg5[%c25, %c0_90, %c0_91] : memref<27x128x128xbf16, #tpu.memory_space<vmem>>, vector<1x128x128xbf16>
    %160 = vector.shape_cast %159 : vector<1x128x128xbf16> to vector<128x128xbf16>
    %cst_92 = arith.constant dense<0.000000e+00> : vector<64x128xf32>
    %161 = tpu.matmul %158, %160, %cst_92 {dimension_numbers = #tpu.dot_dimension_numbers<[1], [0], [0], [1], [0, 0, 1, 1], [], []>} : vector<64x128xbf16>, vector<128x128xbf16>, vector<64x128xf32> -> vector<64x128xf32>
    %162 = arith.addf %156, %161 : vector<64x128xf32>
    %163 = vector.extract_strided_slice %114 {offsets = [2, 2, 0], sizes = [8, 8, 128], strides = [1, 1, 1]} : vector<10x10x128xbf16> to vector<8x8x128xbf16>
    %164 = vector.shape_cast %163 : vector<8x8x128xbf16> to vector<64x128xbf16>
    %c26 = arith.constant 26 : index
    %c0_93 = arith.constant 0 : index
    %c0_94 = arith.constant 0 : index
    %165 = vector.load %arg5[%c26, %c0_93, %c0_94] : memref<27x128x128xbf16, #tpu.memory_space<vmem>>, vector<1x128x128xbf16>
    %166 = vector.shape_cast %165 : vector<1x128x128xbf16> to vector<128x128xbf16>
    %cst_95 = arith.constant dense<0.000000e+00> : vector<64x128xf32>
    %167 = tpu.matmul %164, %166, %cst_95 {dimension_numbers = #tpu.dot_dimension_numbers<[1], [0], [0], [1], [0, 0, 1, 1], [], []>} : vector<64x128xbf16>, vector<128x128xbf16>, vector<64x128xf32> -> vector<64x128xf32>
    %168 = arith.addf %162, %167 : vector<64x128xf32>
    %169 = vector.shape_cast %168 : vector<64x128xf32> to vector<8x8x128xf32>
    %c0_96 = arith.constant 0 : index
    %c0_97 = arith.constant 0 : index
    %c0_98 = arith.constant 0 : index
    %c0_99 = arith.constant 0 : index
    %c0_100 = arith.constant 0 : index
    %170 = vector.load %arg6[%c0_96, %c0_97, %c0_98, %c0_99, %c0_100] : memref<1x1x8x8x128xf32, #tpu.memory_space<vmem>>, vector<1x1x8x8x128xf32>
    %171 = vector.shape_cast %170 : vector<1x1x8x8x128xf32> to vector<8x8x128xf32>
    %172 = vector.shape_cast %169 : vector<8x8x128xf32> to vector<1x1x8x8x128xf32>
    tpu.vector_store %arg6[%c0_96, %c0_97, %c0_98, %c0_99, %c0_100], %172 {strides = array<i32>} : memref<1x1x8x8x128xf32, #tpu.memory_space<vmem>>, vector<1x1x8x8x128xf32>,
    %cst_101 = arith.constant dense<0.000000e+00> : vector<128xf32>
    %173 = vector.multi_reduction <add>, %168, %cst_101 [0] : vector<64x128xf32> to vector<128xf32>
    %174 = vector.shape_cast %173 : vector<128xf32> to vector<1x128xf32>
    %c0_102 = arith.constant 0 : index
    %c0_103 = arith.constant 0 : index
    %c0_104 = arith.constant 0 : index
    %c0_105 = arith.constant 0 : index
    %175 = vector.load %arg7[%c0_102, %c0_103, %c0_104, %c0_105] : memref<1x1x1x128xf32, #tpu.memory_space<vmem>>, vector<1x1x1x128xf32>
    %176 = vector.shape_cast %175 : vector<1x1x1x128xf32> to vector<1x128xf32>
    %177 = vector.shape_cast %174 : vector<1x128xf32> to vector<1x1x1x128xf32>
    tpu.vector_store %arg7[%c0_102, %c0_103, %c0_104, %c0_105], %177 {strides = array<i32>} : memref<1x1x1x128xf32, #tpu.memory_space<vmem>>, vector<1x1x1x128xf32>,
    %178 = arith.mulf %168, %168 : vector<64x128xf32>
    %cst_106 = arith.constant dense<0.000000e+00> : vector<128xf32>
    %179 = vector.multi_reduction <add>, %178, %cst_106 [0] : vector<64x128xf32> to vector<128xf32>
    %180 = vector.shape_cast %179 : vector<128xf32> to vector<1x128xf32>
    %c0_107 = arith.constant 0 : index
    %c0_108 = arith.constant 0 : index
    %c0_109 = arith.constant 0 : index
    %c0_110 = arith.constant 0 : index
    %181 = vector.load %arg8[%c0_107, %c0_108, %c0_109, %c0_110] : memref<1x1x1x128xf32, #tpu.memory_space<vmem>>, vector<1x1x1x128xf32>
    %182 = vector.shape_cast %181 : vector<1x1x1x128xf32> to vector<1x128xf32>
    %183 = vector.shape_cast %180 : vector<1x128xf32> to vector<1x1x1x128xf32>
    tpu.vector_store %arg8[%c0_107, %c0_108, %c0_109, %c0_110], %183 {strides = array<i32>} : memref<1x1x1x128xf32, #tpu.memory_space<vmem>>, vector<1x1x1x128xf32>,
    return
  }
  func.func @transform_0(%arg0: i32, %arg1: i32) -> (i32, i32, i32, i32, i32) {
    %c0_i32 = arith.constant 0 : i32
    %0 = arith.addi %arg1, %c0_i32 : i32
    %c0_i32_0 = arith.constant 0 : i32
    %c0_i32_1 = arith.constant 0 : i32
    %c0_i32_2 = arith.constant 0 : i32
    %c0_i32_3 = arith.constant 0 : i32
    return %arg0, %0, %c0_i32_0, %c0_i32_1, %c0_i32_2 : i32, i32, i32, i32, i32
  }
  func.func @transform_1(%arg0: i32, %arg1: i32) -> (i32, i32, i32, i32, i32) {
    %c1_i32 = arith.constant 1 : i32
    %0 = arith.addi %arg1, %c1_i32 : i32
    %c0_i32 = arith.constant 0 : i32
    %c0_i32_0 = arith.constant 0 : i32
    %c0_i32_1 = arith.constant 0 : i32
    %c0_i32_2 = arith.constant 0 : i32
    return %arg0, %0, %c0_i32, %c0_i32_0, %c0_i32_1 : i32, i32, i32, i32, i32
  }
  func.func @transform_2(%arg0: i32, %arg1: i32) -> (i32, i32, i32, i32, i32) {
    %c2_i32 = arith.constant 2 : i32
    %0 = arith.addi %arg1, %c2_i32 : i32
    %c0_i32 = arith.constant 0 : i32
    %c0_i32_0 = arith.constant 0 : i32
    %c0_i32_1 = arith.constant 0 : i32
    %c0_i32_2 = arith.constant 0 : i32
    return %arg0, %0, %c0_i32, %c0_i32_0, %c0_i32_1 : i32, i32, i32, i32, i32
  }
  func.func @transform_3(%arg0: i32, %arg1: i32) -> (i32, i32, i32) {
    %c0_i32 = arith.constant 0 : i32
    %c0_i32_0 = arith.constant 0 : i32
    %c0_i32_1 = arith.constant 0 : i32
    %c0_i32_2 = arith.constant 0 : i32
    return %c0_i32, %c0_i32_0, %c0_i32_1 : i32, i32, i32
  }
  func.func @transform_4(%arg0: i32, %arg1: i32) -> (i32, i32, i32, i32, i32) {
    %c0_i32 = arith.constant 0 : i32
    %c0_i32_0 = arith.constant 0 : i32
    %c0_i32_1 = arith.constant 0 : i32
    %c0_i32_2 = arith.constant 0 : i32
    return %arg0, %arg1, %c0_i32, %c0_i32_0, %c0_i32_1 : i32, i32, i32, i32, i32
  }
  func.func @transform_5(%arg0: i32, %arg1: i32) -> (i32, i32, i32, i32) {
    %c0_i32 = arith.constant 0 : i32
    %c0_i32_0 = arith.constant 0 : i32
    %c0_i32_1 = arith.constant 0 : i32
    return %arg0, %arg1, %c0_i32, %c0_i32_0 : i32, i32, i32, i32
  }
  func.func @transform_6(%arg0: i32, %arg1: i32) -> (i32, i32, i32, i32) {
    %c0_i32 = arith.constant 0 : i32
    %c0_i32_0 = arith.constant 0 : i32
    %c0_i32_1 = arith.constant 0 : i32
    return %arg0, %arg1, %c0_i32, %c0_i32_0 : i32, i32, i32, i32
  }
}

module attributes {stable_mosaic.version = 11 : i64} {
  func.func @_bn_relu_kernel(%arg0: i32, %arg1: memref<512x128xf32, #tpu.memory_space<vmem>>, %arg2: memref<1x128xf32, #tpu.memory_space<vmem>>, %arg3: memref<1x128xf32, #tpu.memory_space<vmem>>, %arg4: memref<512x128xf32, #tpu.memory_space<vmem>>) attributes {dimension_semantics = [#tpu.dimension_semantics<parallel>], iteration_bounds = array<i64: 2>, scalar_prefetch = 0 : i64, scratch_operands = 0 : i64, tpu.core_type = #tpu.core_type<tc>, window_params = [{transform_indices = @transform_0, window_bounds = array<i64: 512, 128>}, {pipeline_mode = #tpu.pipeline_mode<synchronous>, transform_indices = @transform_1, window_bounds = array<i64: 1, 128>}, {pipeline_mode = #tpu.pipeline_mode<synchronous>, transform_indices = @transform_2, window_bounds = array<i64: 1, 128>}, {transform_indices = @transform_3, window_bounds = array<i64: 512, 128>}]} {
    %c0 = arith.constant 0 : index
    %c0_0 = arith.constant 0 : index
    %0 = vector.load %arg1[%c0, %c0_0] : memref<512x128xf32, #tpu.memory_space<vmem>>, vector<512x128xf32>
    %c0_1 = arith.constant 0 : index
    %c0_2 = arith.constant 0 : index
    %1 = vector.load %arg2[%c0_1, %c0_2] : memref<1x128xf32, #tpu.memory_space<vmem>>, vector<1x128xf32>
    %2 = vector.broadcast %1 : vector<1x128xf32> to vector<512x128xf32>
    %3 = arith.mulf %0, %2 : vector<512x128xf32>
    %c0_3 = arith.constant 0 : index
    %c0_4 = arith.constant 0 : index
    %4 = vector.load %arg3[%c0_3, %c0_4] : memref<1x128xf32, #tpu.memory_space<vmem>>, vector<1x128xf32>
    %5 = vector.broadcast %4 : vector<1x128xf32> to vector<512x128xf32>
    %6 = arith.addf %3, %5 : vector<512x128xf32>
    %cst = arith.constant 0.000000e+00 : f32
    %7 = vector.broadcast %cst : f32 to vector<512x128xf32>
    %8 = arith.maximumf %6, %7 : vector<512x128xf32>
    %c0_5 = arith.constant 0 : index
    %c0_6 = arith.constant 0 : index
    %9 = vector.load %arg4[%c0_5, %c0_6] : memref<512x128xf32, #tpu.memory_space<vmem>>, vector<512x128xf32>
    tpu.vector_store %arg4[%c0_5, %c0_6], %8 {strides = array<i32>} : memref<512x128xf32, #tpu.memory_space<vmem>>, vector<512x128xf32>,
    return
  }
  func.func @transform_0(%arg0: i32) -> (i32, i32) {
    %c0_i32 = arith.constant 0 : i32
    %c0_i32_0 = arith.constant 0 : i32
    return %arg0, %c0_i32 : i32, i32
  }
  func.func @transform_1(%arg0: i32) -> (i32, i32) {
    %c0_i32 = arith.constant 0 : i32
    %c0_i32_0 = arith.constant 0 : i32
    %c0_i32_1 = arith.constant 0 : i32
    return %c0_i32, %c0_i32_0 : i32, i32
  }
  func.func @transform_2(%arg0: i32) -> (i32, i32) {
    %c0_i32 = arith.constant 0 : i32
    %c0_i32_0 = arith.constant 0 : i32
    %c0_i32_1 = arith.constant 0 : i32
    return %c0_i32, %c0_i32_0 : i32, i32
  }
  func.func @transform_3(%arg0: i32) -> (i32, i32) {
    %c0_i32 = arith.constant 0 : i32
    %c0_i32_0 = arith.constant 0 : i32
    return %arg0, %c0_i32 : i32, i32
  }
}

</mosaic_0001>

<bundles_post_ra>
// kernel: up_forward.5
= control target key start
LH: loop header
LB: loop body
LE: loop exit
PB: predicated region body
PF: predicated region fallthrough
CT: control target
= control target key end

     0   :  { %s483_s1 = inlined_call_operand.vmem [shape: bf16[128,128], index: 1, kind: input, shape index: {}]   ;;  %s484_s0 = inlined_call_operand.vmem [shape: bf16[128,128], index: 0, kind: input, shape index: {}]   ;;  %s485_s2 = inlined_call_operand.vmem [shape: f32[1,128], index: 2, kind: input, shape index: {}]   ;;  %s486_s3 = inlined_call_operand.vmem [shape: f32[128,128], index: 3, kind: output, shape index: {}]  }
   0x1   :  { %v348_v0 = vld [vmem:[%s483_s1] sm:$0xff]   ;;  %v349_v1 = vld [vmem:[%s483_s1 + $0x8] sm:$0xff]   ;;  %v350_v2 = vld [vmem:[%s483_s1 + $0x10] sm:$0xff]  }
   0x2   :  { %300 = vmatprep.subr.bf16.mxu0 %v348_v0  ;;  %332 = vmatprep.subr.bf16.mxu1 %v348_v0  ;;  %v351_v3 = vld [vmem:[%s483_s1 + $0x18] sm:$0xff]   ;;  %v356_v4 = vld [vmem:[%s484_s0] sm:$0xff]   ;;  %v353_v7 = vld [vmem:[%s483_s1 + $0x28] sm:$0xff]  }
   0x3   :  { %301 = vmatpush3.bf16.msra.mxu0 %v348_v0  ;;  %340 = vmatpush3.bf16.msra.mxu1 %v348_v0  ;;  %v357_v5 = vld [vmem:[%s484_s0 + $0x20] sm:$0xff]   ;;  %v354_v8 = vld [vmem:[%s483_s1 + $0x30] sm:$0xff]   ;;  %v355_v9 = vld [vmem:[%s483_s1 + $0x38] sm:$0xff]  }
   0x4   :  { %302 = vmatprep.subr.bf16.mxu0 %v349_v1  ;;  %333 = vmatprep.subr.bf16.mxu1 %v349_v1  ;;  %v352_v6 = vld [vmem:[%s483_s1 + $0x20] sm:$0xff]   ;;  %v358_v10 = vld [vmem:[%s484_s0 + $0x8] sm:$0xff]   ;;  %v360_v12 = vld [vmem:[%s484_s0 + $0x10] sm:$0xff]  }
   0x5   :  { %316 = vmatprep.mubr.bf16.mxu0 %v356_v4  ;;  %324 = vmatprep.mubr.bf16.mxu1 %v357_v5  ;;  %v359_v11 = vld [vmem:[%s484_s0 + $0x28] sm:$0xff]   ;;  %v361_v13 = vld [vmem:[%s484_s0 + $0x30] sm:$0xff]   ;;  %v362_v14 = vld [vmem:[%s484_s0 + $0x18] sm:$0xff]  }
   0x6   :  { %v363_v15 = vld [vmem:[%s484_s0 + $0x38] sm:$0xff]   ;;  %v267_v16 = vld [vmem:[%s485_s2] ss:$0 sm:$0xff] }
   0x7   :  { %303 = vmatpush3.bf16.msra.mxu0 %v349_v1  ;;  %341 = vmatpush3.bf16.msra.mxu1 %v349_v1 }
   0x8   :  { %304 = vmatprep.subr.bf16.mxu0 %v350_v2  ;;  %334 = vmatprep.subr.bf16.mxu1 %v350_v2 }
   0xb   :  { %305 = vmatpush3.bf16.msra.mxu0 %v350_v2  ;;  %342 = vmatpush3.bf16.msra.mxu1 %v350_v2 }
   0xc   :  { %306 = vmatprep.subr.bf16.mxu0 %v351_v3  ;;  %335 = vmatprep.subr.bf16.mxu1 %v351_v3 }
   0xf   :  { %307 = vmatpush3.bf16.msra.mxu0 %v351_v3  ;;  %343 = vmatpush3.bf16.msra.mxu1 %v351_v3 }
  0x10   :  { %308 = vmatprep.subr.bf16.mxu0 %v352_v6  ;;  %336 = vmatprep.subr.bf16.mxu1 %v352_v6 }
  0x13   :  { %309 = vmatpush3.bf16.msra.mxu0 %v352_v6  ;;  %344 = vmatpush3.bf16.msra.mxu1 %v352_v6 }
  0x14   :  { %310 = vmatprep.subr.bf16.mxu0 %v353_v7  ;;  %337 = vmatprep.subr.bf16.mxu1 %v353_v7 }
  0x17   :  { %311 = vmatpush3.bf16.msra.mxu0 %v353_v7  ;;  %345 = vmatpush3.bf16.msra.mxu1 %v353_v7 }
  0x18   :  { %312 = vmatprep.subr.bf16.mxu0 %v354_v8  ;;  %338 = vmatprep.subr.bf16.mxu1 %v354_v8 }
  0x1b   :  { %313 = vmatpush3.bf16.msra.mxu0 %v354_v8  ;;  %346 = vmatpush3.bf16.msra.mxu1 %v354_v8 }
  0x1c   :  { %314 = vmatprep.subr.bf16.mxu0 %v355_v9  ;;  %339 = vmatprep.subr.bf16.mxu1 %v355_v9 }
  0x1f   :  { %315 = vmatpush3.bf16.msra.mxu0 %v355_v9  ;;  %347 = vmatpush3.bf16.msra.mxu1 %v355_v9 }
  0x22   :  { %317 = vmatmul.mubr.bf16.vlgmr.msra.gmra.mrb[0].mxu0 %v358_v10  ;;  %325 = vmatmul.mubr.bf16.vlgmr.msra.gmra.mrb[0].mxu1 %v359_v11 }
  0x23   :  { %320 = vmatprep.mubr.bf16.mxu0 %v360_v12  ;;  %328 = vmatprep.mubr.bf16.mxu1 %v361_v13 }
  0x2a   :  { %321 = vmatmul.mubr.bf16.gmra.mrb[4].mxu0 %v362_v14  ;;  %329 = vmatmul.mubr.bf16.gmra.mrb[4].mxu1 %v363_v15 }
  0xf5   :  { %v318_v17 = vpop.f32.mrb[0].mxu0  ;;  %v326_v18 = vpop.f32.mrb[0].mxu1 }
  0xf6   :  { %v193_v19 = vadd.f32 %v318_v17, %v267_v16  ;;  %v225_v20 = vadd.f32 %v326_v18, %v267_v16  ;;  %v184_v21 = vpop.f32.mrb[1].mxu0  ;;  %v216_v22 = vpop.f32.mrb[1].mxu1 }
  0xf7   :  { %v185_v23 = vadd.f32 %v267_v16, %v184_v21  ;;  %v217_v24 = vadd.f32 %v267_v16, %v216_v22  ;;  %v319_v25 = vpop.f32.mrb[2].mxu0  ;;  %v327_v26 = vpop.f32.mrb[2].mxu1 }
  0xf8   :  { %249 = vst [vmem:[%s486_s3 + $0x10] sm:$0xff] %v193_v19  ;;  %257 = vst [vmem:[%s486_s3 + $0x50] sm:$0xff] %v225_v20  ;;  %v196_v27 = vadd.f32 %v319_v25, %v267_v16  ;;  %v228_v28 = vadd.f32 %v327_v26, %v267_v16  ;;  %v187_v29 = vpop.f32.mrb[3].mxu0  ;;  %v219_v30 = vpop.f32.mrb[3].mxu1 }
  0xf9   :  { %247 = vst [vmem:[%s486_s3] sm:$0xff] %v185_v23  ;;  %255 = vst [vmem:[%s486_s3 + $0x40] sm:$0xff] %v217_v24  ;;  %v188_v31 = vadd.f32 %v267_v16, %v187_v29  ;;  %v220_v32 = vadd.f32 %v267_v16, %v219_v30 }
  0xfa   :  { %250 = vst [vmem:[%s486_s3 + $0x18] sm:$0xff] %v196_v27  ;;  %258 = vst [vmem:[%s486_s3 + $0x58] sm:$0xff] %v228_v28 }
  0xfb   :  { %248 = vst [vmem:[%s486_s3 + $0x8] sm:$0xff] %v188_v31  ;;  %256 = vst [vmem:[%s486_s3 + $0x48] sm:$0xff] %v220_v32 }
  0xfd   :  { %v322_v33 = vpop.f32.mrb[4].mxu0  ;;  %v330_v34 = vpop.f32.mrb[4].mxu1 }
  0xfe   :  { %v209_v35 = vadd.f32 %v322_v33, %v267_v16  ;;  %v241_v36 = vadd.f32 %v330_v34, %v267_v16  ;;  %v200_v37 = vpop.f32.mrb[5].mxu0  ;;  %v232_v38 = vpop.f32.mrb[5].mxu1 }
  0xff   :  { %v201_v39 = vadd.f32 %v267_v16, %v200_v37  ;;  %v233_v40 = vadd.f32 %v267_v16, %v232_v38  ;;  %v323_v41 = vpop.f32.mrb[6].mxu0  ;;  %v331_v42 = vpop.f32.mrb[6].mxu1 }
 0x100   :  { %253 = vst [vmem:[%s486_s3 + $0x30] sm:$0xff] %v209_v35  ;;  %261 = vst [vmem:[%s486_s3 + $0x70] sm:$0xff] %v241_v36  ;;  %v212_v43 = vadd.f32 %v323_v41, %v267_v16  ;;  %v244_v44 = vadd.f32 %v331_v42, %v267_v16  ;;  %v203_v45 = vpop.f32.mrb[7].mxu0  ;;  %v235_v46 = vpop.f32.mrb[7].mxu1 }
 0x101   :  { %251 = vst [vmem:[%s486_s3 + $0x20] sm:$0xff] %v201_v39  ;;  %259 = vst [vmem:[%s486_s3 + $0x60] sm:$0xff] %v233_v40  ;;  %v204_v47 = vadd.f32 %v267_v16, %v203_v45  ;;  %v236_v48 = vadd.f32 %v267_v16, %v235_v46 }
 0x102   :  { %254 = vst [vmem:[%s486_s3 + $0x38] sm:$0xff] %v212_v43  ;;  %262 = vst [vmem:[%s486_s3 + $0x78] sm:$0xff] %v244_v44 }
 0x103   :  { %252 = vst [vmem:[%s486_s3 + $0x28] sm:$0xff] %v204_v47  ;;  %260 = vst [vmem:[%s486_s3 + $0x68] sm:$0xff] %v236_v48 }

// kernel: up_forward.7
= control target key start
LH: loop header
LB: loop body
LE: loop exit
PB: predicated region body
PF: predicated region fallthrough
CT: control target
= control target key end

     0   :  { %s1188_s12 = smov 0   ;;  %s1447_s0 = inlined_call_operand.vmem [shape: f32[1024,128], index: 0, kind: input, shape index: {}]   ;;  %s1448_s1 = inlined_call_operand.vmem [shape: f32[1,128], index: 1, kind: input, shape index: {}]   ;;  %s1449_s2 = inlined_call_operand.vmem [shape: f32[1,128], index: 2, kind: input, shape index: {}]   ;;  %s1450_s3 = inlined_call_operand.vmem [shape: bf16[1024,128], index: 3, kind: output, shape index: {}]  }
   0x1 LB: > { %s820_s13 = sadd.s32 4294967295, %s1166_s12   ;;  %p824_p0 = scmp.ge.s32.totalorder %s1166_s12, 1  ;;  %s1166_s12 = sphi %s1188_s12, %s13_s12  }
   0x2   : > { %p138_p1 = scmp.lt.s32.totalorder %s1166_s12, 3 }
   0x4   : > { %p139_p2 = pnand %p824_p0, %p138_p1 }
   0x5   : > { %s825_s14 = sshll.u32 (!%p139_p2), %s820_s13, 6  ;;  %v1202_v0 = vld [vmem:[%s1448_s1] ss:$0 sm:$0xff] (!%p139_p2) }
   0x6   : > { %142 = sbr.rel (%p139_p2) target bundleno = 79 (0x4f), region = 32  ;;  %p163_p3 = scmp.lt.s32.totalorder (!%p139_p2), %s825_s14, 127  ;;  %v1212_v1 = vld [vmem:[%s1449_s2] ss:$0 sm:$0xff] (!%p139_p2) }
   0xd   : > { %s1452_s14 = smov (!%p163_p3, %s825_s14), 127 }
   0xe   : > { %s826_s15 = sshll.u32 %s1452_s14, 3  ;;  %s828_s23 = sshll.u32 %s1452_s14, 2 }
   0xf   : > { %s1207_s20 = scalar_lea.vmem %s1447_s0, %s826_s15  ;;  %s1244_s26 = scalar_lea.vmem %s1450_s3, %s828_s23 }
  0x10   : > { %v174_v2 = vld [vmem:[%s1207_s20] sm:$0xff]  ;;  %v175_v3 = vld [vmem:[%s1207_s20 + $0x8] sm:$0xff]  ;;  %v176_v4 = vld [vmem:[%s1207_s20 + $0x10] sm:$0xff] }
  0x11   : > { %v245_v5 = vmul.f32 %v1202_v0, %v174_v2  ;;  %v246_v6 = vmul.f32 %v1202_v0, %v175_v3  ;;  %v177_v7 = vld [vmem:[%s1207_s20 + $0x18] sm:$0xff]  ;;  %v247_v8 = vmul.f32 %v1202_v0, %v176_v4  ;;  %v178_v9 = vld [vmem:[%s1207_s20 + $0x20] sm:$0xff]  ;;  %v179_v10 = vld [vmem:[%s1207_s20 + $0x28] sm:$0xff] }
  0x12   : > { %v248_v11 = vmul.f32 %v1202_v0, %v177_v7  ;;  %v249_v12 = vmul.f32 %v1202_v0, %v178_v9  ;;  %v250_v13 = vmul.f32 %v1202_v0, %v179_v10  ;;  %v180_v14 = vld [vmem:[%s1207_s20 + $0x30] sm:$0xff]  ;;  %v181_v15 = vld [vmem:[%s1207_s20 + $0x38] sm:$0xff]  ;;  %v182_v24 = vld [vmem:[%s1207_s20 + $0x40] sm:$0xff] }
  0x13   : > { %v316_v16 = vadd.f32 %v1212_v1, %v245_v5  ;;  %v317_v17 = vadd.f32 %v1212_v1, %v246_v6  ;;  %v318_v18 = vadd.f32 %v1212_v1, %v247_v8  ;;  %v251_v19 = vmul.f32 %v1202_v0, %v180_v14  ;;  %v183_v25 = vld [vmem:[%s1207_s20 + $0x48] sm:$0xff]  ;;  %v184_v30 = vld [vmem:[%s1207_s20 + $0x50] sm:$0xff]  ;;  %v185_v35 = vld [vmem:[%s1207_s20 + $0x58] sm:$0xff] }
  0x14   : > { %v319_v20 = vadd.f32 %v1212_v1, %v248_v11  ;;  %v320_v21 = vadd.f32 %v1212_v1, %v249_v12  ;;  %v321_v22 = vadd.f32 %v1212_v1, %v250_v13  ;;  %v252_v23 = vmul.f32 %v1202_v0, %v181_v15  ;;  %v186_v36 = vld [vmem:[%s1207_s20 + $0x60] sm:$0xff]  ;;  %v187_v41 = vld [vmem:[%s1207_s20 + $0x68] sm:$0xff]  ;;  %v188_v42 = vld [vmem:[%s1207_s20 + $0x70] sm:$0xff] }
  0x15   : > { %v380_v26 = vmax.f32 %v316_v16, 0.0  ;;  %v381_v27 = vmax.f32 %v317_v17, 0.0  ;;  %v382_v28 = vmax.f32 %v318_v18, 0.0  ;;  %v322_v29 = vadd.f32 %v1212_v1, %v251_v19  ;;  %v189_v51 = vld [vmem:[%s1207_s20 + $0x78] sm:$0xff]  ;;  %v190_v56 = vld [vmem:[%s1207_s20 + $0x80] sm:$0xff]  ;;  %v191_v61 = vld [vmem:[%s1207_s20 + $0x88] sm:$0xff] }
  0x16   : > { %v383_v31 = vmax.f32 %v319_v20, 0.0  ;;  %v384_v32 = vmax.f32 %v320_v21, 0.0  ;;  %v385_v33 = vmax.f32 %v321_v22, 0.0  ;;  %v323_v34 = vadd.f32 %v1212_v1, %v252_v23  ;;  %v192_v4 = vld [vmem:[%s1207_s20 + $0x90] sm:$0xff]  ;;  %v193_v5 = vld [vmem:[%s1207_s20 + $0x98] sm:$0xff]  ;;  %v194_v10 = vld [vmem:[%s1207_s20 + $0xa0] sm:$0xff] }
  0x17   : > { %v964_v37 = vpack.c.bf16 %v381_v27, %v380_v26  ;;  %v386_v38 = vmax.f32 %v322_v29, 0.0  ;;  %v253_v39 = vmul.f32 %v1202_v0, %v182_v24  ;;  %v254_v40 = vmul.f32 %v1202_v0, %v183_v25  ;;  %v195_v15 = vld [vmem:[%s1207_s20 + $0xa8] sm:$0xff]  ;;  %v196_v20 = vld [vmem:[%s1207_s20 + $0xb0] sm:$0xff]  ;;  %v197_v25 = vld [vmem:[%s1207_s20 + $0xb8] sm:$0xff] }
  0x18   : > { %v969_v43 = vpack.c.bf16 %v383_v31, %v382_v28  ;;  %v974_v44 = vpack.c.bf16 %v385_v33, %v384_v32  ;;  %v387_v45 = vmax.f32 %v323_v34, 0.0  ;;  %v255_v46 = vmul.f32 %v1202_v0, %v184_v30  ;;  %v198_v30 = vld [vmem:[%s1207_s20 + $0xc0] sm:$0xff] }
  0x19   : > { %965 = vst [vmem:[%s1244_s26] sm:$0xff] %v964_v37   ;;  %v324_v47 = vadd.f32 %v1212_v1, %v253_v39  ;;  %v325_v48 = vadd.f32 %v1212_v1, %v254_v40  ;;  %v256_v49 = vmul.f32 %v1202_v0, %v185_v35  ;;  %v257_v50 = vmul.f32 %v1202_v0, %v186_v36  ;;  %v199_v35 = vld [vmem:[%s1207_s20 + $0xc8] sm:$0xff]  ;;  %v200_v40 = vld [vmem:[%s1207_s20 + $0xd0] sm:$0xff] }
  0x1a   : > { %1121 = vst [vmem:[%s1244_s26 + $0x8] sm:$0xff] %v969_v43   ;;  %1122 = vst [vmem:[%s1244_s26 + $0x10] sm:$0xff] %v974_v44   ;;  %v979_v52 = vpack.c.bf16 %v387_v45, %v386_v38  ;;  %v326_v53 = vadd.f32 %v1212_v1, %v255_v46  ;;  %v258_v54 = vmul.f32 %v1202_v0, %v187_v41  ;;  %v201_v41 = vld [vmem:[%s1207_s20 + $0xd8] sm:$0xff]  ;;  %v202_v46 = vld [vmem:[%s1207_s20 + $0xe0] sm:$0xff] }
  0x1b   : > { %v259_v55 = vmul.f32 %v1202_v0, %v188_v42  ;;  %v388_v57 = vmax.f32 %v324_v47, 0.0  ;;  %v389_v58 = vmax.f32 %v325_v48, 0.0  ;;  %v327_v59 = vadd.f32 %v1212_v1, %v256_v49 }
  0x1c   : > { %v328_v60 = vadd.f32 %v1212_v1, %v257_v50  ;;  %1123 = vst [vmem:[%s1244_s26 + $0x18] sm:$0xff] %v979_v52   ;;  %v390_v62 = vmax.f32 %v326_v53, 0.0  ;;  %v329_v63 = vadd.f32 %v1212_v1, %v258_v54  ;;  %v260_v2 = vmul.f32 %v1202_v0, %v189_v51  ;;  %v203_v51 = vld [vmem:[%s1207_s20 + $0xe8] sm:$0xff] }
  0x1d   : > { %v330_v3 = vadd.f32 %v1212_v1, %v259_v55  ;;  %v984_v6 = vpack.c.bf16 %v389_v58, %v388_v57  ;;  %v391_v7 = vmax.f32 %v327_v59, 0.0  ;;  %v261_v9 = vmul.f32 %v1202_v0, %v190_v56  ;;  %v204_v56 = vld [vmem:[%s1207_s20 + $0xf0] sm:$0xff] }
  0x1e   : > { %v392_v8 = vmax.f32 %v328_v60, 0.0  ;;  %v393_v11 = vmax.f32 %v329_v63, 0.0  ;;  %v331_v12 = vadd.f32 %v1212_v1, %v260_v2  ;;  %v262_v14 = vmul.f32 %v1202_v0, %v191_v61  ;;  %v205_v61 = vld [vmem:[%s1207_s20 + $0xf8] sm:$0xff] }
  0x1f   : > { %v394_v13 = vmax.f32 %v330_v3, 0.0  ;;  %1124 = vst [vmem:[%s1244_s26 + $0x20] sm:$0xff] %v984_v6   ;;  %v989_v16 = vpack.c.bf16 %v391_v7, %v390_v62  ;;  %v332_v17 = vadd.f32 %v1212_v1, %v261_v9  ;;  %v263_v18 = vmul.f32 %v1202_v0, %v192_v4  ;;  %v206_v4 = vld [vmem:[%s1207_s20 + $0x100] sm:$0xff]  ;;  %v207_v9 = vld [vmem:[%s1207_s20 + $0x108] sm:$0xff] }
  0x20   : > { %v264_v19 = vmul.f32 %v1202_v0, %v193_v5  ;;  %v994_v21 = vpack.c.bf16 %v393_v11, %v392_v8  ;;  %v395_v22 = vmax.f32 %v331_v12, 0.0  ;;  %v333_v23 = vadd.f32 %v1212_v1, %v262_v14  ;;  %v208_v14 = vld [vmem:[%s1207_s20 + $0x110] sm:$0xff] }
  0x21   : > { %v265_v24 = vmul.f32 %v1202_v0, %v194_v10  ;;  %1125 = vst [vmem:[%s1244_s26 + $0x28] sm:$0xff] %v989_v16   ;;  %v396_v26 = vmax.f32 %v332_v17, 0.0  ;;  %v334_v27 = vadd.f32 %v1212_v1, %v263_v18  ;;  %v266_v29 = vmul.f32 %v1202_v0, %v195_v15  ;;  %v209_v15 = vld [vmem:[%s1207_s20 + $0x118] sm:$0xff] }
  0x22   : > { %v335_v28 = vadd.f32 %v1212_v1, %v264_v19  ;;  %1126 = vst [vmem:[%s1244_s26 + $0x30] sm:$0xff] %v994_v21   ;;  %v999_v31 = vpack.c.bf16 %v395_v22, %v394_v13  ;;  %v397_v32 = vmax.f32 %v333_v23, 0.0  ;;  %v267_v34 = vmul.f32 %v1202_v0, %v196_v20  ;;  %v210_v20 = vld [vmem:[%s1207_s20 + $0x120] sm:$0xff] }
  0x23   : > { %v336_v33 = vadd.f32 %v1212_v1, %v265_v24  ;;  %v398_v36 = vmax.f32 %v334_v27, 0.0  ;;  %v337_v38 = vadd.f32 %v1212_v1, %v266_v29  ;;  %v268_v39 = vmul.f32 %v1202_v0, %v197_v25  ;;  %v211_v25 = vld [vmem:[%s1207_s20 + $0x128] sm:$0xff] }
  0x24   : > { %v399_v37 = vmax.f32 %v335_v28, 0.0  ;;  %1127 = vst [vmem:[%s1244_s26 + $0x38] sm:$0xff] %v999_v31   ;;  %v1004_v42 = vpack.c.bf16 %v397_v32, %v396_v26  ;;  %v338_v44 = vadd.f32 %v1212_v1, %v267_v34  ;;  %v269_v45 = vmul.f32 %v1202_v0, %v198_v30  ;;  %v212_v30 = vld [vmem:[%s1207_s20 + $0x130] sm:$0xff] }
  0x25   : > { %v400_v43 = vmax.f32 %v336_v33, 0.0  ;;  %v401_v48 = vmax.f32 %v337_v38, 0.0  ;;  %v339_v49 = vadd.f32 %v1212_v1, %v268_v39  ;;  %v270_v50 = vmul.f32 %v1202_v0, %v199_v35  ;;  %v213_v35 = vld [vmem:[%s1207_s20 + $0x138] sm:$0xff] }
  0x26   : > { %v1009_v47 = vpack.c.bf16 %v399_v37, %v398_v36  ;;  %1128 = vst [vmem:[%s1244_s26 + $0x40] sm:$0xff] %v1004_v42   ;;  %v402_v52 = vmax.f32 %v338_v44, 0.0  ;;  %v340_v53 = vadd.f32 %v1212_v1, %v269_v45  ;;  %v271_v54 = vmul.f32 %v1202_v0, %v200_v40  ;;  %v214_v40 = vld [vmem:[%s1207_s20 + $0x140] sm:$0xff]  ;;  %v215_v45 = vld [vmem:[%s1207_s20 + $0x148] sm:$0xff] }
  0x27   : > { %v272_v55 = vmul.f32 %v1202_v0, %v201_v41  ;;  %v1014_v57 = vpack.c.bf16 %v401_v48, %v400_v43  ;;  %v403_v58 = vmax.f32 %v339_v49, 0.0  ;;  %v341_v59 = vadd.f32 %v1212_v1, %v270_v50  ;;  %v216_v50 = vld [vmem:[%s1207_s20 + $0x150] sm:$0xff] }
  0x28   : > { %1129 = vst [vmem:[%s1244_s26 + $0x48] sm:$0xff] %v1009_v47   ;;  %v273_v60 = vmul.f32 %v1202_v0, %v202_v46  ;;  %v404_v62 = vmax.f32 %v340_v53, 0.0  ;;  %v342_v63 = vadd.f32 %v1212_v1, %v271_v54  ;;  %v274_v3 = vmul.f32 %v1202_v0, %v203_v51  ;;  %v217_v51 = vld [vmem:[%s1207_s20 + $0x158] sm:$0xff] }
  0x29   : > { %v343_v2 = vadd.f32 %v1212_v1, %v272_v55  ;;  %1130 = vst [vmem:[%s1244_s26 + $0x50] sm:$0xff] %v1014_v57   ;;  %v1019_v5 = vpack.c.bf16 %v403_v58, %v402_v52  ;;  %v405_v6 = vmax.f32 %v341_v59, 0.0  ;;  %v275_v8 = vmul.f32 %v1202_v0, %v204_v56  ;;  %v218_v56 = vld [vmem:[%s1207_s20 + $0x160] sm:$0xff] }
  0x2a   : > { %v344_v7 = vadd.f32 %v1212_v1, %v273_v60  ;;  %v406_v10 = vmax.f32 %v342_v63, 0.0  ;;  %v345_v12 = vadd.f32 %v1212_v1, %v274_v3  ;;  %v276_v13 = vmul.f32 %v1202_v0, %v205_v61  ;;  %v219_v61 = vld [vmem:[%s1207_s20 + $0x168] sm:$0xff] }
  0x2b   : > { %v407_v11 = vmax.f32 %v343_v2, 0.0  ;;  %1131 = vst [vmem:[%s1244_s26 + $0x58] sm:$0xff] %v1019_v5   ;;  %v1024_v16 = vpack.c.bf16 %v405_v6, %v404_v62  ;;  %v346_v18 = vadd.f32 %v1212_v1, %v275_v8  ;;  %v277_v19 = vmul.f32 %v1202_v0, %v206_v4  ;;  %v220_v4 = vld [vmem:[%s1207_s20 + $0x170] sm:$0xff] }
  0x2c   : > { %v408_v17 = vmax.f32 %v344_v7, 0.0  ;;  %v409_v22 = vmax.f32 %v345_v12, 0.0  ;;  %v347_v23 = vadd.f32 %v1212_v1, %v276_v13  ;;  %v278_v24 = vmul.f32 %v1202_v0, %v207_v9  ;;  %v221_v9 = vld [vmem:[%s1207_s20 + $0x178] sm:$0xff] }
  0x2d   : > { %v1029_v21 = vpack.c.bf16 %v407_v11, %v406_v10  ;;  %1132 = vst [vmem:[%s1244_s26 + $0x60] sm:$0xff] %v1024_v16   ;;  %v410_v26 = vmax.f32 %v346_v18, 0.0  ;;  %v348_v27 = vadd.f32 %v1212_v1, %v277_v19  ;;  %v279_v28 = vmul.f32 %v1202_v0, %v208_v14  ;;  %v222_v14 = vld [vmem:[%s1207_s20 + $0x180] sm:$0xff]  ;;  %v223_v19 = vld [vmem:[%s1207_s20 + $0x188] sm:$0xff] }
  0x2e   : > { %v280_v29 = vmul.f32 %v1202_v0, %v209_v15  ;;  %v1034_v31 = vpack.c.bf16 %v409_v22, %v408_v17  ;;  %v411_v32 = vmax.f32 %v347_v23, 0.0  ;;  %v349_v33 = vadd.f32 %v1212_v1, %v278_v24  ;;  %v224_v24 = vld [vmem:[%s1207_s20 + $0x190] sm:$0xff] }
  0x2f   : > { %1133 = vst [vmem:[%s1244_s26 + $0x68] sm:$0xff] %v1029_v21   ;;  %v281_v34 = vmul.f32 %v1202_v0, %v210_v20  ;;  %v412_v36 = vmax.f32 %v348_v27, 0.0  ;;  %v350_v37 = vadd.f32 %v1212_v1, %v279_v28  ;;  %v282_v39 = vmul.f32 %v1202_v0, %v211_v25  ;;  %v225_v25 = vld [vmem:[%s1207_s20 + $0x198] sm:$0xff] }
  0x30   : > { %v351_v38 = vadd.f32 %v1212_v1, %v280_v29  ;;  %1134 = vst [vmem:[%s1244_s26 + $0x70] sm:$0xff] %v1034_v31   ;;  %v1039_v41 = vpack.c.bf16 %v411_v32, %v410_v26  ;;  %v413_v42 = vmax.f32 %v349_v33, 0.0  ;;  %v283_v44 = vmul.f32 %v1202_v0, %v212_v30  ;;  %v226_v30 = vld [vmem:[%s1207_s20 + $0x1a0] sm:$0xff] }
  0x31   : > { %v352_v43 = vadd.f32 %v1212_v1, %v281_v34  ;;  %v414_v46 = vmax.f32 %v350_v37, 0.0  ;;  %v353_v48 = vadd.f32 %v1212_v1, %v282_v39  ;;  %v284_v49 = vmul.f32 %v1202_v0, %v213_v35  ;;  %v227_v35 = vld [vmem:[%s1207_s20 + $0x1a8] sm:$0xff] }
  0x32   : > { %v415_v47 = vmax.f32 %v351_v38, 0.0  ;;  %1135 = vst [vmem:[%s1244_s26 + $0x78] sm:$0xff] %v1039_v41   ;;  %v1044_v52 = vpack.c.bf16 %v413_v42, %v412_v36  ;;  %v354_v54 = vadd.f32 %v1212_v1, %v283_v44  ;;  %v285_v55 = vmul.f32 %v1202_v0, %v214_v40  ;;  %v228_v40 = vld [vmem:[%s1207_s20 + $0x1b0] sm:$0xff] }
  0x33   : > { %v416_v53 = vmax.f32 %v352_v43, 0.0  ;;  %v417_v58 = vmax.f32 %v353_v48, 0.0  ;;  %v355_v59 = vadd.f32 %v1212_v1, %v284_v49  ;;  %v286_v60 = vmul.f32 %v1202_v0, %v215_v45  ;;  %v229_v45 = vld [vmem:[%s1207_s20 + $0x1b8] sm:$0xff] }
  0x34   : > { %v1049_v57 = vpack.c.bf16 %v415_v47, %v414_v46  ;;  %1136 = vst [vmem:[%s1244_s26 + $0x80] sm:$0xff] %v1044_v52   ;;  %v418_v62 = vmax.f32 %v354_v54, 0.0  ;;  %v356_v63 = vadd.f32 %v1212_v1, %v285_v55  ;;  %v287_v2 = vmul.f32 %v1202_v0, %v216_v50  ;;  %v230_v50 = vld [vmem:[%s1207_s20 + $0x1c0] sm:$0xff]  ;;  %v231_v55 = vld [vmem:[%s1207_s20 + $0x1c8] sm:$0xff] }
  0x35   : > { %v288_v3 = vmul.f32 %v1202_v0, %v217_v51  ;;  %v1054_v5 = vpack.c.bf16 %v417_v58, %v416_v53  ;;  %v419_v6 = vmax.f32 %v355_v59, 0.0  ;;  %v357_v7 = vadd.f32 %v1212_v1, %v286_v60  ;;  %v232_v60 = vld [vmem:[%s1207_s20 + $0x1d0] sm:$0xff] }
  0x36   : > { %1137 = vst [vmem:[%s1244_s26 + $0x88] sm:$0xff] %v1049_v57   ;;  %v289_v8 = vmul.f32 %v1202_v0, %v218_v56  ;;  %v420_v10 = vmax.f32 %v356_v63, 0.0  ;;  %v358_v11 = vadd.f32 %v1212_v1, %v287_v2  ;;  %v290_v13 = vmul.f32 %v1202_v0, %v219_v61  ;;  %v233_v61 = vld [vmem:[%s1207_s20 + $0x1d8] sm:$0xff] }
  0x37   : > { %v359_v12 = vadd.f32 %v1212_v1, %v288_v3  ;;  %1138 = vst [vmem:[%s1244_s26 + $0x90] sm:$0xff] %v1054_v5   ;;  %v1059_v15 = vpack.c.bf16 %v419_v6, %v418_v62  ;;  %v421_v16 = vmax.f32 %v357_v7, 0.0  ;;  %v291_v18 = vmul.f32 %v1202_v0, %v220_v4  ;;  %v234_v4 = vld [vmem:[%s1207_s20 + $0x1e0] sm:$0xff] }
  0x38   : > { %v360_v17 = vadd.f32 %v1212_v1, %v289_v8  ;;  %v422_v20 = vmax.f32 %v358_v11, 0.0  ;;  %v361_v22 = vadd.f32 %v1212_v1, %v290_v13  ;;  %v292_v23 = vmul.f32 %v1202_v0, %v221_v9  ;;  %v235_v9 = vld [vmem:[%s1207_s20 + $0x1e8] sm:$0xff] }
  0x39   : > { %v423_v21 = vmax.f32 %v359_v12, 0.0  ;;  %1139 = vst [vmem:[%s1244_s26 + $0x98] sm:$0xff] %v1059_v15   ;;  %v1064_v26 = vpack.c.bf16 %v421_v16, %v420_v10  ;;  %v362_v28 = vadd.f32 %v1212_v1, %v291_v18  ;;  %v293_v29 = vmul.f32 %v1202_v0, %v222_v14  ;;  %v236_v14 = vld [vmem:[%s1207_s20 + $0x1f0] sm:$0xff] }
  0x3a   : > { %v424_v27 = vmax.f32 %v360_v17, 0.0  ;;  %v425_v32 = vmax.f32 %v361_v22, 0.0  ;;  %v363_v33 = vadd.f32 %v1212_v1, %v292_v23  ;;  %v294_v34 = vmul.f32 %v1202_v0, %v223_v19  ;;  %v237_v19 = vld [vmem:[%s1207_s20 + $0x1f8] sm:$0xff] }
  0x3b   : > { %v1069_v31 = vpack.c.bf16 %v423_v21, %v422_v20  ;;  %1140 = vst [vmem:[%s1244_s26 + $0xa0] sm:$0xff] %v1064_v26   ;;  %v426_v36 = vmax.f32 %v362_v28, 0.0  ;;  %v364_v37 = vadd.f32 %v1212_v1, %v293_v29  ;;  %v295_v38 = vmul.f32 %v1202_v0, %v224_v24 }
  0x3c   : > { %v296_v39 = vmul.f32 %v1202_v0, %v225_v25  ;;  %v1074_v41 = vpack.c.bf16 %v425_v32, %v424_v27  ;;  %v427_v42 = vmax.f32 %v363_v33, 0.0  ;;  %v365_v43 = vadd.f32 %v1212_v1, %v294_v34 }
  0x3d   : > { %1141 = vst [vmem:[%s1244_s26 + $0xa8] sm:$0xff] %v1069_v31   ;;  %v297_v44 = vmul.f32 %v1202_v0, %v226_v30  ;;  %v428_v46 = vmax.f32 %v364_v37, 0.0  ;;  %v366_v47 = vadd.f32 %v1212_v1, %v295_v38  ;;  %v298_v49 = vmul.f32 %v1202_v0, %v227_v35 }
  0x3e   : > { %v367_v48 = vadd.f32 %v1212_v1, %v296_v39  ;;  %1142 = vst [vmem:[%s1244_s26 + $0xb0] sm:$0xff] %v1074_v41   ;;  %v1079_v51 = vpack.c.bf16 %v427_v42, %v426_v36  ;;  %v429_v52 = vmax.f32 %v365_v43, 0.0  ;;  %v299_v54 = vmul.f32 %v1202_v0, %v228_v40 }
  0x3f   : > { %v368_v53 = vadd.f32 %v1212_v1, %v297_v44  ;;  %v430_v56 = vmax.f32 %v366_v47, 0.0  ;;  %v369_v58 = vadd.f32 %v1212_v1, %v298_v49  ;;  %v300_v59 = vmul.f32 %v1202_v0, %v229_v45 }
  0x40   : > { %v431_v57 = vmax.f32 %v367_v48, 0.0  ;;  %1143 = vst [vmem:[%s1244_s26 + $0xb8] sm:$0xff] %v1079_v51   ;;  %v1084_v62 = vpack.c.bf16 %v429_v52, %v428_v46  ;;  %v370_v2 = vadd.f32 %v1212_v1, %v299_v54  ;;  %v301_v3 = vmul.f32 %v1202_v0, %v230_v50 }
  0x41   : > { %v432_v63 = vmax.f32 %v368_v53, 0.0  ;;  %v433_v6 = vmax.f32 %v369_v58, 0.0  ;;  %v371_v7 = vadd.f32 %v1212_v1, %v300_v59  ;;  %v302_v8 = vmul.f32 %v1202_v0, %v231_v55 }
  0x42   : > { %v1089_v5 = vpack.c.bf16 %v431_v57, %v430_v56  ;;  %1144 = vst [vmem:[%s1244_s26 + $0xc0] sm:$0xff] %v1084_v62   ;;  %v434_v10 = vmax.f32 %v370_v2, 0.0  ;;  %v372_v11 = vadd.f32 %v1212_v1, %v301_v3  ;;  %v303_v12 = vmul.f32 %v1202_v0, %v232_v60 }
  0x43   : > { %v304_v13 = vmul.f32 %v1202_v0, %v233_v61  ;;  %v1094_v15 = vpack.c.bf16 %v433_v6, %v432_v63  ;;  %v435_v16 = vmax.f32 %v371_v7, 0.0  ;;  %v373_v17 = vadd.f32 %v1212_v1, %v302_v8 }
  0x44   : > { %1145 = vst [vmem:[%s1244_s26 + $0xc8] sm:$0xff] %v1089_v5   ;;  %v305_v18 = vmul.f32 %v1202_v0, %v234_v4  ;;  %v436_v20 = vmax.f32 %v372_v11, 0.0  ;;  %v374_v21 = vadd.f32 %v1212_v1, %v303_v12  ;;  %v306_v23 = vmul.f32 %v1202_v0, %v235_v9 }
  0x45   : > { %v375_v22 = vadd.f32 %v1212_v1, %v304_v13  ;;  %1146 = vst [vmem:[%s1244_s26 + $0xd0] sm:$0xff] %v1094_v15   ;;  %v1099_v24 = vpack.c.bf16 %v435_v16, %v434_v10  ;;  %v437_v25 = vmax.f32 %v373_v17, 0.0  ;;  %v307_v27 = vmul.f32 %v1202_v0, %v236_v14 }
  0x46   : > { %v376_v26 = vadd.f32 %v1212_v1, %v305_v18  ;;  %v438_v28 = vmax.f32 %v374_v21, 0.0  ;;  %v377_v30 = vadd.f32 %v1212_v1, %v306_v23  ;;  %v308_v31 = vmul.f32 %v1202_v0, %v237_v19 }
  0x47   : > { %v439_v29 = vmax.f32 %v375_v22, 0.0  ;;  %1147 = vst [vmem:[%s1244_s26 + $0xd8] sm:$0xff] %v1099_v24   ;;  %v1104_v32 = vpack.c.bf16 %v437_v25, %v436_v20  ;;  %v378_v34 = vadd.f32 %v1212_v1, %v307_v27 }
  0x48   : > { %v440_v33 = vmax.f32 %v376_v26, 0.0  ;;  %v441_v36 = vmax.f32 %v377_v30, 0.0  ;;  %v379_v37 = vadd.f32 %v1212_v1, %v308_v31 }
  0x49   : > { %v1109_v35 = vpack.c.bf16 %v439_v29, %v438_v28  ;;  %1148 = vst [vmem:[%s1244_s26 + $0xe0] sm:$0xff] %v1104_v32   ;;  %v442_v38 = vmax.f32 %v378_v34, 0.0 }
  0x4a   : > { %v1114_v39 = vpack.c.bf16 %v441_v36, %v440_v33  ;;  %v443_v40 = vmax.f32 %v379_v37, 0.0 }
  0x4b   : > { %1149 = vst [vmem:[%s1244_s26 + $0xe8] sm:$0xff] %v1109_v35  }
  0x4c   : > { %1150 = vst [vmem:[%s1244_s26 + $0xf0] sm:$0xff] %v1114_v39   ;;  %v1119_v41 = vpack.c.bf16 %v443_v40, %v442_v38 }
  0x4e   : > { %1151 = vst [vmem:[%s1244_s26 + $0xf8] sm:$0xff] %v1119_v41  }
  0x4f PF: > { %s13_s12 = sadd.s32 1, %s1166_s12  }
  0x50   : > { %p10_p4 = scmp.ge.s32.totalorder %s13_s12, 4  }
  0x52   :  { %12 = sbr.rel (!%p10_p4) target bundleno = 1 (0x1), region = 62 }

// kernel: up_forward.9
= control target key start
LH: loop header
LB: loop body
LE: loop exit
PB: predicated region body
PF: predicated region fallthrough
CT: control target
= control target key end

     0   :  { %s613_s12 = smov 0   ;;  %s900_s0 = inlined_call_operand.vmem [shape: f32[1024,128], index: 0, kind: input, shape index: {}]   ;;  %s901_s1 = inlined_call_operand.vmem [shape: f32[1,128], index: 1, kind: input, shape index: {}]   ;;  %s902_s2 = inlined_call_operand.vmem [shape: f32[1,128], index: 2, kind: input, shape index: {}]   ;;  %s903_s3 = inlined_call_operand.vmem [shape: f32[1024,128], index: 3, kind: output, shape index: {}]  }
   0x1 LB: > { %s564_s13 = sadd.s32 4294967295, %s591_s12   ;;  %p568_p0 = scmp.ge.s32.totalorder %s591_s12, 1  ;;  %s591_s12 = sphi %s613_s12, %s13_s12  }
   0x2   : > { %p138_p1 = scmp.lt.s32.totalorder %s591_s12, 3 }
   0x4   : > { %p139_p2 = pnand %p568_p0, %p138_p1 }
   0x5   : > { %s569_s14 = sshll.u32 (!%p139_p2), %s564_s13, 6  ;;  %v624_v0 = vld [vmem:[%s901_s1] ss:$0 sm:$0xff] (!%p139_p2) }
   0x6   : > { %142 = sbr.rel (%p139_p2) target bundleno = 70 (0x46), region = 32  ;;  %p163_p3 = scmp.lt.s32.totalorder (!%p139_p2), %s569_s14, 127  ;;  %v634_v1 = vld [vmem:[%s902_s2] ss:$0 sm:$0xff] (!%p139_p2) }
   0xd   : > { %s905_s14 = smov (!%p163_p3, %s569_s14), 127 }
   0xe   : > { %s570_s15 = sshll.u32 %s905_s14, 3 }
   0xf   : > { %s629_s20 = scalar_lea.vmem %s900_s0, %s570_s15  ;;  %s657_s25 = scalar_lea.vmem %s903_s3, %s570_s15 }
  0x10   : > { %v174_v2 = vld [vmem:[%s629_s20] sm:$0xff]  ;;  %v175_v3 = vld [vmem:[%s629_s20 + $0x8] sm:$0xff]  ;;  %v176_v4 = vld [vmem:[%s629_s20 + $0x10] sm:$0xff] }
  0x11   : > { %v245_v5 = vmul.f32 %v624_v0, %v174_v2  ;;  %v246_v6 = vmul.f32 %v624_v0, %v175_v3  ;;  %v247_v7 = vmul.f32 %v624_v0, %v176_v4  ;;  %v177_v8 = vld [vmem:[%s629_s20 + $0x18] sm:$0xff]  ;;  %v178_v9 = vld [vmem:[%s629_s20 + $0x20] sm:$0xff]  ;;  %v179_v10 = vld [vmem:[%s629_s20 + $0x28] sm:$0xff] }
  0x12   : > { %v248_v11 = vmul.f32 %v624_v0, %v177_v8  ;;  %v249_v12 = vmul.f32 %v624_v0, %v178_v9  ;;  %v250_v13 = vmul.f32 %v624_v0, %v179_v10  ;;  %v180_v14 = vld [vmem:[%s629_s20 + $0x30] sm:$0xff]  ;;  %v181_v15 = vld [vmem:[%s629_s20 + $0x38] sm:$0xff]  ;;  %v182_v24 = vld [vmem:[%s629_s20 + $0x40] sm:$0xff] }
  0x13   : > { %v316_v16 = vadd.f32 %v634_v1, %v245_v5  ;;  %v317_v17 = vadd.f32 %v634_v1, %v246_v6  ;;  %v318_v18 = vadd.f32 %v634_v1, %v247_v7  ;;  %v251_v19 = vmul.f32 %v624_v0, %v180_v14  ;;  %v183_v25 = vld [vmem:[%s629_s20 + $0x48] sm:$0xff]  ;;  %v184_v26 = vld [vmem:[%s629_s20 + $0x50] sm:$0xff]  ;;  %v185_v31 = vld [vmem:[%s629_s20 + $0x58] sm:$0xff] }
  0x14   : > { %v319_v20 = vadd.f32 %v634_v1, %v248_v11  ;;  %v320_v21 = vadd.f32 %v634_v1, %v249_v12  ;;  %v321_v22 = vadd.f32 %v634_v1, %v250_v13  ;;  %v252_v23 = vmul.f32 %v624_v0, %v181_v15  ;;  %v186_v32 = vld [vmem:[%s629_s20 + $0x60] sm:$0xff]  ;;  %v187_v33 = vld [vmem:[%s629_s20 + $0x68] sm:$0xff]  ;;  %v188_v38 = vld [vmem:[%s629_s20 + $0x70] sm:$0xff] }
  0x15   : > { %v380_v27 = vmax.f32 %v316_v16, 0.0  ;;  %v381_v28 = vmax.f32 %v317_v17, 0.0  ;;  %v382_v29 = vmax.f32 %v318_v18, 0.0  ;;  %v322_v30 = vadd.f32 %v634_v1, %v251_v19  ;;  %v189_v43 = vld [vmem:[%s629_s20 + $0x78] sm:$0xff]  ;;  %v190_v56 = vld [vmem:[%s629_s20 + $0x80] sm:$0xff]  ;;  %v191_v57 = vld [vmem:[%s629_s20 + $0x88] sm:$0xff] }
  0x16   : > { %v383_v34 = vmax.f32 %v319_v20, 0.0  ;;  %v384_v35 = vmax.f32 %v320_v21, 0.0  ;;  %v385_v36 = vmax.f32 %v321_v22, 0.0  ;;  %v323_v37 = vadd.f32 %v634_v1, %v252_v23  ;;  %v192_v58 = vld [vmem:[%s629_s20 + $0x90] sm:$0xff]  ;;  %v193_v63 = vld [vmem:[%s629_s20 + $0x98] sm:$0xff]  ;;  %v194_v2 = vld [vmem:[%s629_s20 + $0xa0] sm:$0xff] }
  0x17   : > { %444 = vst [vmem:[%s657_s25] sm:$0xff] %v380_v27  ;;  %445 = vst [vmem:[%s657_s25 + $0x8] sm:$0xff] %v381_v28  ;;  %v386_v39 = vmax.f32 %v322_v30, 0.0  ;;  %v253_v40 = vmul.f32 %v624_v0, %v182_v24  ;;  %v254_v41 = vmul.f32 %v624_v0, %v183_v25  ;;  %v255_v42 = vmul.f32 %v624_v0, %v184_v26  ;;  %v195_v3 = vld [vmem:[%s629_s20 + $0xa8] sm:$0xff]  ;;  %v196_v8 = vld [vmem:[%s629_s20 + $0xb0] sm:$0xff] }
  0x18   : > { %446 = vst [vmem:[%s657_s25 + $0x10] sm:$0xff] %v382_v29  ;;  %447 = vst [vmem:[%s657_s25 + $0x18] sm:$0xff] %v383_v34  ;;  %v387_v44 = vmax.f32 %v323_v37, 0.0  ;;  %v256_v45 = vmul.f32 %v624_v0, %v185_v31  ;;  %v257_v46 = vmul.f32 %v624_v0, %v186_v32  ;;  %v258_v47 = vmul.f32 %v624_v0, %v187_v33  ;;  %v197_v13 = vld [vmem:[%s629_s20 + $0xb8] sm:$0xff]  ;;  %v198_v26 = vld [vmem:[%s629_s20 + $0xc0] sm:$0xff] }
  0x19   : > { %448 = vst [vmem:[%s657_s25 + $0x20] sm:$0xff] %v384_v35  ;;  %449 = vst [vmem:[%s657_s25 + $0x28] sm:$0xff] %v385_v36  ;;  %v324_v48 = vadd.f32 %v634_v1, %v253_v40  ;;  %v325_v49 = vadd.f32 %v634_v1, %v254_v41  ;;  %v326_v50 = vadd.f32 %v634_v1, %v255_v42  ;;  %v199_v27 = vld [vmem:[%s629_s20 + $0xc8] sm:$0xff]  ;;  %v200_v28 = vld [vmem:[%s629_s20 + $0xd0] sm:$0xff] }
  0x1a   : > { %450 = vst [vmem:[%s657_s25 + $0x30] sm:$0xff] %v386_v39  ;;  %v259_v51 = vmul.f32 %v624_v0, %v188_v38  ;;  %451 = vst [vmem:[%s657_s25 + $0x38] sm:$0xff] %v387_v44  ;;  %v327_v52 = vadd.f32 %v634_v1, %v256_v45  ;;  %v328_v53 = vadd.f32 %v634_v1, %v257_v46  ;;  %v201_v33 = vld [vmem:[%s629_s20 + $0xd8] sm:$0xff]  ;;  %v202_v34 = vld [vmem:[%s629_s20 + $0xe0] sm:$0xff] }
  0x1b   : > { %v329_v54 = vadd.f32 %v634_v1, %v258_v47  ;;  %v260_v55 = vmul.f32 %v624_v0, %v189_v43  ;;  %v388_v59 = vmax.f32 %v324_v48, 0.0  ;;  %v389_v60 = vmax.f32 %v325_v49, 0.0  ;;  %v203_v35 = vld [vmem:[%s629_s20 + $0xe8] sm:$0xff]  ;;  %v204_v40 = vld [vmem:[%s629_s20 + $0xf0] sm:$0xff]  ;;  %v205_v45 = vld [vmem:[%s629_s20 + $0xf8] sm:$0xff] }
  0x1c   : > { %v390_v61 = vmax.f32 %v326_v50, 0.0  ;;  %v330_v62 = vadd.f32 %v634_v1, %v259_v51  ;;  %v391_v4 = vmax.f32 %v327_v52, 0.0  ;;  %v392_v5 = vmax.f32 %v328_v53, 0.0 }
  0x1d   : > { %v393_v6 = vmax.f32 %v329_v54, 0.0  ;;  %v331_v7 = vadd.f32 %v634_v1, %v260_v55  ;;  %452 = vst [vmem:[%s657_s25 + $0x40] sm:$0xff] %v388_v59  ;;  %453 = vst [vmem:[%s657_s25 + $0x48] sm:$0xff] %v389_v60  ;;  %v261_v10 = vmul.f32 %v624_v0, %v190_v56  ;;  %v262_v11 = vmul.f32 %v624_v0, %v191_v57  ;;  %v207_v59 = vld [vmem:[%s629_s20 + $0x108] sm:$0xff]  ;;  %v208_v60 = vld [vmem:[%s629_s20 + $0x110] sm:$0xff] }
  0x1e   : > { %454 = vst [vmem:[%s657_s25 + $0x50] sm:$0xff] %v390_v61  ;;  %v394_v9 = vmax.f32 %v330_v62, 0.0  ;;  %v263_v12 = vmul.f32 %v624_v0, %v192_v58  ;;  %455 = vst [vmem:[%s657_s25 + $0x58] sm:$0xff] %v391_v4  ;;  %v264_v15 = vmul.f32 %v624_v0, %v193_v63  ;;  %v265_v16 = vmul.f32 %v624_v0, %v194_v2  ;;  %v206_v58 = vld [vmem:[%s629_s20 + $0x100] sm:$0xff] }
  0x1f   : > { %456 = vst [vmem:[%s657_s25 + $0x60] sm:$0xff] %v392_v5  ;;  %457 = vst [vmem:[%s657_s25 + $0x68] sm:$0xff] %v393_v6  ;;  %v395_v14 = vmax.f32 %v331_v7, 0.0  ;;  %v266_v17 = vmul.f32 %v624_v0, %v195_v3  ;;  %v332_v18 = vadd.f32 %v634_v1, %v261_v10  ;;  %v333_v19 = vadd.f32 %v634_v1, %v262_v11  ;;  %v209_v3 = vld [vmem:[%s629_s20 + $0x118] sm:$0xff]  ;;  %v210_v4 = vld [vmem:[%s629_s20 + $0x120] sm:$0xff] }
  0x20   : > { %458 = vst [vmem:[%s657_s25 + $0x70] sm:$0xff] %v394_v9  ;;  %v334_v20 = vadd.f32 %v634_v1, %v263_v12  ;;  %v267_v21 = vmul.f32 %v624_v0, %v196_v8  ;;  %v335_v22 = vadd.f32 %v634_v1, %v264_v15  ;;  %v336_v23 = vadd.f32 %v634_v1, %v265_v16  ;;  %v211_v5 = vld [vmem:[%s629_s20 + $0x128] sm:$0xff]  ;;  %v212_v10 = vld [vmem:[%s629_s20 + $0x130] sm:$0xff]  ;;  %v213_v15 = vld [vmem:[%s629_s20 + $0x138] sm:$0xff] }
  0x21   : > { %459 = vst [vmem:[%s657_s25 + $0x78] sm:$0xff] %v395_v14  ;;  %v337_v24 = vadd.f32 %v634_v1, %v266_v17  ;;  %v268_v25 = vmul.f32 %v624_v0, %v197_v13  ;;  %v396_v29 = vmax.f32 %v332_v18, 0.0  ;;  %v397_v30 = vmax.f32 %v333_v19, 0.0 }
  0x22   : > { %v398_v31 = vmax.f32 %v334_v20, 0.0  ;;  %v338_v32 = vadd.f32 %v634_v1, %v267_v21  ;;  %v399_v36 = vmax.f32 %v335_v22, 0.0  ;;  %v400_v37 = vmax.f32 %v336_v23, 0.0 }
  0x23   : > { %v401_v38 = vmax.f32 %v337_v24, 0.0  ;;  %v339_v39 = vadd.f32 %v634_v1, %v268_v25  ;;  %460 = vst [vmem:[%s657_s25 + $0x80] sm:$0xff] %v396_v29  ;;  %461 = vst [vmem:[%s657_s25 + $0x88] sm:$0xff] %v397_v30  ;;  %v269_v42 = vmul.f32 %v624_v0, %v198_v26  ;;  %v270_v43 = vmul.f32 %v624_v0, %v199_v27  ;;  %v215_v29 = vld [vmem:[%s629_s20 + $0x148] sm:$0xff]  ;;  %v216_v30 = vld [vmem:[%s629_s20 + $0x150] sm:$0xff] }
  0x24   : > { %462 = vst [vmem:[%s657_s25 + $0x90] sm:$0xff] %v398_v31  ;;  %v402_v41 = vmax.f32 %v338_v32, 0.0  ;;  %v271_v44 = vmul.f32 %v624_v0, %v200_v28  ;;  %463 = vst [vmem:[%s657_s25 + $0x98] sm:$0xff] %v399_v36  ;;  %v272_v47 = vmul.f32 %v624_v0, %v201_v33  ;;  %v273_v48 = vmul.f32 %v624_v0, %v202_v34  ;;  %v214_v28 = vld [vmem:[%s629_s20 + $0x140] sm:$0xff] }
  0x25   : > { %464 = vst [vmem:[%s657_s25 + $0xa0] sm:$0xff] %v400_v37  ;;  %465 = vst [vmem:[%s657_s25 + $0xa8] sm:$0xff] %v401_v38  ;;  %v403_v46 = vmax.f32 %v339_v39, 0.0  ;;  %v274_v49 = vmul.f32 %v624_v0, %v203_v35  ;;  %v340_v50 = vadd.f32 %v634_v1, %v269_v42  ;;  %v341_v51 = vadd.f32 %v634_v1, %v270_v43  ;;  %v217_v35 = vld [vmem:[%s629_s20 + $0x158] sm:$0xff]  ;;  %v218_v36 = vld [vmem:[%s629_s20 + $0x160] sm:$0xff] }
  0x26   : > { %466 = vst [vmem:[%s657_s25 + $0xb0] sm:$0xff] %v402_v41  ;;  %v342_v52 = vadd.f32 %v634_v1, %v271_v44  ;;  %v275_v53 = vmul.f32 %v624_v0, %v204_v40  ;;  %v343_v54 = vadd.f32 %v634_v1, %v272_v47  ;;  %v344_v55 = vadd.f32 %v634_v1, %v273_v48  ;;  %v219_v37 = vld [vmem:[%s629_s20 + $0x168] sm:$0xff]  ;;  %v220_v42 = vld [vmem:[%s629_s20 + $0x170] sm:$0xff]  ;;  %v221_v47 = vld [vmem:[%s629_s20 + $0x178] sm:$0xff] }
  0x27   : > { %467 = vst [vmem:[%s657_s25 + $0xb8] sm:$0xff] %v403_v46  ;;  %v345_v56 = vadd.f32 %v634_v1, %v274_v49  ;;  %v276_v57 = vmul.f32 %v624_v0, %v205_v45  ;;  %v404_v61 = vmax.f32 %v340_v50, 0.0  ;;  %v405_v62 = vmax.f32 %v341_v51, 0.0 }
  0x28   : > { %v406_v63 = vmax.f32 %v342_v52, 0.0  ;;  %v346_v2 = vadd.f32 %v634_v1, %v275_v53  ;;  %v407_v6 = vmax.f32 %v343_v54, 0.0  ;;  %v408_v7 = vmax.f32 %v344_v55, 0.0 }
  0x29   : > { %v409_v8 = vmax.f32 %v345_v56, 0.0  ;;  %v347_v9 = vadd.f32 %v634_v1, %v276_v57  ;;  %468 = vst [vmem:[%s657_s25 + $0xc0] sm:$0xff] %v404_v61  ;;  %469 = vst [vmem:[%s657_s25 + $0xc8] sm:$0xff] %v405_v62  ;;  %v277_v12 = vmul.f32 %v624_v0, %v206_v58  ;;  %v278_v13 = vmul.f32 %v624_v0, %v207_v59  ;;  %v223_v61 = vld [vmem:[%s629_s20 + $0x188] sm:$0xff]  ;;  %v224_v62 = vld [vmem:[%s629_s20 + $0x190] sm:$0xff] }
  0x2a   : > { %470 = vst [vmem:[%s657_s25 + $0xd0] sm:$0xff] %v406_v63  ;;  %v410_v11 = vmax.f32 %v346_v2, 0.0  ;;  %v279_v14 = vmul.f32 %v624_v0, %v208_v60  ;;  %471 = vst [vmem:[%s657_s25 + $0xd8] sm:$0xff] %v407_v6  ;;  %v280_v17 = vmul.f32 %v624_v0, %v209_v3  ;;  %v281_v18 = vmul.f32 %v624_v0, %v210_v4  ;;  %v222_v60 = vld [vmem:[%s629_s20 + $0x180] sm:$0xff] }
  0x2b   : > { %472 = vst [vmem:[%s657_s25 + $0xe0] sm:$0xff] %v408_v7  ;;  %473 = vst [vmem:[%s657_s25 + $0xe8] sm:$0xff] %v409_v8  ;;  %v411_v16 = vmax.f32 %v347_v9, 0.0  ;;  %v282_v19 = vmul.f32 %v624_v0, %v211_v5  ;;  %v348_v20 = vadd.f32 %v634_v1, %v277_v12  ;;  %v349_v21 = vadd.f32 %v634_v1, %v278_v13  ;;  %v225_v5 = vld [vmem:[%s629_s20 + $0x198] sm:$0xff]  ;;  %v226_v6 = vld [vmem:[%s629_s20 + $0x1a0] sm:$0xff] }
  0x2c   : > { %474 = vst [vmem:[%s657_s25 + $0xf0] sm:$0xff] %v410_v11  ;;  %v350_v22 = vadd.f32 %v634_v1, %v279_v14  ;;  %v283_v23 = vmul.f32 %v624_v0, %v212_v10  ;;  %v351_v24 = vadd.f32 %v634_v1, %v280_v17  ;;  %v352_v25 = vadd.f32 %v634_v1, %v281_v18  ;;  %v227_v7 = vld [vmem:[%s629_s20 + $0x1a8] sm:$0xff]  ;;  %v228_v12 = vld [vmem:[%s629_s20 + $0x1b0] sm:$0xff]  ;;  %v229_v17 = vld [vmem:[%s629_s20 + $0x1b8] sm:$0xff] }
  0x2d   : > { %475 = vst [vmem:[%s657_s25 + $0xf8] sm:$0xff] %v411_v16  ;;  %v353_v26 = vadd.f32 %v634_v1, %v282_v19  ;;  %v284_v27 = vmul.f32 %v624_v0, %v213_v15  ;;  %v412_v31 = vmax.f32 %v348_v20, 0.0  ;;  %v413_v32 = vmax.f32 %v349_v21, 0.0 }
  0x2e   : > { %v414_v33 = vmax.f32 %v350_v22, 0.0  ;;  %v354_v34 = vadd.f32 %v634_v1, %v283_v23  ;;  %v415_v38 = vmax.f32 %v351_v24, 0.0  ;;  %v416_v39 = vmax.f32 %v352_v25, 0.0 }
  0x2f   : > { %v417_v40 = vmax.f32 %v353_v26, 0.0  ;;  %v355_v41 = vadd.f32 %v634_v1, %v284_v27  ;;  %476 = vst [vmem:[%s657_s25 + $0x100] sm:$0xff] %v412_v31  ;;  %477 = vst [vmem:[%s657_s25 + $0x108] sm:$0xff] %v413_v32  ;;  %v285_v44 = vmul.f32 %v624_v0, %v214_v28  ;;  %v286_v45 = vmul.f32 %v624_v0, %v215_v29  ;;  %v231_v31 = vld [vmem:[%s629_s20 + $0x1c8] sm:$0xff]  ;;  %v232_v32 = vld [vmem:[%s629_s20 + $0x1d0] sm:$0xff] }
  0x30   : > { %478 = vst [vmem:[%s657_s25 + $0x110] sm:$0xff] %v414_v33  ;;  %v418_v43 = vmax.f32 %v354_v34, 0.0  ;;  %v287_v46 = vmul.f32 %v624_v0, %v216_v30  ;;  %479 = vst [vmem:[%s657_s25 + $0x118] sm:$0xff] %v415_v38  ;;  %v288_v49 = vmul.f32 %v624_v0, %v217_v35  ;;  %v289_v50 = vmul.f32 %v624_v0, %v218_v36  ;;  %v230_v30 = vld [vmem:[%s629_s20 + $0x1c0] sm:$0xff] }
  0x31   : > { %480 = vst [vmem:[%s657_s25 + $0x120] sm:$0xff] %v416_v39  ;;  %481 = vst [vmem:[%s657_s25 + $0x128] sm:$0xff] %v417_v40  ;;  %v419_v48 = vmax.f32 %v355_v41, 0.0  ;;  %v290_v51 = vmul.f32 %v624_v0, %v219_v37  ;;  %v356_v52 = vadd.f32 %v634_v1, %v285_v44  ;;  %v357_v53 = vadd.f32 %v634_v1, %v286_v45  ;;  %v233_v37 = vld [vmem:[%s629_s20 + $0x1d8] sm:$0xff]  ;;  %v234_v38 = vld [vmem:[%s629_s20 + $0x1e0] sm:$0xff] }
  0x32   : > { %482 = vst [vmem:[%s657_s25 + $0x130] sm:$0xff] %v418_v43  ;;  %v358_v54 = vadd.f32 %v634_v1, %v287_v46  ;;  %v291_v55 = vmul.f32 %v624_v0, %v220_v42  ;;  %v359_v56 = vadd.f32 %v634_v1, %v288_v49  ;;  %v360_v57 = vadd.f32 %v634_v1, %v289_v50  ;;  %v235_v39 = vld [vmem:[%s629_s20 + $0x1e8] sm:$0xff]  ;;  %v236_v44 = vld [vmem:[%s629_s20 + $0x1f0] sm:$0xff]  ;;  %v237_v49 = vld [vmem:[%s629_s20 + $0x1f8] sm:$0xff] }
  0x33   : > { %483 = vst [vmem:[%s657_s25 + $0x138] sm:$0xff] %v419_v48  ;;  %v361_v58 = vadd.f32 %v634_v1, %v290_v51  ;;  %v292_v59 = vmul.f32 %v624_v0, %v221_v47  ;;  %v420_v63 = vmax.f32 %v356_v52, 0.0  ;;  %v421_v2 = vmax.f32 %v357_v53, 0.0 }
  0x34   : > { %v422_v3 = vmax.f32 %v358_v54, 0.0  ;;  %v362_v4 = vadd.f32 %v634_v1, %v291_v55  ;;  %v423_v8 = vmax.f32 %v359_v56, 0.0  ;;  %v424_v9 = vmax.f32 %v360_v57, 0.0 }
  0x35   : > { %v425_v10 = vmax.f32 %v361_v58, 0.0  ;;  %v363_v11 = vadd.f32 %v634_v1, %v292_v59  ;;  %484 = vst [vmem:[%s657_s25 + $0x140] sm:$0xff] %v420_v63  ;;  %485 = vst [vmem:[%s657_s25 + $0x148] sm:$0xff] %v421_v2  ;;  %v293_v14 = vmul.f32 %v624_v0, %v222_v60  ;;  %v294_v15 = vmul.f32 %v624_v0, %v223_v61 }
  0x36   : > { %486 = vst [vmem:[%s657_s25 + $0x150] sm:$0xff] %v422_v3  ;;  %v426_v13 = vmax.f32 %v362_v4, 0.0  ;;  %v295_v16 = vmul.f32 %v624_v0, %v224_v62  ;;  %487 = vst [vmem:[%s657_s25 + $0x158] sm:$0xff] %v423_v8  ;;  %v296_v19 = vmul.f32 %v624_v0, %v225_v5  ;;  %v297_v20 = vmul.f32 %v624_v0, %v226_v6 }
  0x37   : > { %488 = vst [vmem:[%s657_s25 + $0x160] sm:$0xff] %v424_v9  ;;  %489 = vst [vmem:[%s657_s25 + $0x168] sm:$0xff] %v425_v10  ;;  %v427_v18 = vmax.f32 %v363_v11, 0.0  ;;  %v298_v21 = vmul.f32 %v624_v0, %v227_v7  ;;  %v364_v22 = vadd.f32 %v634_v1, %v293_v14  ;;  %v365_v23 = vadd.f32 %v634_v1, %v294_v15 }
  0x38   : > { %490 = vst [vmem:[%s657_s25 + $0x170] sm:$0xff] %v426_v13  ;;  %v366_v24 = vadd.f32 %v634_v1, %v295_v16  ;;  %v299_v25 = vmul.f32 %v624_v0, %v228_v12  ;;  %v367_v26 = vadd.f32 %v634_v1, %v296_v19  ;;  %v368_v27 = vadd.f32 %v634_v1, %v297_v20 }
  0x39   : > { %491 = vst [vmem:[%s657_s25 + $0x178] sm:$0xff] %v427_v18  ;;  %v369_v28 = vadd.f32 %v634_v1, %v298_v21  ;;  %v300_v29 = vmul.f32 %v624_v0, %v229_v17  ;;  %v428_v33 = vmax.f32 %v364_v22, 0.0  ;;  %v429_v34 = vmax.f32 %v365_v23, 0.0 }
  0x3a   : > { %v430_v35 = vmax.f32 %v366_v24, 0.0  ;;  %v370_v36 = vadd.f32 %v634_v1, %v299_v25  ;;  %v431_v40 = vmax.f32 %v367_v26, 0.0  ;;  %v432_v41 = vmax.f32 %v368_v27, 0.0 }
  0x3b   : > { %v433_v42 = vmax.f32 %v369_v28, 0.0  ;;  %v371_v43 = vadd.f32 %v634_v1, %v300_v29  ;;  %492 = vst [vmem:[%s657_s25 + $0x180] sm:$0xff] %v428_v33  ;;  %493 = vst [vmem:[%s657_s25 + $0x188] sm:$0xff] %v429_v34  ;;  %v301_v46 = vmul.f32 %v624_v0, %v230_v30  ;;  %v302_v47 = vmul.f32 %v624_v0, %v231_v31 }
  0x3c   : > { %494 = vst [vmem:[%s657_s25 + $0x190] sm:$0xff] %v430_v35  ;;  %v434_v45 = vmax.f32 %v370_v36, 0.0  ;;  %v303_v48 = vmul.f32 %v624_v0, %v232_v32  ;;  %495 = vst [vmem:[%s657_s25 + $0x198] sm:$0xff] %v431_v40  ;;  %v304_v51 = vmul.f32 %v624_v0, %v233_v37  ;;  %v305_v52 = vmul.f32 %v624_v0, %v234_v38 }
  0x3d   : > { %496 = vst [vmem:[%s657_s25 + $0x1a0] sm:$0xff] %v432_v41  ;;  %497 = vst [vmem:[%s657_s25 + $0x1a8] sm:$0xff] %v433_v42  ;;  %v435_v50 = vmax.f32 %v371_v43, 0.0  ;;  %v306_v53 = vmul.f32 %v624_v0, %v235_v39  ;;  %v372_v54 = vadd.f32 %v634_v1, %v301_v46  ;;  %v373_v55 = vadd.f32 %v634_v1, %v302_v47 }
  0x3e   : > { %498 = vst [vmem:[%s657_s25 + $0x1b0] sm:$0xff] %v434_v45  ;;  %v374_v56 = vadd.f32 %v634_v1, %v303_v48  ;;  %v307_v57 = vmul.f32 %v624_v0, %v236_v44  ;;  %v375_v58 = vadd.f32 %v634_v1, %v304_v51  ;;  %v376_v59 = vadd.f32 %v634_v1, %v305_v52 }
  0x3f   : > { %499 = vst [vmem:[%s657_s25 + $0x1b8] sm:$0xff] %v435_v50  ;;  %v377_v60 = vadd.f32 %v634_v1, %v306_v53  ;;  %v308_v61 = vmul.f32 %v624_v0, %v237_v49  ;;  %v436_v62 = vmax.f32 %v372_v54, 0.0  ;;  %v437_v63 = vmax.f32 %v373_v55, 0.0 }
  0x40   : > { %v438_v2 = vmax.f32 %v374_v56, 0.0  ;;  %v378_v3 = vadd.f32 %v634_v1, %v307_v57  ;;  %v439_v4 = vmax.f32 %v375_v58, 0.0  ;;  %v440_v5 = vmax.f32 %v376_v59, 0.0 }
  0x41   : > { %v441_v6 = vmax.f32 %v377_v60, 0.0  ;;  %v379_v7 = vadd.f32 %v634_v1, %v308_v61  ;;  %500 = vst [vmem:[%s657_s25 + $0x1c0] sm:$0xff] %v436_v62  ;;  %501 = vst [vmem:[%s657_s25 + $0x1c8] sm:$0xff] %v437_v63 }
  0x42   : > { %502 = vst [vmem:[%s657_s25 + $0x1d0] sm:$0xff] %v438_v2  ;;  %v442_v8 = vmax.f32 %v378_v3, 0.0  ;;  %503 = vst [vmem:[%s657_s25 + $0x1d8] sm:$0xff] %v439_v4 }
  0x43   : > { %504 = vst [vmem:[%s657_s25 + $0x1e0] sm:$0xff] %v440_v5  ;;  %505 = vst [vmem:[%s657_s25 + $0x1e8] sm:$0xff] %v441_v6  ;;  %v443_v0 = vmax.f32 %v379_v7, 0.0 }
  0x44   : > { %506 = vst [vmem:[%s657_s25 + $0x1f0] sm:$0xff] %v442_v8 }
  0x45   : > { %507 = vst [vmem:[%s657_s25 + $0x1f8] sm:$0xff] %v443_v0 }
  0x46 PF: > { %s13_s12 = sadd.s32 1, %s591_s12  }
  0x47   : > { %p10_p4 = scmp.ge.s32.totalorder %s13_s12, 4  }
  0x49   :  { %12 = sbr.rel (!%p10_p4) target bundleno = 1 (0x1), region = 62 }

// kernel: up_forward.6
= control target key start
LH: loop header
LB: loop body
LE: loop exit
PB: predicated region body
PF: predicated region fallthrough
CT: control target
= control target key end

     0   :  { %s7622_s21 = smov 0   ;;  %s7624_s22 = smov 0   ;;  %s9205_s0 = inlined_call_operand.vmem [shape: bf16[2,10,10,10,128], index: 0, kind: input, shape index: {}, may-alias: {0,1,2}]   ;;  %s9206_s1 = inlined_call_operand.vmem [shape: bf16[2,10,10,10,128], index: 1, kind: input, shape index: {}, may-alias: {0,1,2}]   ;;  %s9207_s2 = inlined_call_operand.vmem [shape: bf16[2,10,10,10,128], index: 2, kind: input, shape index: {}, may-alias: {0,1,2}]   ;;  %s9208_s3 = inlined_call_operand.vmem [shape: bf16[27,128,128], index: 3, kind: input, shape index: {}]   ;;  %s9209_s4 = inlined_call_operand.vmem [shape: f32[2,8,8,8,128], index: 4, kind: output, shape index: {0}]   ;;  %s9210_s5 = inlined_call_operand.vmem [shape: f32[2,8,1,128], index: 5, kind: output, shape index: {1}]   ;;  %s9211_s6 = inlined_call_operand.vmem [shape: f32[2,8,1,128], index: 6, kind: output, shape index: {2}]  }
   0x1   :  { %s7626_s23 = smov 0   ;;  %s7628_s24 = smov 0  }
   0x2   :  { %s7630_s25 = smov 0  }
   0x3 LB: > { %s26_s26 = sadd.s32 1, %s7577_s23  ;;  %s29_s27 = sadd.s32 1, %s7581_s24  ;;  %s7585_s25 = sphi %s7630_s25, %s17_s25   ;;  %s7581_s24 = sphi %s7628_s24, %s9245_s24   ;;  %s7577_s23 = sphi %s7626_s23, %s9244_s23   ;;  %s7573_s22 = sphi %s7624_s22, %s9243_s22   ;;  %s7569_s21 = sphi %s7622_s21, %s9242_s21  }
   0x4   : > { %p27_p0 = scmp.ge.s32.totalorder %s26_s26, 8  ;;  %p5302_p1 = scmp.ge.s32.totalorder %s7585_s25, 1 }
   0x5   : > { %p281_p2 = scmp.lt.s32.totalorder %s7585_s25, 17 }
   0x6   : > { %s9247_s26 = smov (%p27_p0, %s26_s26), 0  ;;  %s9249_s27 = smov (!%p27_p0, %s29_s27), %s7581_s24 }
   0x7   : > { %p282_p3 = pnand %p5302_p1, %p281_p2  ;;  %p31_p4 = scmp.ge.s32.totalorder %s9249_s27, 2 }
   0x9   : > { %s9251_s27 = smov (%p31_p4, %s9249_s27), 0  ;;  %285 = sbr.rel (%p282_p3) target bundleno = 720 (0x2d0), region = 36 }
  0x10   : > { %v7296_v0 = vld [vmem:[%s9208_s3 + $0x40] sm:$0xff]   ;;  %p353_p5 = scmp.lt.s32.totalorder %s7573_s22, 1  ;;  %p355_p6 = scmp.lt.s32.totalorder %s7569_s21, 9  ;;  %v7298_v2 = vld [vmem:[%s9208_s3 + $0x48] sm:$0xff]   ;;  %v7300_v4 = vld [vmem:[%s9208_s3 + $0x50] sm:$0xff]   ;;  %vm850_vm3 = vcmask 1042432  }
  0x11   : > { %v7297_v1 = vld [vmem:[%s9208_s3 + $0x340] sm:$0xff]   ;;  %6380 = vmatprep.subr.bf16.mxu1 %v7296_v0  ;;  %v7299_v3 = vld [vmem:[%s9208_s3 + $0x348] sm:$0xff]   ;;  %v7301_v5 = vld [vmem:[%s9208_s3 + $0x350] sm:$0xff]   ;;  %s362_s19 = sadd.s32 1, %s7569_s21  ;;  %vm444_vm0 = vsmask.f32 3328 }
  0x12   : > { %s9253_s22 = smov (!%p353_p5, %s7573_s22), 1  ;;  %6692 = vmatprep.subr.bf16.mxu0 %v7297_v1  ;;  %6381 = vmatpush3.bf16.msra.mxu1 %v7296_v0  ;;  %p365_p7 = scmp.lt.s32.totalorder %s362_s19, 9  ;;  %v7302_v6 = vld [vmem:[%s9208_s3 + $0x58] sm:$0xff]   ;;  %v7304_v8 = vld [vmem:[%s9208_s3 + $0x60] sm:$0xff]   ;;  %v7306_v10 = vld [vmem:[%s9208_s3 + $0x68] sm:$0xff]   ;;  %vm851_vm4 = vcmask 1046532  }
  0x13   : > { %s356_s12 = scalar_select %p355_p6, %s7569_s21, 9  ;;  %6693 = vmatpush3.bf16.msra.mxu0 %v7297_v1  ;;  %6382 = vmatprep.subr.bf16.mxu1 %v7298_v2  ;;  %v7303_v7 = vld [vmem:[%s9208_s3 + $0x358] sm:$0xff]   ;;  %v7305_v9 = vld [vmem:[%s9208_s3 + $0x360] sm:$0xff]   ;;  %v7307_v11 = vld [vmem:[%s9208_s3 + $0x368] sm:$0xff]   ;;  %vm445_vm1 = vsmask.f32 7440 }
  0x14   : > { %s7674_s15 = smul.u32 200, %s9253_s22  ;;  %6694 = vmatprep.subr.bf16.mxu0 %v7299_v3  ;;  %s9255_s19 = smov (!%p365_p7, %s362_s19), 9  ;;  %v7308_v18 = vld [vmem:[%s9208_s3 + $0x70] sm:$0xff]   ;;  %vm7750_vm2 = vmor %vm444_vm0, %vm445_vm1  ;;  %v7310_v40 = vld [vmem:[%s9208_s3 + $0x78] sm:$0xff]  }
  0x15   : > { %s7252_s18 = smul.u32 20, %s356_s12  ;;  %v7309_v29 = vld [vmem:[%s9208_s3 + $0x370] sm:$0xff]   ;;  %v7311_v46 = vld [vmem:[%s9208_s3 + $0x378] sm:$0xff]   ;;  %v7789_v57 = vld [vmem:[%s9208_s3] sm:$0xff]   ;;  %p386_p9 = scmp.lt.s32.totalorder %s7569_s21, 7 }
  0x16   : > { %6383 = vmatpush3.bf16.msra.mxu1 %v7298_v2  ;;  %s7254_s11 = smul.u32 20, %s9255_s19  ;;  %v7801_v63 = vld [vmem:[%s9208_s3 + $0x380] sm:$0xff]   ;;  %vm8001_vm5 = vmor %vm850_vm3, %vm851_vm4  ;;  %v7536_v37 = vld [vmem:[%s9208_s3 + $0x6a8] sm:$0xff]   ;;  %s5307_s29 = sshll.u32 %s9253_s22, 6 }
  0x17   : > { %s359_s20 = sadd.s32 %s7674_s15, %s7252_s18  ;;  %6695 = vmatpush3.bf16.msra.mxu0 %v7299_v3  ;;  %6384 = vmatprep.subr.bf16.mxu1 %v7300_v4 }
  0x18   : > { %6696 = vmatprep.subr.bf16.mxu0 %v7301_v5  ;;  %s5303_s8 = sshll.u32 %s359_s20, 2  ;;  %s7702_s19 = sadd.s32 %s7254_s11, %s7674_s15 }
  0x19   : > { %s7696_s17 = scalar_lea.vmem %s9205_s0, %s5303_s8  ;;  %s5304_s30 = sshll.u32 %s7702_s19, 2 }
  0x1a   : > { %6385 = vmatpush3.bf16.msra.mxu1 %v7300_v4  ;;  %v7709_v12 = vld [vmem:[%s7696_s17] sm:$0xf]  ;;  %v7712_v13 = vld [vmem:[%s7696_s17 + $0x4] sm:$0x1]  ;;  %v7715_v14 = vld [vmem:[%s7696_s17 + $0x8] sm:$0xf]  ;;  %s7745_s13 = scalar_lea.vmem %s9206_s1, %s5304_s30 }
  0x1b   : > { %6697 = vmatpush3.bf16.msra.mxu0 %v7301_v5  ;;  %6386 = vmatprep.subr.bf16.mxu1 %v7302_v6  ;;  %v7718_v15 = vld [vmem:[%s7696_s17 + $0xc] sm:$0x1]  ;;  %v7721_v16 = vld [vmem:[%s7696_s17 + $0x10] sm:$0xf]  ;;  %v7724_v17 = vld [vmem:[%s7696_s17 + $0x14] sm:$0x1] }
  0x1c   : > { %6698 = vmatprep.subr.bf16.mxu0 %v7303_v7  ;;  %v448_v19 = vshrl.u32 %v7709_v12, 16  ;;  %v451_v20 = vshll.u32 %v7709_v12, 16  ;;  %v457_v21 = vshll.u32 %v7712_v13, 16  ;;  %v462_v22 = vshrl.u32 %v7715_v14, 16  ;;  %v7758_v44 = vld [vmem:[%s7745_s13 + $0x8] sm:$0xf] }
  0x1d   : > { %v465_v23 = vshll.u32 %v7715_v14, 16  ;;  %v471_v24 = vshll.u32 %v7718_v15, 16  ;;  %v476_v27 = vshrl.u32 %v7721_v16, 16  ;;  %v479_v28 = vshll.u32 %v7721_v16, 16  ;;  %v7768_v50 = vld [vmem:[%s7745_s13 + $0xc] sm:$0x1] }
  0x1e   : > { %6387 = vmatpush3.bf16.msra.mxu1 %v7302_v6  ;;  %v450_v25 = vrot.slane %v448_v19, 4  ;;  %v453_v26 = vrot.slane %v451_v20, 5  ;;  %v459_v30 = vrot.slane %v457_v21, 5  ;;  %v464_v31 = vrot.slane %v462_v22, 4  ;;  %v7771_v51 = vld [vmem:[%s7745_s13 + $0x10] sm:$0xf] }
  0x1f   : > { %6699 = vmatpush3.bf16.msra.mxu0 %v7303_v7  ;;  %6388 = vmatprep.subr.bf16.mxu1 %v7304_v8  ;;  %v467_v32 = vrot.slane %v465_v23, 5  ;;  %v478_v34 = vrot.slane %v476_v27, 4  ;;  %v481_v35 = vrot.slane %v479_v28, 5  ;;  %v485_v36 = vshll.u32 %v7724_v17, 16  ;;  %v7778_v53 = vld [vmem:[%s7745_s13 + $0x14] sm:$0x1] }
  0x20   : > { %6700 = vmatprep.subr.bf16.mxu0 %v7305_v9  ;;  %v454_v33 = vor.u32 %v453_v26, %v450_v25  ;;  %v473_v39 = vrot.slane %v471_v24, 5  ;;  %v2140_v54 = vshrl.u32 %v7758_v44, 16  ;;  %v7792_v58 = vld [vmem:[%s7745_s13 + $0x18] sm:$0xf]  ;;  %v2143_v59 = vshll.u32 %v7758_v44, 16  ;;  %s373_s19 = sadd.s32 2, %s7569_s21 }
  0x21   : > { %v468_v38 = vor.u32 %v467_v32, %v464_v31  ;;  %v482_v42 = vor.u32 %v481_v35, %v478_v34  ;;  %v487_v43 = vrot.slane %v485_v36, 5  ;;  %v2149_v62 = vshll.u32 %v7768_v50, 16  ;;  %v7804_v0 = vld [vmem:[%s7745_s13 + $0x1c] sm:$0x1]  ;;  %v7812_v7 = vld [vmem:[%s7696_s17 + $0x18] sm:$0xf] }
  0x22   : > { %6389 = vmatpush3.bf16.msra.mxu1 %v7304_v8  ;;  %v455_v41 = vrot.slane %v454_v33, 4  ;;  %v2142_v61 = vrot.slane %v2140_v54, 4  ;;  %v2145_v1 = vrot.slane %v2143_v59, 5  ;;  %v2154_v2 = vshrl.u32 %v7771_v51, 16  ;;  %v7822_v28 = vld [vmem:[%s7745_s13 + $0x20] sm:$0xf] }
  0x23   : > { %6701 = vmatpush3.bf16.msra.mxu0 %v7305_v9  ;;  %6390 = vmatprep.subr.bf16.mxu1 %v7306_v10  ;;  %v469_v47 = vrot.slane %v468_v38, 4  ;;  %v483_v49 = vrot.slane %v482_v42, 4  ;;  %v2157_v3 = vshll.u32 %v7771_v51, 16  ;;  %v2163_v4 = vshll.u32 %v7778_v53, 16  ;;  %v7832_v35 = vld [vmem:[%s7745_s13 + $0x24] sm:$0x1] }
  0x24   : > { %6702 = vmatprep.subr.bf16.mxu0 %v7307_v11  ;;  %v460_v48 = vsel %vm7750_vm2, %v455_v41, %v459_v30  ;;  %v2168_v5 = vshrl.u32 %v7792_v58, 16  ;;  %v2171_v6 = vshll.u32 %v7792_v58, 16  ;;  %v2146_v8 = vor.u32 %v2145_v1, %v2142_v61  ;;  %p376_p8 = scmp.lt.s32.totalorder %s373_s19, 9  ;;  %s9259_s21 = smov (!%p386_p9, %s7569_s21), 7 }
  0x25   : > { %v7775_v52 = vsel %vm7750_vm2, %v469_v47, %v473_v39  ;;  %v7783_v55 = vsel %vm7750_vm2, %v483_v49, %v487_v43  ;;  %v2151_v9 = vrot.slane %v2149_v62, 5  ;;  %v2177_v21 = vshll.u32 %v7804_v0, 16  ;;  %s5306_s28 = sshll.u32 %s9259_s21, 3 }
  0x26   : > { %6391 = vmatpush3.bf16.msra.mxu1 %v7306_v10  ;;  %v5327_v56 = vcombine.low %v460_v48, %v7775_v52  ;;  %v2156_v10 = vrot.slane %v2154_v2, 4  ;;  %v2170_v19 = vrot.slane %v2168_v5, 4  ;;  %v2173_v20 = vrot.slane %v2171_v6, 5  ;;  %v7314_v2 = vld [vmem:[%s9208_s3 + $0x8] sm:$0xff]   ;;  %v7856_v5 = vld [vmem:[%s7696_s17 + $0x24] sm:$0x1] }
  0x27   : > { %6703 = vmatpush3.bf16.msra.mxu0 %v7307_v11  ;;  %6392 = vmatprep.subr.bf16.mxu1 %v7308_v18  ;;  %v2159_v11 = vrot.slane %v2157_v3, 5  ;;  %v2147_v22 = vrot.slane %v2146_v8, 4  ;;  %v2165_v24 = vrot.slane %v2163_v4, 5  ;;  %v2179_v27 = vrot.slane %v2177_v21, 5  ;;  %v7853_v4 = vld [vmem:[%s7696_s17 + $0x20] sm:$0xf] }
  0x28   : > { %6704 = vmatprep.subr.bf16.mxu0 %v7309_v29  ;;  %6396 = vmatprep.mubr.bf16.mxu1 %v5327_v56  ;;  %v2174_v26 = vor.u32 %v2173_v20, %v2170_v19  ;;  %v490_v31 = vshrl.u32 %v7812_v7, 16  ;;  %v493_v32 = vshll.u32 %v7812_v7, 16  ;;  %v2191_v54 = vshll.u32 %v7832_v35, 16  ;;  %v7965_v19 = vld [vmem:[%s7745_s13 + $0x44] sm:$0x1]  ;;  %s9257_s19 = smov (!%p376_p8, %s373_s19), 9 }
  0x29   : > { %v2160_v23 = vor.u32 %v2159_v11, %v2156_v10  ;;  %v7866_v10 = vld [vmem:[%s7696_s17 + $0x2c] sm:$0x1]  ;;  %v504_v11 = vshrl.u32 %v7853_v4, 16  ;;  %v507_v20 = vshll.u32 %v7853_v4, 16  ;;  %v513_v21 = vshll.u32 %v7856_v5, 16  ;;  %s7255_s20 = smul.u32 20, %s9257_s19 }
  0x2a   : > { %6393 = vmatpush3.bf16.msra.mxu1 %v7308_v18  ;;  %v7816_v18 = vld [vmem:[%s7696_s17 + $0x1c] sm:$0x1]  ;;  %v2175_v33 = vrot.slane %v2174_v26, 4  ;;  %v492_v38 = vrot.slane %v490_v31, 4  ;;  %v495_v39 = vrot.slane %v493_v32, 5  ;;  %v2193_v62 = vrot.slane %v2191_v54, 5 }
  0x2b   : > { %6705 = vmatpush3.bf16.msra.mxu0 %v7309_v29  ;;  %6394 = vmatprep.subr.bf16.mxu1 %v7310_v40  ;;  %v7826_v29 = vsel %vm7750_vm2, %v2147_v22, %v2151_v9  ;;  %v2161_v30 = vrot.slane %v2160_v23, 4  ;;  %v499_v34 = vshll.u32 %v7816_v18, 16  ;;  %v7863_v9 = vld [vmem:[%s7696_s17 + $0x28] sm:$0xf]  ;;  %v527_v31 = vshll.u32 %v7866_v10, 16  ;;  %s380_s30 = sadd.s32 %s7255_s20, %s7674_s15 }
  0x2c   : > { %6706 = vmatprep.subr.bf16.mxu0 %v7311_v46  ;;  %9218 = vst [vmem:[#allocation2_spill] sm:$0xff] %v7826_v29  ;;  %v2180_v41 = vsel %vm7750_vm2, %v2175_v33, %v2179_v27  ;;  %v496_v48 = vor.u32 %v495_v39, %v492_v38  ;;  %v518_v22 = vshrl.u32 %v7863_v9, 16  ;;  %v521_v23 = vshll.u32 %v7863_v9, 16  ;;  %v7315_v27 = vld [vmem:[%s9208_s3 + $0x388] sm:$0xff]   ;;  %v7316_v33 = vld [vmem:[%s9208_s3 + $0x10] sm:$0xff]   ;;  %s5305_s10 = sshll.u32 %s380_s30, 2  ;;  %s390_s30 = sadd.s32 %s5307_s29, %s5306_s28 }
  0x2d   : > { %v2166_v36 = vsel %vm7750_vm2, %v2161_v30, %v2165_v24  ;;  %v501_v43 = vrot.slane %v499_v34, 5  ;;  %v506_v30 = vrot.slane %v504_v11, 4  ;;  %v509_v34 = vrot.slane %v507_v20, 5  ;;  %v7891_v39 = vld [vmem:[%s7745_s13 + $0x28] sm:$0xf]  ;;  %s8325_s20 = scalar_lea.vmem %s9207_s2, %s5305_s10 }
  0x2e   : > { %6395 = vmatpush3.bf16.msra.mxu1 %v7310_v40  ;;  %v2182_v40 = vshrl.u32 %v7822_v28, 16  ;;  %v5684_v42 = vcombine.low %v7826_v29, %v2166_v36  ;;  %v7841_v47 = vcombine.low %v2166_v36, %v2180_v41  ;;  %v497_v61 = vrot.slane %v496_v48, 4  ;;  %v7903_v48 = vld [vmem:[%s7745_s13 + $0x34] sm:$0x1] }
  0x2f   : > { %6707 = vmatpush3.bf16.msra.mxu0 %v7311_v46  ;;  %6404 = vmatprep.subr.bf16.mxu1 %v7789_v57  ;;  %v2185_v46 = vshll.u32 %v7822_v28, 16  ;;  %v515_v36 = vrot.slane %v513_v21, 5  ;;  %v520_v38 = vrot.slane %v518_v22, 4  ;;  %v2199_v54 = vshll.u32 %v7891_v39, 16 }
  0x30   : > { %6716 = vmatprep.subr.bf16.mxu0 %v7801_v63  ;;  %v2184_v49 = vrot.slane %v2182_v40, 4  ;;  %6708 = vmatprep.mubr.bf16.mxu0 %v5684_v42  ;;  %v7850_v3 = vsel %vm7750_vm2, %v497_v61, %v501_v43  ;;  %v523_v40 = vrot.slane %v521_v23, 5  ;;  %v529_v42 = vrot.slane %v527_v31, 5  ;;  %v7894_v43 = vld [vmem:[%s7745_s13 + $0x2c] sm:$0x1]  ;;  %v7318_v61 = vld [vmem:[%s9208_s3 + $0x18] sm:$0xff]  }
  0x31   : > { %v2187_v59 = vrot.slane %v2185_v46, 5  ;;  %v7860_v6 = vcombine.low %v7783_v55, %v7850_v3  ;;  %v7897_v46 = vld [vmem:[%s7745_s13 + $0x30] sm:$0xf]  ;;  %v2219_v11 = vshll.u32 %v7903_v48, 16  ;;  %v2201_v22 = vrot.slane %v2199_v54, 5 }
  0x33   : > { %v2188_v1 = vor.u32 %v2187_v59, %v2184_v49  ;;  %9219 = vst [vmem:[#allocation3_spill] sm:$0xff] %v7860_v6  ;;  %6397 = vmatmul.mubr.bf16.vlgmr.msra.gmra.mrb[0].mxu1 %v7860_v6  ;;  %v2196_v49 = vshrl.u32 %v7891_v39, 16  ;;  %v2205_v59 = vshll.u32 %v7894_v43, 16 }
  0x34   : > { %6405 = vmatpush3.bf16.msra.mxu1 %v7789_v57  ;;  %v7317_v57 = vld [vmem:[%s9208_s3 + $0x390] sm:$0xff]  }
  0x35   : > { %v2189_v8 = vrot.slane %v2188_v1, 4  ;;  %6406 = vmatprep.subr.bf16.mxu1 %v7314_v2  ;;  %v2210_v1 = vshrl.u32 %v7897_v46, 16 }
  0x37   : > { %v7879_v26 = vsel %vm7750_vm2, %v2189_v8, %v2193_v62  ;;  %v524_v62 = vor.u32 %v523_v40, %v520_v38  ;;  %v2213_v8 = vshll.u32 %v7897_v46, 16  ;;  %v2212_v31 = vrot.slane %v2210_v1, 4 }
  0x38   : > { %v5685_v32 = vcombine.low %v2180_v41, %v7879_v26  ;;  %v510_v41 = vor.u32 %v509_v34, %v506_v30  ;;  %6407 = vmatpush3.bf16.msra.mxu1 %v7314_v2  ;;  %v2207_v30 = vrot.slane %v2205_v59, 5  ;;  %v7917_v34 = vld [vmem:[%s7696_s17 + $0x30] sm:$0xf]  ;;  %v2221_v40 = vrot.slane %v2219_v11, 5  ;;  %v7319_v59 = vld [vmem:[%s9208_s3 + $0x398] sm:$0xff]  }
  0x39   : > { %6408 = vmatprep.subr.bf16.mxu1 %v7316_v33  ;;  %v525_v23 = vrot.slane %v524_v62, 4  ;;  %v532_v11 = vshrl.u32 %v7917_v34, 16 }
  0x3a   : > { %6709 = vmatmul.mubr.bf16.vlgmr.msra.gmra.mrb[0].mxu0 %v5685_v32  ;;  %v511_v21 = vrot.slane %v510_v41, 4  ;;  %v2215_v32 = vrot.slane %v2213_v8, 5  ;;  %v7924_v41 = vld [vmem:[%s7696_s17 + $0x34] sm:$0x1]  ;;  %v7941_v8 = vld [vmem:[%s7696_s17 + $0x3c] sm:$0x1] }
  0x3b   : > { %6717 = vmatpush3.bf16.msra.mxu0 %v7801_v63  ;;  %v2198_v63 = vrot.slane %v2196_v49, 4  ;;  %v7927_v49 = vld [vmem:[%s7696_s17 + $0x38] sm:$0xf] }
  0x3c   : > { %6718 = vmatprep.subr.bf16.mxu0 %v7315_v27  ;;  %v7921_v38 = vsel %vm7750_vm2, %v511_v21, %v515_v36  ;;  %v7936_v36 = vsel %vm7750_vm2, %v525_v23, %v529_v42  ;;  %v2216_v1 = vor.u32 %v2215_v32, %v2212_v31  ;;  %v7945_v21 = vld [vmem:[%s7745_s13 + $0x38] sm:$0xf]  ;;  %6409 = vmatpush3.bf16.msra.mxu1 %v7316_v33  ;;  %v541_v23 = vshll.u32 %v7924_v41, 16  ;;  %v7957_v31 = vld [vmem:[%s7745_s13 + $0x3c] sm:$0x1] }
  0x3d   : > { %9220 = vst [vmem:[#allocation4_spill] sm:$0xff] %v7921_v38  ;;  %v2202_v2 = vor.u32 %v2201_v22, %v2198_v63  ;;  %v7952_v42 = vcombine.low %v7921_v38, %v7936_v36  ;;  %v535_v22 = vshll.u32 %v7917_v34, 16  ;;  %v7960_v32 = vld [vmem:[%s7745_s13 + $0x40] sm:$0xf]  ;;  %6410 = vmatprep.subr.bf16.mxu1 %v7318_v61  ;;  %v534_v33 = vrot.slane %v532_v11, 4 }
  0x3e   : > { %v2217_v62 = vrot.slane %v2216_v1, 4  ;;  %v546_v60 = vshrl.u32 %v7927_v49, 16  ;;  %v549_v54 = vshll.u32 %v7927_v49, 16  ;;  %v543_v20 = vrot.slane %v541_v23, 5 }
  0x3f   : > { %6719 = vmatpush3.bf16.msra.mxu0 %v7315_v27  ;;  %v7320_v27 = vld [vmem:[%s9208_s3 + $0x20] sm:$0xff]   ;;  %9221 = vst [vmem:[#allocation5_spill] sm:$0xff] %v7952_v42  ;;  %v2203_v63 = vrot.slane %v2202_v2, 4  ;;  %6400 = vmatprep.mubr.bf16.mxu1 %v7952_v42  ;;  %v537_v25 = vrot.slane %v535_v22, 5  ;;  %v555_v1 = vshll.u32 %v7941_v8, 16  ;;  %v2417_v22 = vrot.slane %v7832_v35, 5 }
  0x40   : > { %6720 = vmatprep.subr.bf16.mxu0 %v7317_v57  ;;  %v7321_v2 = vld [vmem:[%s9208_s3 + $0x3a0] sm:$0xff]   ;;  %v2222_v11 = vsel %vm7750_vm2, %v2217_v62, %v2221_v40  ;;  %v548_v56 = vrot.slane %v546_v60, 4  ;;  %v551_v29 = vrot.slane %v549_v54, 5  ;;  %6411 = vmatpush3.bf16.msra.mxu1 %v7318_v61  ;;  %v2227_v40 = vshll.u32 %v7945_v21, 16 }
  0x41   : > { %v2208_v45 = vsel %vm7750_vm2, %v2203_v63, %v2207_v30  ;;  %v538_v42 = vor.u32 %v537_v25, %v534_v33  ;;  %v557_v38 = vrot.slane %v555_v1, 5  ;;  %v2224_v30 = vshrl.u32 %v7945_v21, 16  ;;  %6412 = vmatprep.subr.bf16.mxu1 %v7320_v27  ;;  %v7324_v33 = vld [vmem:[%s9208_s3 + $0x30] sm:$0xff]  }
  0x42   : > { %v7977_v24 = vcombine.low %v7879_v26, %v2208_v45  ;;  %v5686_v6 = vcombine.low %v2208_v45, %v2222_v11  ;;  %v552_v63 = vor.u32 %v551_v29, %v548_v56  ;;  %v2233_v26 = vshll.u32 %v7957_v31, 16  ;;  %v7323_v45 = vld [vmem:[%s9208_s3 + $0x3a8] sm:$0xff]  }
  0x43   : > { %6721 = vmatpush3.bf16.msra.mxu0 %v7317_v57  ;;  %v7322_v57 = vld [vmem:[%s9208_s3 + $0x28] sm:$0xff]   ;;  %v2734_v60 = vshrl.u32 %v7960_v32, 16  ;;  %v539_v25 = vrot.slane %v538_v42, 4  ;;  %v2226_v61 = vrot.slane %v2224_v30, 4  ;;  %v2737_v54 = vshll.u32 %v7960_v32, 16 }
  0x44   : > { %6722 = vmatprep.subr.bf16.mxu0 %v7319_v59  ;;  %6712 = vmatprep.mubr.bf16.mxu0 %v5686_v6  ;;  %v2743_v62 = vshll.u32 %v7965_v19, 16  ;;  %v553_v29 = vrot.slane %v552_v63, 4  ;;  %v2229_v56 = vrot.slane %v2227_v40, 5  ;;  %v2235_v42 = vrot.slane %v2233_v26, 5  ;;  %v7325_v40 = vld [vmem:[%s9208_s3 + $0x3b0] sm:$0xff]  }
  0x45   : > { %v2736_v23 = vrot.slane %v2734_v60, 4  ;;  %6413 = vmatpush3.bf16.msra.mxu1 %v7320_v27  ;;  %v7997_v6 = vsel %vm7750_vm2, %v539_v25, %v543_v20  ;;  %v2739_v1 = vrot.slane %v2737_v54, 5  ;;  %v5606_v63 = vrot.slane %v7771_v51, 9 }
  0x46   : > { %6414 = vmatprep.subr.bf16.mxu1 %v7322_v57  ;;  %v8008_v27 = vsel %vm7750_vm2, %v553_v29, %v557_v38  ;;  %v2230_v30 = vor.u32 %v2229_v56, %v2226_v61  ;;  %v5607_v20 = vrot.slane %v7792_v58, 9  ;;  %v5339_v25 = vcombine.low %v7709_v12, %v7715_v14  ;;  %v7326_v61 = vld [vmem:[%s9208_s3 + $0x38] sm:$0xff]  }
  0x47   : > { %6723 = vmatpush3.bf16.msra.mxu0 %v7319_v59  ;;  %v5605_v59 = vrot.slane %v7758_v44, 9  ;;  %v8017_v26 = vcombine.low %v7997_v6, %v8008_v27  ;;  %v2740_v60 = vor.u32 %v2739_v1, %v2736_v23  ;;  %v2745_v44 = vrot.slane %v2743_v62, 5 }
  0x48   : > { %6724 = vmatprep.subr.bf16.mxu0 %v7321_v2  ;;  %v2231_v38 = vrot.slane %v2230_v30, 4  ;;  %v9224_v54 = vrot.slane %v7768_v50, 5  ;;  %v9225_v56 = vrot.slane %v7778_v53, 5  ;;  %v5608_v50 = vrot.slane %v7822_v28, 9 }
  0x49   : > { %6415 = vmatpush3.bf16.msra.mxu1 %v7322_v57  ;;  %v2741_v23 = vrot.slane %v2740_v60, 4  ;;  %v5609_v60 = vrot.slane %v7891_v39, 9 }
  0x4a   : > { %v8028_v29 = vsel %vm8001_vm5, %v5605_v59, %v9224_v54  ;;  %v2410_v62 = vsel %vm8001_vm5, %v5606_v63, %v9225_v56  ;;  %6416 = vmatprep.subr.bf16.mxu1 %v7324_v33  ;;  %6401 = vmatmul.mubr.bf16.gmra.mrb[4].mxu1 %v8017_v26  ;;  %v2236_v53 = vsel %vm7750_vm2, %v2231_v38, %v2235_v42  ;;  %v859_v63 = vrot.slane %v7718_v15, 5  ;;  %v7329_v15 = vld [vmem:[%s9208_s3 + $0x80] sm:$0xff]  }
  0x4b   : > { %6725 = vmatpush3.bf16.msra.mxu0 %v7321_v2  ;;  %v9226_v2 = vrot.slane %v7804_v0, 5  ;;  %v8049_v57 = vsel %vm7750_vm2, %v2741_v23, %v2745_v44  ;;  %6420 = vmatprep.mubr.bf16.mxu1 %v5339_v25  ;;  %v5713_v0 = vcombine.low %v8028_v29, %v2410_v62  ;;  %v8052_v30 = vcombine.low %v2222_v11, %v2236_v53  ;;  %v7327_v44 = vld [vmem:[%s9208_s3 + $0x3b8] sm:$0xff]  }
  0x4c   : > { %6726 = vmatprep.subr.bf16.mxu0 %v7323_v45  ;;  %v5433_v42 = vcombine.low %v7936_v36, %v7997_v6  ;;  %v2421_v25 = vrot.slane %v7894_v43, 5  ;;  %v5610_v11 = vrot.slane %v7897_v46, 9  ;;  %v2425_v54 = vrot.slane %v7903_v48, 5 }
  0x4d   : > { %v8038_v1 = vsel %vm8001_vm5, %v5607_v20, %v9226_v2  ;;  %v5687_v20 = vcombine.low %v2236_v53, %v8049_v57  ;;  %6417 = vmatpush3.bf16.msra.mxu1 %v7324_v33  ;;  %v2418_v33 = vsel %vm8001_vm5, %v5608_v50, %v2417_v22  ;;  %v8075_v43 = vcombine.low %v7721_v16, %v7812_v7  ;;  %v7330_v22 = vld [vmem:[%s9208_s3 + $0x3c0] sm:$0xff]  }
  0x4e   : > { %v8045_v59 = vcombine.low %v2410_v62, %v8038_v1  ;;  %6418 = vmatprep.subr.bf16.mxu1 %v7326_v61  ;;  %v2422_v38 = vsel %vm8001_vm5, %v5609_v60, %v2421_v25  ;;  %v5611_v62 = vrot.slane %v7945_v21, 9  ;;  %v867_v23 = vrot.slane %v7816_v18, 5 }
  0x4f   : > { %6727 = vmatpush3.bf16.msra.mxu0 %v7323_v45  ;;  %v863_v45 = vrot.slane %v7724_v17, 5  ;;  %v8077_v56 = vcombine.low %v2418_v33, %v2422_v38  ;;  %v2429_v17 = vrot.slane %v7957_v31, 5  ;;  %v2426_v48 = vsel %vm8001_vm5, %v5610_v11, %v2425_v54 }
  0x50   : > { %6728 = vmatprep.subr.bf16.mxu0 %v7325_v40  ;;  %6713 = vmatmul.mubr.bf16.gmra.mrb[4].mxu0 %v5687_v20  ;;  %v8092_v2 = vcombine.low %v7853_v4, %v7863_v9  ;;  %v5351_v31 = vrot.slane %v7709_v12, 9  ;;  %v5696_v50 = vrot.slane %v7960_v32, 9  ;;  %v5352_v53 = vrot.slane %v7715_v14, 9 }
  0x51   : > { %6732 = vmatprep.mubr.bf16.mxu0 %v5713_v0  ;;  %6419 = vmatpush3.bf16.msra.mxu1 %v7326_v61  ;;  %v2430_v18 = vsel %vm8001_vm5, %v5611_v62, %v2429_v17  ;;  %v5714_v61 = vcombine.low %v8038_v1, %v2418_v33  ;;  %v5715_v20 = vcombine.low %v2422_v38, %v2426_v48  ;;  %v2897_v60 = vrot.slane %v7965_v19, 5  ;;  %v7333_v1 = vld [vmem:[%s9208_s3 + $0x3c8] sm:$0xff]  }
  0x52   : > { %6428 = vmatprep.subr.bf16.mxu1 %v7329_v15  ;;  %v8100_v0 = vcombine.low %v2426_v48, %v2430_v18  ;;  %v9227_v25 = vrot.slane %v7712_v13, 5  ;;  %v5353_v12 = vrot.slane %v7721_v16, 9  ;;  %v5354_v33 = vrot.slane %v7812_v7, 9  ;;  %v7334_v13 = vld [vmem:[%s9208_s3 + $0x90] sm:$0xff]  }
  0x53   : > { %6729 = vmatpush3.bf16.msra.mxu0 %v7325_v40  ;;  %v7332_v40 = vld [vmem:[%s9208_s3 + $0x88] sm:$0xff]   ;;  %v5355_v38 = vrot.slane %v7853_v4, 9  ;;  %v871_v54 = vrot.slane %v7856_v5, 5  ;;  %v8136_v17 = vcombine.low %v7917_v34, %v7927_v49  ;;  %v7335_v5 = vld [vmem:[%s9208_s3 + $0x3d0] sm:$0xff]  }
  0x54   : > { %6730 = vmatprep.subr.bf16.mxu0 %v7327_v44  ;;  %6421 = vmatmul.mubr.bf16.vlgmr.msra.gmra.mrb[0].mxu1 %v8075_v43  ;;  %v856_v11 = vsel %vm8001_vm5, %v5351_v31, %v9227_v25  ;;  %v875_v25 = vrot.slane %v7866_v10, 5 }
  0x55   : > { %6429 = vmatpush3.bf16.msra.mxu1 %v7329_v15  ;;  %6424 = vmatprep.mubr.bf16.mxu1 %v8092_v2  ;;  %v8124_v15 = vsel %vm8001_vm5, %v5353_v12, %v863_v45  ;;  %v8140_v45 = vsel %vm8001_vm5, %v5696_v50, %v2897_v60  ;;  %v7337_v50 = vld [vmem:[%s9208_s3 + $0x3d8] sm:$0xff]   ;;  %v5356_v60 = vrot.slane %v7863_v9, 9  ;;  %v879_v12 = vrot.slane %v7924_v41, 5 }
  0x56   : > { %6430 = vmatprep.subr.bf16.mxu1 %v7332_v40 }
  0x57   : > { %6731 = vmatpush3.bf16.msra.mxu0 %v7327_v44  ;;  %v8114_v44 = vsel %vm8001_vm5, %v5352_v53, %v859_v63  ;;  %v8129_v63 = vsel %vm8001_vm5, %v5354_v33, %v867_v23  ;;  %v8151_v23 = vsel %vm8001_vm5, %v5355_v38, %v871_v54  ;;  %v7338_v53 = vld [vmem:[%s9208_s3 + $0xa0] sm:$0xff]   ;;  %v7346_v33 = vld [vmem:[%s9208_s3 + $0xb8] sm:$0xff]  }
  0x58   : > { %6740 = vmatprep.subr.bf16.mxu0 %v7330_v22  ;;  %v5375_v19 = vcombine.low %v856_v11, %v8114_v44  ;;  %v5460_v62 = vcombine.low %v8114_v44, %v8124_v15  ;;  %v8144_v48 = vcombine.low %v8124_v15, %v8129_v63  ;;  %v5461_v31 = vcombine.low %v8129_v63, %v8151_v23  ;;  %v7348_v38 = vld [vmem:[%s9208_s3 + $0xc0] sm:$0xff]   ;;  %v7398_v44 = vld [vmem:[%s9208_s3 + $0x168] sm:$0xff]   ;;  %v8574_v63 = vld [vmem:[%s8325_s20 + $0x38] sm:$0xf] }
  0x59   : > { %6431 = vmatpush3.bf16.msra.mxu1 %v7332_v40  ;;  %v8162_v40 = vcombine.low %v7771_v51, %v7792_v58  ;;  %v7339_v51 = vld [vmem:[%s9208_s3 + $0x3e0] sm:$0xff]   ;;  %v7340_v58 = vld [vmem:[%s9208_s3 + $0xa8] sm:$0xff]   ;;  %v5357_v11 = vrot.slane %v7917_v34, 9 }
  0x5a   : > { %6733 = vmatmul.mubr.bf16.vlgmr.msra.gmra.mrb[0].mxu0 %v5714_v61  ;;  %6432 = vmatprep.subr.bf16.mxu1 %v7334_v13  ;;  %v5716_v61 = vcombine.low %v2430_v18, %v8140_v45  ;;  %v7341_v18 = vld [vmem:[%s9208_s3 + $0x3e8] sm:$0xff]   ;;  %v7350_v54 = vld [vmem:[%s9208_s3 + $0x400] sm:$0xff]  }
  0x5b   : > { %6741 = vmatpush3.bf16.msra.mxu0 %v7330_v22  ;;  %6736 = vmatprep.mubr.bf16.mxu0 %v5715_v20  ;;  %v7336_v22 = vld [vmem:[%s9208_s3 + $0x98] sm:$0xff]   ;;  %v7343_v20 = vld [vmem:[%s9208_s3 + $0xb0] sm:$0xff]   ;;  %v8199_v10 = vsel %vm8001_vm5, %v5357_v11, %v879_v12  ;;  %v9228_v11 = vcombine.low %v7715_v14, %v7721_v16  ;;  %v7360_v12 = vld [vmem:[%s9208_s3 + $0xe8] sm:$0xff]  }
  0x5c   : > { %6742 = vmatprep.subr.bf16.mxu0 %v7333_v1  ;;  %6425 = vmatmul.mubr.bf16.gmra.mrb[4].mxu1 %v8136_v17  ;;  %v7361_v14 = vld [vmem:[%s9208_s3 + $0x428] sm:$0xff]   ;;  %v7362_v16 = vld [vmem:[%s9208_s3 + $0xf0] sm:$0xff]  }
  0x5d   : > { %6433 = vmatpush3.bf16.msra.mxu1 %v7334_v13  ;;  %6444 = vmatprep.mubr.bf16.mxu1 %v5375_v19  ;;  %v8195_v13 = vsel %vm8001_vm5, %v5356_v60, %v875_v25  ;;  %v7347_v19 = vld [vmem:[%s9208_s3 + $0x3f8] sm:$0xff]   ;;  %v7358_v25 = vld [vmem:[%s9208_s3 + $0xe0] sm:$0xff]  }
  0x5e   : > { %6434 = vmatprep.subr.bf16.mxu1 %v7336_v22  ;;  %v5462_v41 = vcombine.low %v8195_v13, %v8199_v10  ;;  %v7357_v60 = vld [vmem:[%s9208_s3 + $0x418] sm:$0xff]  }
  0x5f   : > { %6743 = vmatpush3.bf16.msra.mxu0 %v7333_v1  ;;  %v7344_v1 = vld [vmem:[%s9208_s3 + $0x3f0] sm:$0xff]  }
  0x60   : > { %6744 = vmatprep.subr.bf16.mxu0 %v7335_v5 }
  0x61   : > { %6435 = vmatpush3.bf16.msra.mxu1 %v7336_v22  ;;  %v883_v22 = vrot.slane %v7941_v8, 5  ;;  %v8228_v8 = vcombine.low %v7897_v46, %v7945_v21  ;;  %v8248_v46 = vld [vmem:[%s7745_s13 + $0x48] sm:$0xf]  ;;  %v7355_v21 = vld [vmem:[%s9208_s3 + $0x410] sm:$0xff]  }
  0x62   : > { %6737 = vmatmul.mubr.bf16.gmra.mrb[4].mxu0 %v5716_v61  ;;  %6436 = vmatprep.subr.bf16.mxu1 %v7338_v53  ;;  %v7352_v61 = vld [vmem:[%s9208_s3 + $0xc8] sm:$0xff]  }
  0x63   : > { %6745 = vmatpush3.bf16.msra.mxu0 %v7335_v5  ;;  %6756 = vmatprep.mubr.bf16.mxu0 %v8162_v40  ;;  %v5358_v5 = vrot.slane %v7927_v49, 9 }
  0x64   : > { %6746 = vmatprep.subr.bf16.mxu0 %v7337_v50 }
  0x65   : > { %6437 = vmatpush3.bf16.msra.mxu1 %v7338_v53  ;;  %v8223_v53 = vcombine.low %v7822_v28, %v7891_v39  ;;  %v7354_v28 = vld [vmem:[%s9208_s3 + $0xd0] sm:$0xff]  }
  0x66   : > { %6438 = vmatprep.subr.bf16.mxu1 %v7340_v58 }
  0x67   : > { %6747 = vmatpush3.bf16.msra.mxu0 %v7337_v50  ;;  %v8219_v50 = vcombine.low %v8151_v23, %v8195_v13  ;;  %v7411_v23 = vld [vmem:[%s9208_s3 + $0x4d0] sm:$0xff]  }
  0x68   : > { %6748 = vmatprep.subr.bf16.mxu0 %v7339_v51 }
  0x69   : > { %6439 = vmatpush3.bf16.msra.mxu1 %v7340_v58  ;;  %v8235_v58 = vsel %vm8001_vm5, %v5358_v5, %v883_v22 }
  0x6a   : > { %6440 = vmatprep.subr.bf16.mxu1 %v7343_v20  ;;  %v8245_v39 = vcombine.low %v8199_v10, %v8235_v58 }
  0x6b   : > { %6749 = vmatpush3.bf16.msra.mxu0 %v7339_v51  ;;  %v7353_v51 = vld [vmem:[%s9208_s3 + $0x408] sm:$0xff]  }
  0x6c   : > { %6750 = vmatprep.subr.bf16.mxu0 %v7341_v18 }
  0x6d   : > { %6441 = vmatpush3.bf16.msra.mxu1 %v7343_v20  ;;  %v5741_v20 = vcombine.low %v7960_v32, %v8248_v46  ;;  %v7359_v32 = vld [vmem:[%s9208_s3 + $0x420] sm:$0xff]  }
  0x6e   : > { %6442 = vmatprep.subr.bf16.mxu1 %v7346_v33 }
  0x6f   : > { %6751 = vmatpush3.bf16.msra.mxu0 %v7341_v18  ;;  %v7356_v18 = vld [vmem:[%s9208_s3 + $0xd8] sm:$0xff]  }
  0x70   : > { %6752 = vmatprep.subr.bf16.mxu0 %v7344_v1 }
  0x71   : > { %6443 = vmatpush3.bf16.msra.mxu1 %v7346_v33  ;;  %v3192_v33 = vshll.u32 %v8248_v46, 16 }
  0x72   : > { %6452 = vmatprep.subr.bf16.mxu1 %v7348_v38 }
  0x73   : > { %6753 = vmatpush3.bf16.msra.mxu0 %v7344_v1  ;;  %v3189_v1 = vshrl.u32 %v8248_v46, 16  ;;  %v3194_v22 = vrot.slane %v3192_v33, 5 }
  0x74   : > { %6754 = vmatprep.subr.bf16.mxu0 %v7347_v19  ;;  %6445 = vmatmul.mubr.bf16.vlgmr.msra.gmra.mrb[0].mxu1 %v8144_v48 }
  0x75   : > { %6453 = vmatpush3.bf16.msra.mxu1 %v7348_v38  ;;  %6448 = vmatprep.mubr.bf16.mxu1 %v8219_v50  ;;  %v7366_v38 = vld [vmem:[%s9208_s3 + $0xf8] sm:$0xff]   ;;  %v3191_v5 = vrot.slane %v3189_v1, 4 }
  0x76   : > { %6454 = vmatprep.subr.bf16.mxu1 %v7352_v61  ;;  %v7376_v1 = vld [vmem:[%s9208_s3 + $0x118] sm:$0xff]  }
  0x77   : > { %6755 = vmatpush3.bf16.msra.mxu0 %v7347_v19  ;;  %v7364_v19 = vld [vmem:[%s9208_s3 + $0x430] sm:$0xff]  }
  0x78   : > { %6764 = vmatprep.subr.bf16.mxu0 %v7350_v54 }
  0x79   : > { %6455 = vmatpush3.bf16.msra.mxu1 %v7352_v61  ;;  %v8294_v61 = vld [vmem:[%s7745_s13 + $0x4c] sm:$0x1] }
  0x7a   : > { %6757 = vmatmul.mubr.bf16.vlgmr.msra.gmra.mrb[0].mxu0 %v8223_v53  ;;  %6456 = vmatprep.subr.bf16.mxu1 %v7354_v28 }
  0x7b   : > { %6765 = vmatpush3.bf16.msra.mxu0 %v7350_v54  ;;  %6760 = vmatprep.mubr.bf16.mxu0 %v8228_v8  ;;  %v7367_v54 = vld [vmem:[%s9208_s3 + $0x438] sm:$0xff]  }
  0x7c   : > { %6766 = vmatprep.subr.bf16.mxu0 %v7353_v51  ;;  %6449 = vmatmul.mubr.bf16.gmra.mrb[4].mxu1 %v8245_v39 }
  0x7d   : > { %6457 = vmatpush3.bf16.msra.mxu1 %v7354_v28  ;;  %6468 = vmatprep.mubr.bf16.mxu1 %v9228_v11  ;;  %v3195_v28 = vor.u32 %v3194_v22, %v3191_v5  ;;  %v7378_v5 = vld [vmem:[%s9208_s3 + $0x120] sm:$0xff]  }
  0x7e   : > { %6458 = vmatprep.subr.bf16.mxu1 %v7356_v18 }
  0x7f   : > { %6767 = vmatpush3.bf16.msra.mxu0 %v7353_v51  ;;  %v7369_v51 = vld [vmem:[%s9208_s3 + $0x100] sm:$0xff]   ;;  %v3196_v11 = vrot.slane %v3195_v28, 4 }
  0x80   : > { %6768 = vmatprep.subr.bf16.mxu0 %v7355_v21 }
  0x81   : > { %6459 = vmatpush3.bf16.msra.mxu1 %v7356_v18  ;;  %v7370_v18 = vld [vmem:[%s9208_s3 + $0x440] sm:$0xff]  }
  0x82   : > { %6761 = vmatmul.mubr.bf16.gmra.mrb[4].mxu0 %v5741_v20  ;;  %6460 = vmatprep.subr.bf16.mxu1 %v7358_v25  ;;  %v7372_v20 = vld [vmem:[%s9208_s3 + $0x108] sm:$0xff]  }
  0x83   : > { %6769 = vmatpush3.bf16.msra.mxu0 %v7355_v21  ;;  %6780 = vmatprep.mubr.bf16.mxu0 %v7841_v47  ;;  %v3198_v21 = vshll.u32 %v8294_v61, 16 }
  0x84   : > { %6770 = vmatprep.subr.bf16.mxu0 %v7357_v60 }
  0x85   : > { %6461 = vmatpush3.bf16.msra.mxu1 %v7358_v25  ;;  %v7373_v25 = vld [vmem:[%s9208_s3 + $0x448] sm:$0xff]  }
  0x86   : > { %6462 = vmatprep.subr.bf16.mxu1 %v7360_v12 }
  0x87   : > { %6771 = vmatpush3.bf16.msra.mxu0 %v7357_v60  ;;  %v9229_v60 = vcombine.low %v7812_v7, %v7853_v4  ;;  %v7375_v7 = vld [vmem:[%s9208_s3 + $0x450] sm:$0xff]  }
  0x88   : > { %6772 = vmatprep.subr.bf16.mxu0 %v7359_v32 }
  0x89   : > { %6463 = vmatpush3.bf16.msra.mxu1 %v7360_v12  ;;  %v8314_v12 = vld [vmem:[%s7696_s17 + $0x40] sm:$0xf] }
  0x8a   : > { %6464 = vmatprep.subr.bf16.mxu1 %v7362_v16  ;;  %v5406_v4 = vcombine.low %v7927_v49, %v8314_v12  ;;  %v8346_v49 = vld [vmem:[%s8325_s20 + $0x20] sm:$0xf]  ;;  %v5443_v15 = vrot.slane %v8314_v12, 9 }
  0x8b   : > { %6773 = vmatpush3.bf16.msra.mxu0 %v7359_v32  ;;  %v3200_v32 = vrot.slane %v3198_v21, 5  ;;  %v3728_v22 = vshrl.u32 %v8346_v49, 16  ;;  %v7379_v21 = vld [vmem:[%s9208_s3 + $0x460] sm:$0xff]  }
  0x8c   : > { %6774 = vmatprep.subr.bf16.mxu0 %v7361_v14 }
  0x8d   : > { %6465 = vmatpush3.bf16.msra.mxu1 %v7362_v16  ;;  %v9230_v16 = vcombine.low %v7863_v9, %v7917_v34  ;;  %v3201_v9 = vsel %vm7750_vm2, %v3196_v11, %v3200_v32  ;;  %v8337_v34 = vld [vmem:[%s8325_s20 + $0x18] sm:$0xf]  ;;  %v1188_v32 = vshrl.u32 %v8314_v12, 16 }
  0x8e   : > { %6466 = vmatprep.subr.bf16.mxu1 %v7366_v38  ;;  %v3714_v33 = vshrl.u32 %v8337_v34, 16 }
  0x8f   : > { %6775 = vmatpush3.bf16.msra.mxu0 %v7361_v14  ;;  %v7374_v14 = vld [vmem:[%s9208_s3 + $0x110] sm:$0xff]  }
  0x90   : > { %6776 = vmatprep.subr.bf16.mxu0 %v7364_v19 }
  0x91   : > { %6467 = vmatpush3.bf16.msra.mxu1 %v7366_v38  ;;  %v5766_v38 = vcombine.low %v8049_v57, %v3201_v9  ;;  %v9231_v57 = vcombine.low %v7775_v52, %v7783_v55  ;;  %v7380_v52 = vld [vmem:[%s9208_s3 + $0x128] sm:$0xff]   ;;  %v3498_v9 = vld [vmem:[%s8325_s20 + $0x24] sm:$0x1] }
  0x92   : > { %6476 = vmatprep.subr.bf16.mxu1 %v7369_v51 }
  0x93   : > { %6777 = vmatpush3.bf16.msra.mxu0 %v7364_v19  ;;  %v3717_v19 = vshll.u32 %v8337_v34, 16 }
  0x94   : > { %6778 = vmatprep.subr.bf16.mxu0 %v7367_v54  ;;  %6469 = vmatmul.mubr.bf16.vlgmr.msra.gmra.mrb[0].mxu1 %v9229_v60  ;;  %v3731_v60 = vshll.u32 %v8346_v49, 16 }
  0x95   : > { %6477 = vmatpush3.bf16.msra.mxu1 %v7369_v51  ;;  %6472 = vmatprep.mubr.bf16.mxu1 %v9230_v16  ;;  %v3716_v51 = vrot.slane %v3714_v33, 4  ;;  %v3719_v28 = vrot.slane %v3717_v19, 5  ;;  %v7381_v16 = vld [vmem:[%s9208_s3 + $0x468] sm:$0xff]  }
  0x96   : > { %6478 = vmatprep.subr.bf16.mxu1 %v7372_v20  ;;  %v3733_v11 = vrot.slane %v3731_v60, 5 }
  0x97   : > { %6779 = vmatpush3.bf16.msra.mxu0 %v7367_v54  ;;  %v7377_v54 = vld [vmem:[%s9208_s3 + $0x458] sm:$0xff]   ;;  %v3720_v55 = vor.u32 %v3719_v28, %v3716_v51 }
  0x98   : > { %6788 = vmatprep.subr.bf16.mxu0 %v7370_v18  ;;  %v7386_v28 = vld [vmem:[%s9208_s3 + $0x138] sm:$0xff]  }
  0x99   : > { %6479 = vmatpush3.bf16.msra.mxu1 %v7372_v20  ;;  %v3730_v20 = vrot.slane %v3728_v22, 4 }
  0x9a   : > { %6781 = vmatmul.mubr.bf16.vlgmr.msra.gmra.mrb[0].mxu0 %v7977_v24  ;;  %6480 = vmatprep.subr.bf16.mxu1 %v7374_v14 }
  0x9b   : > { %6789 = vmatpush3.bf16.msra.mxu0 %v7370_v18  ;;  %6784 = vmatprep.mubr.bf16.mxu0 %v8052_v30  ;;  %v8363_v18 = vld [vmem:[%s8325_s20 + $0x1c] sm:$0x1] }
  0x9c   : > { %6790 = vmatprep.subr.bf16.mxu0 %v7373_v25  ;;  %6473 = vmatmul.mubr.bf16.gmra.mrb[4].mxu1 %v5406_v4  ;;  %v7383_v4 = vld [vmem:[%s9208_s3 + $0x130] sm:$0xff]  }
  0x9d   : > { %6481 = vmatpush3.bf16.msra.mxu1 %v7374_v14  ;;  %6492 = vmatprep.mubr.bf16.mxu1 %v9231_v57  ;;  %v1191_v14 = vshll.u32 %v8314_v12, 16  ;;  %v8383_v57 = vld [vmem:[%s7696_s17 + $0x44] sm:$0x1] }
  0x9e   : > { %6482 = vmatprep.subr.bf16.mxu1 %v7376_v1 }
  0x9f   : > { %6791 = vmatpush3.bf16.msra.mxu0 %v7373_v25  ;;  %v3723_v25 = vshll.u32 %v8363_v18, 16  ;;  %v1193_v22 = vrot.slane %v1191_v14, 5  ;;  %v7390_v14 = vld [vmem:[%s9208_s3 + $0x148] sm:$0xff]  }
  0xa0   : > { %6792 = vmatprep.subr.bf16.mxu0 %v7375_v7 }
  0xa1   : > { %6483 = vmatpush3.bf16.msra.mxu1 %v7376_v1  ;;  %v3721_v1 = vrot.slane %v3720_v55, 4  ;;  %v3725_v33 = vrot.slane %v3723_v25, 5  ;;  %v7387_v25 = vld [vmem:[%s9208_s3 + $0x478] sm:$0xff]  }
  0xa2   : > { %6785 = vmatmul.mubr.bf16.gmra.mrb[4].mxu0 %v5766_v38  ;;  %6484 = vmatprep.subr.bf16.mxu1 %v7378_v5  ;;  %v3737_v38 = vshll.u32 %v3498_v9, 16 }
  0xa3   : > { %6793 = vmatpush3.bf16.msra.mxu0 %v7375_v7  ;;  %6804 = vmatprep.mubr.bf16.mxu0 %v8045_v59  ;;  %v3734_v7 = vor.u32 %v3733_v11, %v3730_v20  ;;  %v8390_v20 = vsel %vm7750_vm2, %v3721_v1, %v3725_v33  ;;  %v7388_v11 = vld [vmem:[%s9208_s3 + $0x140] sm:$0xff]   ;;  %v8415_v1 = vld [vmem:[%s8325_s20 + $0x10] sm:$0xf]  ;;  %v5860_v33 = vrot.slane %v8337_v34, 9 }
  0xa4   : > { %6794 = vmatprep.subr.bf16.mxu0 %v7377_v54  ;;  %v3739_v51 = vrot.slane %v3737_v38, 5  ;;  %v5775_v38 = vrot.slane %v8248_v46, 9 }
  0xa5   : > { %6485 = vmatpush3.bf16.msra.mxu1 %v7378_v5  ;;  %v3735_v19 = vrot.slane %v3734_v7, 4  ;;  %v7384_v5 = vld [vmem:[%s9208_s3 + $0x470] sm:$0xff]  }
  0xa6   : > { %6486 = vmatprep.subr.bf16.mxu1 %v7380_v52 }
  0xa7   : > { %6795 = vmatpush3.bf16.msra.mxu0 %v7377_v54  ;;  %v1190_v54 = vrot.slane %v1188_v32, 4  ;;  %v7389_v32 = vld [vmem:[%s9208_s3 + $0x480] sm:$0xff]  }
  0xa8   : > { %6796 = vmatprep.subr.bf16.mxu0 %v7379_v21 }
  0xa9   : > { %6487 = vmatpush3.bf16.msra.mxu1 %v7380_v52  ;;  %v1194_v60 = vor.u32 %v1193_v22, %v1190_v54  ;;  %v1197_v52 = vshll.u32 %v8383_v57, 16  ;;  %v5861_v54 = vrot.slane %v8346_v49, 9  ;;  %v9232_v22 = vld [vmem:[#allocation4_spill] sm:$0xff] }
  0xaa   : > { %6488 = vmatprep.subr.bf16.mxu1 %v7383_v4 }
  0xab   : > { %6797 = vmatpush3.bf16.msra.mxu0 %v7379_v21  ;;  %v8394_v21 = vsel %vm7750_vm2, %v3735_v19, %v3739_v51  ;;  %v1199_v7 = vrot.slane %v1197_v52, 5  ;;  %v3959_v19 = vrot.slane %v8363_v18, 5  ;;  %v3346_v51 = vrot.slane %v8294_v61, 5  ;;  %v7391_v18 = vld [vmem:[%s9208_s3 + $0x488] sm:$0xff]   ;;  %v7392_v61 = vld [vmem:[%s9208_s3 + $0x150] sm:$0xff]  }
  0xac   : > { %6798 = vmatprep.subr.bf16.mxu0 %v7381_v16 }
  0xad   : > { %6489 = vmatpush3.bf16.msra.mxu1 %v7383_v4  ;;  %v8412_v4 = vld [vmem:[%s8325_s20 + $0x8] sm:$0xf]  ;;  %v3347_v6 = vsel %vm8001_vm5, %v5775_v38, %v3346_v51  ;;  %v3700_v38 = vshrl.u32 %v8415_v1, 16 }
  0xae   : > { %6490 = vmatprep.subr.bf16.mxu1 %v7386_v28 }
  0xaf   : > { %6799 = vmatpush3.bf16.msra.mxu0 %v7381_v16  ;;  %v1195_v16 = vrot.slane %v1194_v60, 4  ;;  %v5909_v60 = vcombine.low %v8412_v4, %v8415_v1 }
  0xb0   : > { %6800 = vmatprep.subr.bf16.mxu0 %v7384_v5 }
  0xb1   : > { %6491 = vmatpush3.bf16.msra.mxu1 %v7386_v28  ;;  %v3963_v28 = vrot.slane %v3498_v9, 5  ;;  %v8432_v46 = vsel %vm7750_vm2, %v1195_v16, %v1199_v7  ;;  %v8444_v9 = vsel %vm8001_vm5, %v5860_v33, %v3959_v19  ;;  %v5792_v16 = vcombine.low %v8140_v45, %v3347_v6  ;;  %v7397_v45 = vld [vmem:[%s9208_s3 + $0x4a0] sm:$0xff]   ;;  %v8502_v6 = vld [vmem:[%s8325_s20 + $0x14] sm:$0x1] }
  0xb2   : > { %6500 = vmatprep.subr.bf16.mxu1 %v7388_v11  ;;  %v5434_v36 = vcombine.low %v8008_v27, %v8432_v46  ;;  %v7395_v27 = vld [vmem:[%s9208_s3 + $0x498] sm:$0xff]   ;;  %v3686_v33 = vshrl.u32 %v8412_v4, 16  ;;  %v3689_v19 = vshll.u32 %v8412_v4, 16 }
  0xb3   : > { %6801 = vmatpush3.bf16.msra.mxu0 %v7384_v5  ;;  %v9233_v5 = vcombine.low %v7850_v3, %v9232_v22  ;;  %v8448_v52 = vsel %vm8001_vm5, %v5861_v54, %v3963_v28  ;;  %v3703_v54 = vshll.u32 %v8415_v1, 16  ;;  %v7408_v3 = vld [vmem:[%s9208_s3 + $0x188] sm:$0xff]  }
  0xb4   : > { %6802 = vmatprep.subr.bf16.mxu0 %v7387_v25  ;;  %v3688_v51 = vrot.slane %v3686_v33, 4  ;;  %v3691_v28 = vrot.slane %v3689_v19, 5 }
  0xb5   : > { %6493 = vmatmul.mubr.bf16.vlgmr.msra.gmra.mrb[0].mxu1 %v9233_v5  ;;  %v7399_v5 = vld [vmem:[%s9208_s3 + $0x4a8] sm:$0xff]  }
  0xb6   : > { %6501 = vmatpush3.bf16.msra.mxu1 %v7388_v11  ;;  %6496 = vmatprep.mubr.bf16.mxu1 %v5433_v42  ;;  %v7393_v11 = vld [vmem:[%s9208_s3 + $0x490] sm:$0xff]   ;;  %v8462_v42 = vld [vmem:[%s8325_s20] sm:$0xf]  ;;  %v3692_v33 = vor.u32 %v3691_v28, %v3688_v51 }
  0xb7   : > { %6803 = vmatpush3.bf16.msra.mxu0 %v7387_v25  ;;  %6502 = vmatprep.subr.bf16.mxu1 %v7390_v14  ;;  %v5817_v7 = vcombine.low %v8462_v42, %v8412_v4  ;;  %v3675_v22 = vshll.u32 %v8462_v42, 16  ;;  %v8514_v25 = vld [vmem:[%s8325_s20 + $0x28] sm:$0xf] }
  0xb8   : > { %6812 = vmatprep.subr.bf16.mxu0 %v7389_v32  ;;  %v3693_v28 = vrot.slane %v3692_v33, 4  ;;  %v7409_v33 = vld [vmem:[%s9208_s3 + $0x4c8] sm:$0xff]  }
  0xba   : > { %6805 = vmatmul.mubr.bf16.vlgmr.msra.gmra.mrb[0].mxu0 %v8077_v56  ;;  %6503 = vmatpush3.bf16.msra.mxu1 %v7390_v14  ;;  %v7396_v14 = vld [vmem:[%s9208_s3 + $0x160] sm:$0xff]  }
  0xbb   : > { %6813 = vmatpush3.bf16.msra.mxu0 %v7389_v32  ;;  %6808 = vmatprep.mubr.bf16.mxu0 %v8100_v0  ;;  %v7394_v32 = vld [vmem:[%s9208_s3 + $0x158] sm:$0xff]  }
  0xbc   : > { %6814 = vmatprep.subr.bf16.mxu0 %v7391_v18  ;;  %6504 = vmatprep.subr.bf16.mxu1 %v7392_v61 }
  0xbd   : > { %6497 = vmatmul.mubr.bf16.gmra.mrb[4].mxu1 %v5434_v36  ;;  %v8499_v36 = vld [vmem:[%s8325_s20 + $0xc] sm:$0x1] }
  0xbe   : > { %6505 = vmatpush3.bf16.msra.mxu1 %v7392_v61  ;;  %6516 = vmatprep.mubr.bf16.mxu1 %v5460_v62  ;;  %v3672_v62 = vshrl.u32 %v8462_v42, 16  ;;  %v3702_v61 = vrot.slane %v3700_v38, 4  ;;  %v3695_v19 = vshll.u32 %v8499_v36, 16 }
  0xbf   : > { %6815 = vmatpush3.bf16.msra.mxu0 %v7391_v18  ;;  %6506 = vmatprep.subr.bf16.mxu1 %v7394_v32  ;;  %v7400_v18 = vld [vmem:[%s9208_s3 + $0x170] sm:$0xff]  }
  0xc0   : > { %6816 = vmatprep.subr.bf16.mxu0 %v7393_v11 }
  0xc2   : > { %6809 = vmatmul.mubr.bf16.gmra.mrb[4].mxu0 %v5792_v16  ;;  %6507 = vmatpush3.bf16.msra.mxu1 %v7394_v32  ;;  %v7401_v32 = vld [vmem:[%s9208_s3 + $0x4b0] sm:$0xff]   ;;  %v1351_v16 = vrot.slane %v8383_v57, 5  ;;  %v7403_v57 = vld [vmem:[%s9208_s3 + $0x4b8] sm:$0xff]  }
  0xc3   : > { %6817 = vmatpush3.bf16.msra.mxu0 %v7393_v11  ;;  %6828 = vmatprep.mubr.bf16.mxu0 %v5817_v7  ;;  %v3705_v11 = vrot.slane %v3703_v54, 5  ;;  %v7402_v7 = vld [vmem:[%s9208_s3 + $0x178] sm:$0xff]   ;;  %v3709_v54 = vshll.u32 %v8502_v6, 16 }
  0xc4   : > { %6818 = vmatprep.subr.bf16.mxu0 %v7395_v27  ;;  %6508 = vmatprep.subr.bf16.mxu1 %v7396_v14 }
  0xc5   : > { %v3706_v38 = vor.u32 %v3705_v11, %v3702_v61  ;;  %v3697_v61 = vrot.slane %v3695_v19, 5  ;;  %v3711_v55 = vrot.slane %v3709_v54, 5  ;;  %v8550_v19 = vcombine.low %v8346_v49, %v8514_v25 }
  0xc6   : > { %6509 = vmatpush3.bf16.msra.mxu1 %v7396_v14  ;;  %v3677_v14 = vrot.slane %v3675_v22, 5  ;;  %v3742_v54 = vshrl.u32 %v8514_v25, 16 }
  0xc7   : > { %6819 = vmatpush3.bf16.msra.mxu0 %v7395_v27  ;;  %6510 = vmatprep.subr.bf16.mxu1 %v7398_v44  ;;  %v3674_v27 = vrot.slane %v3672_v62, 4  ;;  %v8526_v62 = vld [vmem:[%s8325_s20 + $0x4] sm:$0x1]  ;;  %v3707_v11 = vrot.slane %v3706_v38, 4 }
  0xc8   : > { %6820 = vmatprep.subr.bf16.mxu0 %v7397_v45  ;;  %v3744_v13 = vrot.slane %v3742_v54, 4  ;;  %v7416_v54 = vld [vmem:[%s9208_s3 + $0x1a8] sm:$0xff]  }
  0xc9   : > { %v3678_v22 = vor.u32 %v3677_v14, %v3674_v27  ;;  %v3681_v14 = vshll.u32 %v8526_v62, 16 }
  0xca   : > { %6511 = vmatpush3.bf16.msra.mxu1 %v7398_v44  ;;  %v7404_v44 = vld [vmem:[%s9208_s3 + $0x180] sm:$0xff]  }
  0xcb   : > { %6821 = vmatpush3.bf16.msra.mxu0 %v7397_v45  ;;  %6512 = vmatprep.subr.bf16.mxu1 %v7400_v18  ;;  %v8520_v45 = vld [vmem:[%s8325_s20 + $0x30] sm:$0xf]  ;;  %v3679_v27 = vrot.slane %v3678_v22, 4  ;;  %v3683_v38 = vrot.slane %v3681_v14, 5  ;;  %v3745_v22 = vshll.u32 %v8514_v25, 16 }
  0xcc   : > { %6822 = vmatprep.subr.bf16.mxu0 %v7399_v5  ;;  %v5911_v51 = vcombine.low %v8514_v25, %v8520_v45 }
  0xcd   : > { %v3747_v10 = vrot.slane %v3745_v22, 5 }
  0xce   : > { %6513 = vmatpush3.bf16.msra.mxu1 %v7400_v18  ;;  %v8539_v18 = vsel %vm8001_vm5, %v5443_v15, %v1351_v16  ;;  %v8558_v15 = vsel %vm7750_vm2, %v3707_v11, %v3711_v55  ;;  %v7410_v16 = vld [vmem:[%s9208_s3 + $0x190] sm:$0xff]   ;;  %v7412_v55 = vld [vmem:[%s9208_s3 + $0x198] sm:$0xff]   ;;  %v8598_v11 = vld [vmem:[%s8325_s20 + $0x2c] sm:$0x1] }
  0xcf   : > { %6823 = vmatpush3.bf16.msra.mxu0 %v7399_v5  ;;  %6514 = vmatprep.subr.bf16.mxu1 %v7402_v7  ;;  %v7406_v5 = vld [vmem:[%s9208_s3 + $0x4c0] sm:$0xff]   ;;  %v3751_v22 = vshll.u32 %v8598_v11, 16 }
  0xd0   : > { %6824 = vmatprep.subr.bf16.mxu0 %v7401_v32 }
  0xd2   : > { %6515 = vmatpush3.bf16.msra.mxu1 %v7402_v7  ;;  %v8554_v7 = vsel %vm7750_vm2, %v3693_v28, %v3697_v61  ;;  %v8595_v61 = vcombine.low %v8520_v45, %v8574_v63 }
  0xd3   : > { %6825 = vmatpush3.bf16.msra.mxu0 %v7401_v32  ;;  %6524 = vmatprep.subr.bf16.mxu1 %v7404_v44  ;;  %v8543_v32 = vcombine.low %v8415_v1, %v8337_v34 }
  0xd4   : > { %6826 = vmatprep.subr.bf16.mxu0 %v7403_v57 }
  0xd5   : > { %6517 = vmatmul.mubr.bf16.vlgmr.msra.gmra.mrb[0].mxu1 %v5461_v31  ;;  %v5463_v31 = vcombine.low %v8235_v58, %v8539_v18  ;;  %v7413_v58 = vld [vmem:[%s9208_s3 + $0x4d8] sm:$0xff]  }
  0xd6   : > { %6525 = vmatpush3.bf16.msra.mxu1 %v7404_v44  ;;  %6520 = vmatprep.mubr.bf16.mxu1 %v5462_v41  ;;  %v3756_v41 = vshrl.u32 %v8520_v45, 16  ;;  %v3684_v44 = vsel %vm7750_vm2, %v3679_v27, %v3683_v38  ;;  %v8605_v27 = vld [vmem:[%s8325_s20 + $0x34] sm:$0x1] }
  0xd7   : > { %6827 = vmatpush3.bf16.msra.mxu0 %v7403_v57  ;;  %6526 = vmatprep.subr.bf16.mxu1 %v7408_v3  ;;  %v3759_v57 = vshll.u32 %v8520_v45, 16 }
  0xd8   : > { %6836 = vmatprep.subr.bf16.mxu0 %v7406_v5  ;;  %v3758_v14 = vrot.slane %v3756_v41, 4  ;;  %v7418_v41 = vld [vmem:[%s9208_s3 + $0x1b0] sm:$0xff]  }
  0xd9   : > { %v3761_v38 = vrot.slane %v3759_v57, 5 }
  0xda   : > { %6829 = vmatmul.mubr.bf16.vlgmr.msra.gmra.mrb[0].mxu0 %v8543_v32  ;;  %6527 = vmatpush3.bf16.msra.mxu1 %v7408_v3  ;;  %v5845_v3 = vcombine.low %v3684_v44, %v8554_v7  ;;  %v3753_v44 = vrot.slane %v3751_v22, 5 }
  0xdb   : > { %6837 = vmatpush3.bf16.msra.mxu0 %v7406_v5  ;;  %6832 = vmatprep.mubr.bf16.mxu0 %v8550_v19  ;;  %v7414_v5 = vld [vmem:[%s9208_s3 + $0x1a0] sm:$0xff]  }
  0xdc   : > { %6838 = vmatprep.subr.bf16.mxu0 %v7409_v33  ;;  %6528 = vmatprep.subr.bf16.mxu1 %v7410_v16 }
  0xdd   : > { %6521 = vmatmul.mubr.bf16.gmra.mrb[4].mxu1 %v5463_v31  ;;  %v3765_v31 = vshll.u32 %v8605_v27, 16 }
  0xde   : > { %6529 = vmatpush3.bf16.msra.mxu1 %v7410_v16  ;;  %6540 = vmatprep.mubr.bf16.mxu1 %v8075_v43  ;;  %v3748_v16 = vor.u32 %v3747_v10, %v3744_v13  ;;  %v3762_v43 = vor.u32 %v3761_v38, %v3758_v14  ;;  %v7420_v13 = vld [vmem:[%s9208_s3 + $0x4f0] sm:$0xff]   ;;  %v7422_v10 = vld [vmem:[%s9208_s3 + $0x1b8] sm:$0xff]   ;;  %v3773_v14 = vshll.u32 %v8574_v63, 16 }
  0xdf   : > { %6839 = vmatpush3.bf16.msra.mxu0 %v7409_v33  ;;  %6530 = vmatprep.subr.bf16.mxu1 %v7412_v55  ;;  %v7415_v33 = vld [vmem:[%s9208_s3 + $0x4e0] sm:$0xff]   ;;  %v7423_v38 = vld [vmem:[%s9208_s3 + $0x4f8] sm:$0xff]  }
  0xe0   : > { %6840 = vmatprep.subr.bf16.mxu0 %v7411_v23  ;;  %v3749_v57 = vrot.slane %v3748_v16, 4  ;;  %v3775_v16 = vrot.slane %v3773_v14, 5  ;;  %v8670_v14 = vld [vmem:[%s7696_s17 + $0x48] sm:$0xf] }
  0xe2   : > { %6833 = vmatmul.mubr.bf16.gmra.mrb[4].mxu0 %v8595_v61  ;;  %6531 = vmatpush3.bf16.msra.mxu1 %v7412_v55  ;;  %v3767_v55 = vrot.slane %v3765_v31, 5 }
  0xe3   : > { %6841 = vmatpush3.bf16.msra.mxu0 %v7411_v23  ;;  %6852 = vmatprep.mubr.bf16.mxu0 %v5845_v3  ;;  %v7417_v23 = vld [vmem:[%s9208_s3 + $0x4e8] sm:$0xff]   ;;  %v3763_v3 = vrot.slane %v3762_v43, 4 }
  0xe4   : > { %6842 = vmatprep.subr.bf16.mxu0 %v7413_v58  ;;  %6532 = vmatprep.subr.bf16.mxu1 %v7414_v5 }
  0xe5   : > { %v8643_v22 = vsel %vm7750_vm2, %v3763_v3, %v3767_v55  ;;  %v5857_v55 = vrot.slane %v8462_v42, 9  ;;  %v7428_v42 = vld [vmem:[%s9208_s3 + $0x1d0] sm:$0xff]  }
  0xe6   : > { %6533 = vmatpush3.bf16.msra.mxu1 %v7414_v5  ;;  %v8632_v5 = vld [vmem:[%s8325_s20 + $0x3c] sm:$0x1] }
  0xe7   : > { %6843 = vmatpush3.bf16.msra.mxu0 %v7413_v58  ;;  %6534 = vmatprep.subr.bf16.mxu1 %v7416_v54  ;;  %v3770_v58 = vshrl.u32 %v8574_v63, 16  ;;  %v3779_v43 = vshll.u32 %v8632_v5, 16 }
  0xe8   : > { %6844 = vmatprep.subr.bf16.mxu0 %v7415_v33 }
  0xe9   : > { %v3772_v31 = vrot.slane %v3770_v58, 4  ;;  %v3781_v3 = vrot.slane %v3779_v43, 5  ;;  %v3951_v43 = vrot.slane %v8499_v36, 5  ;;  %v5488_v36 = vcombine.low %v8314_v12, %v8670_v14  ;;  %v7431_v12 = vld [vmem:[%s9208_s3 + $0x518] sm:$0xff]  }
  0xea   : > { %6535 = vmatpush3.bf16.msra.mxu1 %v7416_v54  ;;  %v7424_v54 = vld [vmem:[%s9208_s3 + $0x1c0] sm:$0xff]  }
  0xeb   : > { %6845 = vmatpush3.bf16.msra.mxu0 %v7415_v33  ;;  %6536 = vmatprep.subr.bf16.mxu1 %v7418_v41  ;;  %v8639_v33 = vsel %vm7750_vm2, %v3749_v57, %v3753_v44  ;;  %v7426_v57 = vld [vmem:[%s9208_s3 + $0x1c8] sm:$0xff]   ;;  %v3776_v44 = vor.u32 %v3775_v16, %v3772_v31  ;;  %v3947_v31 = vrot.slane %v8526_v62, 5  ;;  %v5858_v16 = vrot.slane %v8412_v4, 9  ;;  %v7430_v62 = vld [vmem:[%s9208_s3 + $0x1d8] sm:$0xff]   ;;  %v7453_v4 = vld [vmem:[%s9208_s3 + $0x230] sm:$0xff]  }
  0xec   : > { %6846 = vmatprep.subr.bf16.mxu0 %v7417_v23  ;;  %v8667_v58 = vcombine.low %v8394_v21, %v8639_v33 }
  0xee   : > { %6537 = vmatpush3.bf16.msra.mxu1 %v7418_v41  ;;  %v8660_v41 = vcombine.low %v8558_v15, %v8390_v20 }
  0xef   : > { %6847 = vmatpush3.bf16.msra.mxu0 %v7417_v23  ;;  %6538 = vmatprep.subr.bf16.mxu1 %v7422_v10  ;;  %v7425_v23 = vld [vmem:[%s9208_s3 + $0x500] sm:$0xff]  }
  0xf0   : > { %6848 = vmatprep.subr.bf16.mxu0 %v7420_v13 }
  0xf2   : > { %6539 = vmatpush3.bf16.msra.mxu1 %v7422_v10  ;;  %v3777_v10 = vrot.slane %v3776_v44, 4  ;;  %v7432_v44 = vld [vmem:[%s9208_s3 + $0x1e0] sm:$0xff]  }
  0xf3   : > { %6849 = vmatpush3.bf16.msra.mxu0 %v7420_v13  ;;  %6548 = vmatprep.subr.bf16.mxu1 %v7424_v54  ;;  %v7427_v13 = vld [vmem:[%s9208_s3 + $0x508] sm:$0xff]  }
  0xf4   : > { %6850 = vmatprep.subr.bf16.mxu0 %v7423_v38 }
  0xf5   : > { %6541 = vmatmul.mubr.bf16.vlgmr.msra.gmra.mrb[0].mxu1 %v8092_v2  ;;  %v7429_v2 = vld [vmem:[%s9208_s3 + $0x510] sm:$0xff]  }
  0xf6   : > { %6549 = vmatpush3.bf16.msra.mxu1 %v7424_v54  ;;  %6544 = vmatprep.mubr.bf16.mxu1 %v8136_v17  ;;  %v3948_v17 = vsel %vm8001_vm5, %v5857_v55, %v3947_v31  ;;  %v8698_v54 = vsel %vm8001_vm5, %v5858_v16, %v3951_v43  ;;  %v7433_v55 = vld [vmem:[%s9208_s3 + $0x520] sm:$0xff]   ;;  %v1646_v31 = vshll.u32 %v8670_v14, 16  ;;  %v7436_v16 = vld [vmem:[%s9208_s3 + $0x1f0] sm:$0xff]  }
  0xf7   : > { %6851 = vmatpush3.bf16.msra.mxu0 %v7423_v38  ;;  %6550 = vmatprep.subr.bf16.mxu1 %v7426_v57  ;;  %v8692_v38 = vsel %vm7750_vm2, %v3777_v10, %v3781_v3  ;;  %v9234_v3 = vld [vmem:[#allocation3_spill] sm:$0xff]  ;;  %v1643_v10 = vshrl.u32 %v8670_v14, 16  ;;  %v7437_v43 = vld [vmem:[%s9208_s3 + $0x530] sm:$0xff]  }
  0xf8   : > { %6860 = vmatprep.subr.bf16.mxu0 %v7425_v23 }
  0xfa   : > { %6853 = vmatmul.mubr.bf16.vlgmr.msra.gmra.mrb[0].mxu0 %v8660_v41  ;;  %6551 = vmatpush3.bf16.msra.mxu1 %v7426_v57  ;;  %v5881_v57 = vcombine.low %v3948_v17, %v8698_v54  ;;  %v8734_v17 = vld [vmem:[%s7696_s17 + $0x4c] sm:$0x1]  ;;  %s5309_s17 = sshll.u32 %s9253_s22, 3 }
  0xfb   : > { %6861 = vmatpush3.bf16.msra.mxu0 %v7425_v23  ;;  %6856 = vmatprep.mubr.bf16.mxu0 %v8667_v58  ;;  %v8702_v23 = vcombine.low %v8643_v22, %v8692_v38  ;;  %s398_s9 = sadd.s32 %s5309_s17, %s9259_s21 }
  0xfc   : > { %6862 = vmatprep.subr.bf16.mxu0 %v7427_v13  ;;  %6552 = vmatprep.subr.bf16.mxu1 %v7428_v42  ;;  %s399_s11 = scalar_lea.vmem %s9210_s5, %s398_s9  ;;  %s406_s14 = scalar_lea.vmem %s9211_s6, %s398_s9 }
  0xfd   : > { %6545 = vmatmul.mubr.bf16.gmra.mrb[4].mxu1 %v5488_v36  ;;  %v7439_v36 = vld [vmem:[%s9208_s3 + $0x1f8] sm:$0xff]  }
  0xfe   : > { %6553 = vmatpush3.bf16.msra.mxu1 %v7428_v42  ;;  %6564 = vmatprep.mubr.bf16.mxu1 %v9234_v3  ;;  %v7435_v42 = vld [vmem:[%s9208_s3 + $0x528] sm:$0xff]   ;;  %v3967_v3 = vrot.slane %v8598_v11, 5 }
  0xff   : > { %6863 = vmatpush3.bf16.msra.mxu0 %v7427_v13  ;;  %6554 = vmatprep.subr.bf16.mxu1 %v7430_v62  ;;  %v7434_v13 = vld [vmem:[%s9208_s3 + $0x1e8] sm:$0xff]  }
 0x100   : > { %6864 = vmatprep.subr.bf16.mxu0 %v7429_v2 }
 0x102   : > { %6857 = vmatmul.mubr.bf16.gmra.mrb[4].mxu0 %v8702_v23  ;;  %6555 = vmatpush3.bf16.msra.mxu1 %v7430_v62  ;;  %v1648_v62 = vrot.slane %v1646_v31, 5  ;;  %v7442_v31 = vld [vmem:[%s9208_s3 + $0x540] sm:$0xff]  }
 0x103   : > { %6865 = vmatpush3.bf16.msra.mxu0 %v7429_v2  ;;  %6876 = vmatprep.mubr.bf16.mxu0 %v5881_v57  ;;  %v1645_v2 = vrot.slane %v1643_v10, 4  ;;  %v3955_v57 = vrot.slane %v8502_v6, 5  ;;  %v1652_v10 = vshll.u32 %v8734_v17, 16 }
 0x104   : > { %6866 = vmatprep.subr.bf16.mxu0 %v7431_v12  ;;  %6556 = vmatprep.subr.bf16.mxu1 %v7432_v44 }
 0x106   : > { %6557 = vmatpush3.bf16.msra.mxu1 %v7432_v44  ;;  %v5862_v44 = vrot.slane %v8514_v25, 9 }
 0x107   : > { %6867 = vmatpush3.bf16.msra.mxu0 %v7431_v12  ;;  %6558 = vmatprep.subr.bf16.mxu1 %v7434_v13  ;;  %v5859_v12 = vrot.slane %v8415_v1, 9  ;;  %v7454_v1 = vld [vmem:[%s9208_s3 + $0x570] sm:$0xff]  }
 0x108   : > { %6868 = vmatprep.subr.bf16.mxu0 %v7433_v55  ;;  %v8753_v11 = vsel %vm8001_vm5, %v5862_v44, %v3967_v3  ;;  %v3971_v44 = vrot.slane %v8605_v27, 5  ;;  %v5864_v3 = vrot.slane %v8574_v63, 9 }
 0x109   : > { %v8749_v6 = vsel %vm8001_vm5, %v5859_v12, %v3955_v57  ;;  %v8767_v12 = vcombine.low %v8448_v52, %v8753_v11  ;;  %v5863_v57 = vrot.slane %v8520_v45, 9 }
 0x10a   : > { %6559 = vmatpush3.bf16.msra.mxu1 %v7434_v13  ;;  %v1649_v13 = vor.u32 %v1648_v62, %v1645_v2  ;;  %v1654_v2 = vrot.slane %v1652_v10, 5  ;;  %v8763_v62 = vcombine.low %v8749_v6, %v8444_v9  ;;  %v7444_v10 = vld [vmem:[%s9208_s3 + $0x548] sm:$0xff]  }
 0x10b   : > { %6869 = vmatpush3.bf16.msra.mxu0 %v7433_v55  ;;  %6560 = vmatprep.subr.bf16.mxu1 %v7436_v16  ;;  %v7440_v55 = vld [vmem:[%s9208_s3 + $0x538] sm:$0xff]  }
 0x10c   : > { %6870 = vmatprep.subr.bf16.mxu0 %v7435_v42 }
 0x10e   : > { %6561 = vmatpush3.bf16.msra.mxu1 %v7436_v16  ;;  %v1650_v16 = vrot.slane %v1649_v13, 4  ;;  %v3975_v13 = vrot.slane %v8632_v5, 5  ;;  %v8788_v5 = vsel %vm8001_vm5, %v5863_v57, %v3971_v44  ;;  %v7457_v57 = vld [vmem:[%s9208_s3 + $0x240] sm:$0xff]  }
 0x10f   : > { %6871 = vmatpush3.bf16.msra.mxu0 %v7435_v42  ;;  %6562 = vmatprep.subr.bf16.mxu1 %v7439_v36  ;;  %v7441_v42 = vld [vmem:[%s9208_s3 + $0x200] sm:$0xff]  }
 0x110   : > { %6872 = vmatprep.subr.bf16.mxu0 %v7437_v43  ;;  %v1655_v28 = vsel %vm7750_vm2, %v1650_v16, %v1654_v2  ;;  %v7449_v16 = vld [vmem:[%s9208_s3 + $0x220] sm:$0xff]  }
 0x111   : > { %v5513_v27 = vcombine.low %v8432_v46, %v1655_v28  ;;  %v7448_v28 = vld [vmem:[%s9208_s3 + $0x558] sm:$0xff]   ;;  %v7450_v2 = vld [vmem:[%s9208_s3 + $0x560] sm:$0xff]  }
 0x112   : > { %6563 = vmatpush3.bf16.msra.mxu1 %v7439_v36  ;;  %v9235_v36 = vld [vmem:[#allocation5_spill] sm:$0xff]  ;;  %v7459_v44 = vld [vmem:[%s9208_s3 + $0x580] sm:$0xff]  }
 0x113   : > { %6873 = vmatpush3.bf16.msra.mxu0 %v7437_v43  ;;  %6572 = vmatprep.subr.bf16.mxu1 %v7441_v42  ;;  %v7443_v43 = vld [vmem:[%s9208_s3 + $0x208] sm:$0xff]  }
 0x114   : > { %6874 = vmatprep.subr.bf16.mxu0 %v7440_v55 }
 0x115   : > { %6565 = vmatmul.mubr.bf16.vlgmr.msra.gmra.mrb[0].mxu1 %v9235_v36  ;;  %v7456_v36 = vld [vmem:[%s9208_s3 + $0x578] sm:$0xff]  }
 0x116   : > { %6573 = vmatpush3.bf16.msra.mxu1 %v7441_v42  ;;  %6568 = vmatprep.mubr.bf16.mxu1 %v8017_v26  ;;  %v8792_v42 = vsel %vm8001_vm5, %v5864_v3, %v3975_v13  ;;  %v7446_v26 = vld [vmem:[%s9208_s3 + $0x550] sm:$0xff]   ;;  %v5522_v3 = vrot.slane %v8670_v14, 9  ;;  %v1800_v13 = vrot.slane %v8734_v17, 5 }
 0x117   : > { %6875 = vmatpush3.bf16.msra.mxu0 %v7440_v55  ;;  %6574 = vmatprep.subr.bf16.mxu1 %v7443_v43  ;;  %v7445_v55 = vld [vmem:[%s9208_s3 + $0x210] sm:$0xff]   ;;  %v8802_v46 = vcombine.low %v8788_v5, %v8792_v42 }
 0x118   : > { %6884 = vmatprep.subr.bf16.mxu0 %v7442_v31  ;;  %v1801_v14 = vsel %vm8001_vm5, %v5522_v3, %v1800_v13  ;;  %v7463_v17 = vld [vmem:[%s9208_s3 + $0x250] sm:$0xff]  }
 0x11a   : > { %6877 = vmatmul.mubr.bf16.vlgmr.msra.gmra.mrb[0].mxu0 %v8763_v62  ;;  %6575 = vmatpush3.bf16.msra.mxu1 %v7443_v43  ;;  %v7451_v43 = vld [vmem:[%s9208_s3 + $0x228] sm:$0xff]  }
 0x11b   : > { %6885 = vmatpush3.bf16.msra.mxu0 %v7442_v31  ;;  %6880 = vmatprep.mubr.bf16.mxu0 %v8767_v12  ;;  %v7447_v31 = vld [vmem:[%s9208_s3 + $0x218] sm:$0xff]  }
 0x11c   : > { %6886 = vmatprep.subr.bf16.mxu0 %v7444_v10  ;;  %6576 = vmatprep.subr.bf16.mxu1 %v7445_v55 }
 0x11d   : > { %6569 = vmatmul.mubr.bf16.gmra.mrb[4].mxu1 %v5513_v27  ;;  %v8858_v27 = vld [vmem:[%s7745_s13] sm:$0xf] }
 0x11e   : > { %6577 = vmatpush3.bf16.msra.mxu1 %v7445_v55  ;;  %6588 = vmatprep.mubr.bf16.mxu1 %v8144_v48  ;;  %v7452_v48 = vld [vmem:[%s9208_s3 + $0x568] sm:$0xff]  }
 0x11f   : > { %6887 = vmatpush3.bf16.msra.mxu0 %v7444_v10  ;;  %6578 = vmatprep.subr.bf16.mxu1 %v7447_v31  ;;  %v7461_v10 = vld [vmem:[%s9208_s3 + $0x248] sm:$0xff]  }
 0x120   : > { %6888 = vmatprep.subr.bf16.mxu0 %v7446_v26  ;;  %v7462_v55 = vld [vmem:[%s9208_s3 + $0x588] sm:$0xff]  }
 0x122   : > { %6881 = vmatmul.mubr.bf16.gmra.mrb[4].mxu0 %v8802_v46  ;;  %6579 = vmatpush3.bf16.msra.mxu1 %v7447_v31  ;;  %v8868_v31 = vld [vmem:[%s8325_s20 + $0x40] sm:$0xf] }
 0x123   : > { %6889 = vmatpush3.bf16.msra.mxu0 %v7446_v26  ;;  %6900 = vmatprep.mubr.bf16.mxu0 %v5909_v60  ;;  %v7455_v60 = vld [vmem:[%s9208_s3 + $0x238] sm:$0xff]   ;;  %v5539_v26 = vcombine.low %v8539_v18, %v1801_v14  ;;  %v5912_v45 = vcombine.low %v8574_v63, %v8868_v31  ;;  %v7467_v18 = vld [vmem:[%s9208_s3 + $0x260] sm:$0xff]  }
 0x124   : > { %6890 = vmatprep.subr.bf16.mxu0 %v7448_v28  ;;  %6580 = vmatprep.subr.bf16.mxu1 %v7449_v16  ;;  %v7468_v63 = vld [vmem:[%s9208_s3 + $0x5a0] sm:$0xff]  }
 0x125   : > { %v7478_v14 = vld [vmem:[%s9208_s3 + $0x280] sm:$0xff]  }
 0x126   : > { %6581 = vmatpush3.bf16.msra.mxu1 %v7449_v16  ;;  %v7469_v16 = vld [vmem:[%s9208_s3 + $0x268] sm:$0xff]  }
 0x127   : > { %6891 = vmatpush3.bf16.msra.mxu0 %v7448_v28  ;;  %6582 = vmatprep.subr.bf16.mxu1 %v7451_v43  ;;  %v9237_v28 = vcombine.low %v8554_v7, %v8558_v15  ;;  %v7470_v7 = vld [vmem:[%s9208_s3 + $0x5a8] sm:$0xff]   ;;  %v7471_v15 = vld [vmem:[%s9208_s3 + $0x270] sm:$0xff]  }
 0x128   : > { %6892 = vmatprep.subr.bf16.mxu0 %v7450_v2 }
 0x12a   : > { %6583 = vmatpush3.bf16.msra.mxu1 %v7451_v43  ;;  %v2129_v43 = vshll.u32 %v8858_v27, 16 }
 0x12b   : > { %6893 = vmatpush3.bf16.msra.mxu0 %v7450_v2  ;;  %6584 = vmatprep.subr.bf16.mxu1 %v7453_v4  ;;  %v2126_v2 = vshrl.u32 %v8858_v27, 16 }
 0x12c   : > { %6894 = vmatprep.subr.bf16.mxu0 %v7452_v48 }
 0x12e   : > { %6585 = vmatpush3.bf16.msra.mxu1 %v7453_v4  ;;  %v4283_v4 = vshll.u32 %v8868_v31, 16 }
 0x12f   : > { %6895 = vmatpush3.bf16.msra.mxu0 %v7452_v48  ;;  %6586 = vmatprep.subr.bf16.mxu1 %v7455_v60  ;;  %v4280_v48 = vshrl.u32 %v8868_v31, 16 }
 0x130   : > { %6896 = vmatprep.subr.bf16.mxu0 %v7454_v1  ;;  %v4285_v13 = vrot.slane %v4283_v4, 5  ;;  %v7486_v4 = vld [vmem:[%s9208_s3 + $0x2a0] sm:$0xff]  }
 0x131   : > { %v4282_v3 = vrot.slane %v4280_v48, 4 }
 0x132   : > { %6587 = vmatpush3.bf16.msra.mxu1 %v7455_v60  ;;  %v7475_v60 = vld [vmem:[%s9208_s3 + $0x278] sm:$0xff]  }
 0x133   : > { %6897 = vmatpush3.bf16.msra.mxu0 %v7454_v1  ;;  %6596 = vmatprep.subr.bf16.mxu1 %v7457_v57  ;;  %v7473_v1 = vld [vmem:[%s9208_s3 + $0x5b0] sm:$0xff]  }
 0x134   : > { %6898 = vmatprep.subr.bf16.mxu0 %v7456_v36 }
 0x135   : > { %6589 = vmatmul.mubr.bf16.vlgmr.msra.gmra.mrb[0].mxu1 %v8219_v50  ;;  %v9236_v50 = vcombine.low %v8337_v34, %v8346_v49  ;;  %v7465_v34 = vld [vmem:[%s9208_s3 + $0x258] sm:$0xff]   ;;  %v8877_v49 = vld [vmem:[%s7745_s13 + $0x8] sm:$0xf] }
 0x136   : > { %6597 = vmatpush3.bf16.msra.mxu1 %v7457_v57  ;;  %6592 = vmatprep.mubr.bf16.mxu1 %v8245_v39  ;;  %v7464_v39 = vld [vmem:[%s9208_s3 + $0x590] sm:$0xff]   ;;  %v5564_v25 = vcombine.low %v8858_v27, %v8877_v49  ;;  %v2131_v57 = vrot.slane %v2129_v43, 5  ;;  %v9240_v43 = vld [vmem:[#allocation2_spill] sm:$0xff] }
 0x137   : > { %6899 = vmatpush3.bf16.msra.mxu0 %v7456_v36  ;;  %6598 = vmatprep.subr.bf16.mxu1 %v7461_v10  ;;  %v2128_v36 = vrot.slane %v2126_v2, 4 }
 0x138   : > { %6908 = vmatprep.subr.bf16.mxu0 %v7459_v44 }
 0x13a   : > { %6901 = vmatmul.mubr.bf16.vlgmr.msra.gmra.mrb[0].mxu0 %v9236_v50  ;;  %6599 = vmatpush3.bf16.msra.mxu1 %v7461_v10  ;;  %v7476_v10 = vld [vmem:[%s9208_s3 + $0x5b8] sm:$0xff]  }
 0x13b   : > { %6909 = vmatpush3.bf16.msra.mxu0 %v7459_v44  ;;  %6904 = vmatprep.mubr.bf16.mxu0 %v5911_v51  ;;  %v7466_v51 = vld [vmem:[%s9208_s3 + $0x598] sm:$0xff]   ;;  %v8915_v44 = vld [vmem:[%s7745_s13 + $0x4] sm:$0x1] }
 0x13c   : > { %6910 = vmatprep.subr.bf16.mxu0 %v7462_v55  ;;  %6600 = vmatprep.subr.bf16.mxu1 %v7463_v17  ;;  %v2135_v50 = vshll.u32 %v8915_v44, 16 }
 0x13d   : > { %6593 = vmatmul.mubr.bf16.gmra.mrb[4].mxu1 %v5539_v26  ;;  %v4286_v26 = vor.u32 %v4285_v13, %v4282_v3  ;;  %v7495_v3 = vld [vmem:[%s9208_s3 + $0x600] sm:$0xff]   ;;  %v7496_v13 = vld [vmem:[%s9208_s3 + $0x2c8] sm:$0xff]  }
 0x13e   : > { %6601 = vmatpush3.bf16.msra.mxu1 %v7463_v17  ;;  %6612 = vmatprep.mubr.bf16.mxu1 %v5564_v25  ;;  %v2132_v17 = vor.u32 %v2131_v57, %v2128_v36  ;;  %v7480_v25 = vld [vmem:[%s9208_s3 + $0x288] sm:$0xff]   ;;  %v7493_v36 = vld [vmem:[%s9208_s3 + $0x5f8] sm:$0xff]   ;;  %v7494_v57 = vld [vmem:[%s9208_s3 + $0x2c0] sm:$0xff]  }
 0x13f   : > { %6911 = vmatpush3.bf16.msra.mxu0 %v7462_v55  ;;  %6602 = vmatprep.subr.bf16.mxu1 %v7465_v34  ;;  %v8921_v55 = vld [vmem:[%s8325_s20 + $0x44] sm:$0x1] }
 0x140   : > { %6912 = vmatprep.subr.bf16.mxu0 %v7464_v39 }
 0x142   : > { %6905 = vmatmul.mubr.bf16.gmra.mrb[4].mxu0 %v5912_v45  ;;  %6603 = vmatpush3.bf16.msra.mxu1 %v7465_v34  ;;  %v7479_v34 = vld [vmem:[%s9208_s3 + $0x5c0] sm:$0xff]   ;;  %v2133_v45 = vrot.slane %v2132_v17, 4  ;;  %v5968_v17 = vcombine.low %v8753_v11, %v8788_v5 }
 0x143   : > { %6913 = vmatpush3.bf16.msra.mxu0 %v7464_v39  ;;  %6924 = vmatprep.mubr.bf16.mxu0 %v9237_v28  ;;  %v4289_v39 = vshll.u32 %v8921_v55, 16 }
 0x144   : > { %6914 = vmatprep.subr.bf16.mxu0 %v7466_v51  ;;  %6604 = vmatprep.subr.bf16.mxu1 %v7467_v18 }
 0x145   : > { %v4291_v28 = vrot.slane %v4289_v39, 5  ;;  %v7497_v39 = vld [vmem:[%s9208_s3 + $0x608] sm:$0xff]  }
 0x146   : > { %6605 = vmatpush3.bf16.msra.mxu1 %v7467_v18  ;;  %v4287_v18 = vrot.slane %v4286_v26, 4  ;;  %v4443_v26 = vrot.slane %v8921_v55, 5  ;;  %v7501_v55 = vld [vmem:[%s9208_s3 + $0x618] sm:$0xff]  }
 0x147   : > { %6915 = vmatpush3.bf16.msra.mxu0 %v7466_v51  ;;  %6606 = vmatprep.subr.bf16.mxu1 %v7469_v16  ;;  %v2137_v51 = vrot.slane %v2135_v50, 5  ;;  %v5949_v50 = vrot.slane %v8868_v31, 9 }
 0x148   : > { %6916 = vmatprep.subr.bf16.mxu0 %v7468_v63  ;;  %v8952_v2 = vsel %vm7750_vm2, %v4287_v18, %v4291_v28  ;;  %v7510_v18 = vld [vmem:[%s9208_s3 + $0x300] sm:$0xff]  }
 0x149   : > { %v9023_v5 = vsel %vm8001_vm5, %v5949_v50, %v4443_v26  ;;  %v7511_v28 = vld [vmem:[%s9208_s3 + $0x640] sm:$0xff]   ;;  %v7533_v26 = vld [vmem:[%s9208_s3 + $0x690] sm:$0xff]  }
 0x14a   : > { %6607 = vmatpush3.bf16.msra.mxu1 %v7469_v16  ;;  %v7482_v16 = vld [vmem:[%s9208_s3 + $0x290] sm:$0xff]  }
 0x14b   : > { %6917 = vmatpush3.bf16.msra.mxu0 %v7468_v63  ;;  %6608 = vmatprep.subr.bf16.mxu1 %v7471_v15  ;;  %v7481_v63 = vld [vmem:[%s9208_s3 + $0x5c8] sm:$0xff]  }
 0x14c   : > { %6918 = vmatprep.subr.bf16.mxu0 %v7470_v7 }
 0x14e   : > { %6609 = vmatpush3.bf16.msra.mxu1 %v7471_v15  ;;  %v9239_v15 = vcombine.low %v8639_v33, %v8643_v22  ;;  %v5966_v33 = vcombine.low %v8698_v54, %v8749_v6  ;;  %v7485_v22 = vld [vmem:[%s9208_s3 + $0x5d8] sm:$0xff]   ;;  %v7489_v54 = vld [vmem:[%s9208_s3 + $0x5e8] sm:$0xff]   ;;  %v7490_v6 = vld [vmem:[%s9208_s3 + $0x2b0] sm:$0xff]  }
 0x14f   : > { %6919 = vmatpush3.bf16.msra.mxu0 %v7470_v7  ;;  %6610 = vmatprep.subr.bf16.mxu1 %v7475_v60  ;;  %v2138_v7 = vsel %vm7750_vm2, %v2133_v45, %v2137_v51  ;;  %v7508_v45 = vld [vmem:[%s9208_s3 + $0x2f8] sm:$0xff]  }
 0x150   : > { %6920 = vmatprep.subr.bf16.mxu0 %v7473_v1  ;;  %v5592_v48 = vcombine.low %v2138_v7, %v9240_v43  ;;  %v7509_v51 = vld [vmem:[%s9208_s3 + $0x638] sm:$0xff]   ;;  %v7514_v7 = vld [vmem:[%s9208_s3 + $0x310] sm:$0xff]   ;;  %v7518_v43 = vld [vmem:[%s9208_s3 + $0x320] sm:$0xff]  }
 0x152   : > { %6611 = vmatpush3.bf16.msra.mxu1 %v7475_v60  ;;  %v7492_v60 = vld [vmem:[%s9208_s3 + $0x2b8] sm:$0xff]  }
 0x153   : > { %6921 = vmatpush3.bf16.msra.mxu0 %v7473_v1  ;;  %6620 = vmatprep.subr.bf16.mxu1 %v7478_v14  ;;  %v7491_v1 = vld [vmem:[%s9208_s3 + $0x5f0] sm:$0xff]  }
 0x154   : > { %6922 = vmatprep.subr.bf16.mxu0 %v7476_v10 }
 0x155   : > { %6613 = vmatmul.mubr.bf16.vlgmr.msra.gmra.mrb[0].mxu1 %v8162_v40  ;;  %v9238_v40 = vcombine.low %v8390_v20, %v8394_v21  ;;  %v7484_v20 = vld [vmem:[%s9208_s3 + $0x298] sm:$0xff]   ;;  %v5940_v21 = vcombine.low %v8692_v38, %v8952_v2  ;;  %v7488_v38 = vld [vmem:[%s9208_s3 + $0x2a8] sm:$0xff]  }
 0x156   : > { %6621 = vmatpush3.bf16.msra.mxu1 %v7478_v14  ;;  %6616 = vmatprep.mubr.bf16.mxu1 %v8223_v53  ;;  %v7483_v53 = vld [vmem:[%s9208_s3 + $0x5d0] sm:$0xff]   ;;  %v2401_v14 = vrot.slane %v8915_v44, 5 }
 0x157   : > { %6923 = vmatpush3.bf16.msra.mxu0 %v7476_v10  ;;  %6622 = vmatprep.subr.bf16.mxu1 %v7480_v25  ;;  %v5604_v10 = vrot.slane %v8858_v27, 9  ;;  %v7498_v27 = vld [vmem:[%s9208_s3 + $0x2d0] sm:$0xff]  }
 0x158   : > { %6932 = vmatprep.subr.bf16.mxu0 %v7479_v34  ;;  %v7499_v44 = vld [vmem:[%s9208_s3 + $0x610] sm:$0xff]  }
 0x159   : > { %v2402_v11 = vsel %vm8001_vm5, %v5604_v10, %v2401_v14  ;;  %v7544_v10 = vld [vmem:[%s7745_s13 + $0x30] sm:$0xf] }
 0x15a   : > { %6925 = vmatmul.mubr.bf16.vlgmr.msra.gmra.mrb[0].mxu0 %v9238_v40  ;;  %6623 = vmatpush3.bf16.msra.mxu1 %v7480_v25  ;;  %v7507_v25 = vld [vmem:[%s9208_s3 + $0x630] sm:$0xff]   ;;  %v9082_v40 = vld [vmem:[%s8325_s20 + $0x48] sm:$0xf] }
 0x15b   : > { %6933 = vmatpush3.bf16.msra.mxu0 %v7479_v34  ;;  %6928 = vmatprep.mubr.bf16.mxu0 %v9239_v15  ;;  %v7502_v34 = vld [vmem:[%s9208_s3 + $0x2e0] sm:$0xff]   ;;  %v7516_v15 = vld [vmem:[%s9208_s3 + $0x318] sm:$0xff]  }
 0x15c   : > { %6934 = vmatprep.subr.bf16.mxu0 %v7481_v63  ;;  %6624 = vmatprep.subr.bf16.mxu1 %v7482_v16 }
 0x15d   : > { %6617 = vmatmul.mubr.bf16.gmra.mrb[4].mxu1 %v8228_v8  ;;  %v7487_v8 = vld [vmem:[%s9208_s3 + $0x5e0] sm:$0xff]  }
 0x15e   : > { %6625 = vmatpush3.bf16.msra.mxu1 %v7482_v16  ;;  %6636 = vmatprep.mubr.bf16.mxu1 %v5592_v48  ;;  %v7513_v16 = vld [vmem:[%s9208_s3 + $0x648] sm:$0xff]   ;;  %v4735_v48 = vshrl.u32 %v9082_v40, 16 }
 0x15f   : > { %6935 = vmatpush3.bf16.msra.mxu0 %v7481_v63  ;;  %6626 = vmatprep.subr.bf16.mxu1 %v7484_v20  ;;  %v7512_v63 = vld [vmem:[%s9208_s3 + $0x308] sm:$0xff]  }
 0x160   : > { %6936 = vmatprep.subr.bf16.mxu0 %v7483_v53 }
 0x162   : > { %6929 = vmatmul.mubr.bf16.gmra.mrb[4].mxu0 %v5940_v21  ;;  %6627 = vmatpush3.bf16.msra.mxu1 %v7484_v20  ;;  %v4738_v20 = vshll.u32 %v9082_v40, 16  ;;  %v7524_v21 = vld [vmem:[%s9208_s3 + $0x670] sm:$0xff]  }
 0x163   : > { %6937 = vmatpush3.bf16.msra.mxu0 %v7483_v53  ;;  %6948 = vmatprep.mubr.bf16.mxu0 %v5966_v33  ;;  %v7540_v53 = vld [vmem:[%s7745_s13 + $0x10] sm:$0xf]  ;;  %v7525_v33 = vld [vmem:[%s9208_s3 + $0x338] sm:$0xff]  }
 0x164   : > { %6938 = vmatprep.subr.bf16.mxu0 %v7485_v22  ;;  %6628 = vmatprep.subr.bf16.mxu1 %v7486_v4 }
 0x166   : > { %6629 = vmatpush3.bf16.msra.mxu1 %v7486_v4  ;;  %v4740_v4 = vrot.slane %v4738_v20, 5 }
 0x167   : > { %6939 = vmatpush3.bf16.msra.mxu0 %v7485_v22  ;;  %6630 = vmatprep.subr.bf16.mxu1 %v7488_v38  ;;  %v4737_v22 = vrot.slane %v4735_v48, 4 }
 0x168   : > { %6940 = vmatprep.subr.bf16.mxu0 %v7487_v8 }
 0x16a   : > { %6631 = vmatpush3.bf16.msra.mxu1 %v7488_v38  ;;  %v7526_v38 = vld [vmem:[%s9208_s3 + $0x678] sm:$0xff]  }
 0x16b   : > { %6941 = vmatpush3.bf16.msra.mxu0 %v7487_v8  ;;  %6632 = vmatprep.subr.bf16.mxu1 %v7490_v6  ;;  %v9124_v8 = vld [vmem:[%s8325_s20 + $0x4c] sm:$0x1]  ;;  %s5308_s20 = sshll.u32 %s390_s30, 3 }
 0x16c   : > { %6942 = vmatprep.subr.bf16.mxu0 %v7489_v54  ;;  %s392_s19 = scalar_lea.vmem %s9209_s4, %s5308_s20 }
 0x16e   : > { %6633 = vmatpush3.bf16.msra.mxu1 %v7490_v6  ;;  %v7541_v6 = vld [vmem:[%s7745_s13 + $0x18] sm:$0xf] }
 0x16f   : > { %6943 = vmatpush3.bf16.msra.mxu0 %v7489_v54  ;;  %6634 = vmatprep.subr.bf16.mxu1 %v7492_v60  ;;  %v7529_v54 = vld [vmem:[%s9208_s3 + $0x680] sm:$0xff]  }
 0x170   : > { %6944 = vmatprep.subr.bf16.mxu0 %v7491_v1 }
 0x172   : > { %6635 = vmatpush3.bf16.msra.mxu1 %v7492_v60 }
 0x173   : > { %6945 = vmatpush3.bf16.msra.mxu0 %v7491_v1  ;;  %6644 = vmatprep.subr.bf16.mxu1 %v7494_v57  ;;  %v7542_v1 = vld [vmem:[%s7745_s13 + $0x20] sm:$0xf] }
 0x174   : > { %6946 = vmatprep.subr.bf16.mxu0 %v7493_v36  ;;  %v5657_v60 = vcombine.low %v7541_v6, %v7542_v1 }
 0x175   : > { %6637 = vmatmul.mubr.bf16.vlgmr.msra.gmra.mrb[0].mxu1 %v7841_v47  ;;  %v9241_v47 = vcombine.low %v8444_v9, %v8448_v52  ;;  %v5628_v9 = vcombine.low %v2402_v11, %v8028_v29  ;;  %v5969_v52 = vcombine.low %v8792_v42, %v9023_v5  ;;  %v7503_v29 = vld [vmem:[%s9208_s3 + $0x620] sm:$0xff]   ;;  %v7505_v42 = vld [vmem:[%s9208_s3 + $0x628] sm:$0xff]  }
 0x176   : > { %6645 = vmatpush3.bf16.msra.mxu1 %v7494_v57  ;;  %6640 = vmatprep.mubr.bf16.mxu1 %v7977_v24  ;;  %v7500_v24 = vld [vmem:[%s9208_s3 + $0x2d8] sm:$0xff]   ;;  %v4744_v57 = vshll.u32 %v9124_v8, 16 }
 0x177   : > { %6947 = vmatpush3.bf16.msra.mxu0 %v7493_v36  ;;  %6646 = vmatprep.subr.bf16.mxu1 %v7496_v13  ;;  %v4741_v36 = vor.u32 %v4740_v4, %v4737_v22 }
 0x178   : > { %6956 = vmatprep.subr.bf16.mxu0 %v7495_v3  ;;  %v4746_v50 = vrot.slane %v4744_v57, 5 }
 0x17a   : > { %6949 = vmatmul.mubr.bf16.vlgmr.msra.gmra.mrb[0].mxu0 %v9241_v47  ;;  %6647 = vmatpush3.bf16.msra.mxu1 %v7496_v13  ;;  %v7543_v13 = vld [vmem:[%s7745_s13 + $0x28] sm:$0xf] }
 0x17b   : > { %6957 = vmatpush3.bf16.msra.mxu0 %v7495_v3  ;;  %6952 = vmatprep.mubr.bf16.mxu0 %v5968_v17  ;;  %v7530_v3 = vld [vmem:[%s9208_s3 + $0x688] sm:$0xff]   ;;  %v5658_v14 = vcombine.low %v7543_v13, %v7544_v10  ;;  %v4742_v17 = vrot.slane %v4741_v36, 4 }
 0x17c   : > { %6958 = vmatprep.subr.bf16.mxu0 %v7497_v39  ;;  %6648 = vmatprep.subr.bf16.mxu1 %v7498_v27 }
 0x17d   : > { %6641 = vmatmul.mubr.bf16.gmra.mrb[4].mxu1 %v8052_v30  ;;  %v7504_v30 = vld [vmem:[%s9208_s3 + $0x2e8] sm:$0xff]   ;;  %v4747_v11 = vsel %vm7750_vm2, %v4742_v17, %v4746_v50 }
 0x17e   : > { %6649 = vmatpush3.bf16.msra.mxu1 %v7498_v27  ;;  %6660 = vmatprep.mubr.bf16.mxu1 %v5628_v9  ;;  %v7546_v27 = vld [vmem:[%s7745_s13 + $0x40] sm:$0xf] }
 0x17f   : > { %6959 = vmatpush3.bf16.msra.mxu0 %v7497_v39  ;;  %6650 = vmatprep.subr.bf16.mxu1 %v7500_v24  ;;  %v7545_v39 = vld [vmem:[%s7745_s13 + $0x38] sm:$0xf] }
 0x180   : > { %6960 = vmatprep.subr.bf16.mxu0 %v7499_v44  ;;  %v5659_v47 = vcombine.low %v7545_v39, %v7546_v27 }
 0x182   : > { %6953 = vmatmul.mubr.bf16.gmra.mrb[4].mxu0 %v5969_v52  ;;  %6651 = vmatpush3.bf16.msra.mxu1 %v7500_v24  ;;  %v6019_v24 = vcombine.low %v8952_v2, %v4747_v11  ;;  %v7538_v2 = vld [vmem:[%s9208_s3 + $0x6b8] sm:$0xff]  }
 0x183   : > { %6961 = vmatpush3.bf16.msra.mxu0 %v7499_v44  ;;  %6972 = vmatprep.mubr.bf16.mxu0 %v8543_v32  ;;  %v7506_v32 = vld [vmem:[%s9208_s3 + $0x2f0] sm:$0xff]   ;;  %v7534_v44 = vld [vmem:[%s9208_s3 + $0x698] sm:$0xff]  }
 0x184   : > { %6962 = vmatprep.subr.bf16.mxu0 %v7501_v55  ;;  %6652 = vmatprep.subr.bf16.mxu1 %v7502_v34 }
 0x186   : > { %6653 = vmatpush3.bf16.msra.mxu1 %v7502_v34 }
 0x187   : > { %6963 = vmatpush3.bf16.msra.mxu0 %v7501_v55  ;;  %6654 = vmatprep.subr.bf16.mxu1 %v7504_v30 }
 0x188   : > { %6964 = vmatprep.subr.bf16.mxu0 %v7503_v29 }
 0x18a   : > { %6655 = vmatpush3.bf16.msra.mxu1 %v7504_v30 }
 0x18b   : > { %6965 = vmatpush3.bf16.msra.mxu0 %v7503_v29  ;;  %6656 = vmatprep.subr.bf16.mxu1 %v7506_v32 }
 0x18c   : > { %6966 = vmatprep.subr.bf16.mxu0 %v7505_v42 }
 0x18e   : > { %6657 = vmatpush3.bf16.msra.mxu1 %v7506_v32 }
 0x18f   : > { %6967 = vmatpush3.bf16.msra.mxu0 %v7505_v42  ;;  %6658 = vmatprep.subr.bf16.mxu1 %v7508_v45 }
 0x190   : > { %6968 = vmatprep.subr.bf16.mxu0 %v7507_v25 }
 0x192   : > { %6659 = vmatpush3.bf16.msra.mxu1 %v7508_v45 }
 0x193   : > { %6969 = vmatpush3.bf16.msra.mxu0 %v7507_v25  ;;  %6668 = vmatprep.subr.bf16.mxu1 %v7510_v18 }
 0x194   : > { %6970 = vmatprep.subr.bf16.mxu0 %v7509_v51 }
 0x195   : > { %6661 = vmatmul.mubr.bf16.vlgmr.msra.gmra.mrb[0].mxu1 %v8045_v59  ;;  %v7515_v59 = vld [vmem:[%s9208_s3 + $0x650] sm:$0xff]  }
 0x196   : > { %6669 = vmatpush3.bf16.msra.mxu1 %v7510_v18  ;;  %6664 = vmatprep.mubr.bf16.mxu1 %v8077_v56  ;;  %v5656_v56 = vcombine.low %v8877_v49, %v7540_v53  ;;  %v7521_v49 = vld [vmem:[%s9208_s3 + $0x668] sm:$0xff]  }
 0x197   : > { %6971 = vmatpush3.bf16.msra.mxu0 %v7509_v51  ;;  %6670 = vmatprep.subr.bf16.mxu1 %v7512_v63 }
 0x198   : > { %6980 = vmatprep.subr.bf16.mxu0 %v7511_v28 }
 0x19a   : > { %6973 = vmatmul.mubr.bf16.vlgmr.msra.gmra.mrb[0].mxu0 %v8550_v19  ;;  %6671 = vmatpush3.bf16.msra.mxu1 %v7512_v63  ;;  %v5994_v19 = vcombine.low %v8868_v31, %v9082_v40  ;;  %v7520_v31 = vld [vmem:[%s9208_s3 + $0x328] sm:$0xff]  }
 0x19b   : > { %6981 = vmatpush3.bf16.msra.mxu0 %v7511_v28  ;;  %6976 = vmatprep.mubr.bf16.mxu0 %v8595_v61  ;;  %v7517_v61 = vld [vmem:[%s9208_s3 + $0x658] sm:$0xff]  }
 0x19c   : > { %6982 = vmatprep.subr.bf16.mxu0 %v7513_v16  ;;  %6672 = vmatprep.subr.bf16.mxu1 %v7514_v7 }
 0x19d   : > { %6665 = vmatmul.mubr.bf16.gmra.mrb[4].mxu1 %v8100_v0  ;;  %v7519_v0 = vld [vmem:[%s9208_s3 + $0x660] sm:$0xff]  }
 0x19e   : > { %6673 = vmatpush3.bf16.msra.mxu1 %v7514_v7  ;;  %6684 = vmatprep.mubr.bf16.mxu1 %v5656_v56 }
 0x19f   : > { %6983 = vmatpush3.bf16.msra.mxu0 %v7513_v16  ;;  %6674 = vmatprep.subr.bf16.mxu1 %v7516_v15 }
 0x1a0   : > { %6984 = vmatprep.subr.bf16.mxu0 %v7515_v59 }
 0x1a2   : > { %6977 = vmatmul.mubr.bf16.gmra.mrb[4].mxu0 %v5994_v19  ;;  %6675 = vmatpush3.bf16.msra.mxu1 %v7516_v15 }
 0x1a3   : > { %6985 = vmatpush3.bf16.msra.mxu0 %v7515_v59  ;;  %6996 = vmatprep.mubr.bf16.mxu0 %v8660_v41  ;;  %v7522_v41 = vld [vmem:[%s9208_s3 + $0x330] sm:$0xff]  }
 0x1a4   : > { %6986 = vmatprep.subr.bf16.mxu0 %v7517_v61  ;;  %6676 = vmatprep.subr.bf16.mxu1 %v7518_v43 }
 0x1a6   : > { %6677 = vmatpush3.bf16.msra.mxu1 %v7518_v43 }
 0x1a7   : > { %6987 = vmatpush3.bf16.msra.mxu0 %v7517_v61  ;;  %6678 = vmatprep.subr.bf16.mxu1 %v7520_v31 }
 0x1a8   : > { %6988 = vmatprep.subr.bf16.mxu0 %v7519_v0 }
 0x1aa   : > { %6679 = vmatpush3.bf16.msra.mxu1 %v7520_v31 }
 0x1ab   : > { %6989 = vmatpush3.bf16.msra.mxu0 %v7519_v0  ;;  %6680 = vmatprep.subr.bf16.mxu1 %v7522_v41 }
 0x1ac   : > { %6990 = vmatprep.subr.bf16.mxu0 %v7521_v49 }
 0x1ae   : > { %6681 = vmatpush3.bf16.msra.mxu1 %v7522_v41 }
 0x1af   : > { %6991 = vmatpush3.bf16.msra.mxu0 %v7521_v49  ;;  %6682 = vmatprep.subr.bf16.mxu1 %v7525_v33 }
 0x1b0   : > { %6992 = vmatprep.subr.bf16.mxu0 %v7524_v21 }
 0x1b2   : > { %6683 = vmatpush3.bf16.msra.mxu1 %v7525_v33 }
 0x1b3   : > { %6993 = vmatpush3.bf16.msra.mxu0 %v7524_v21  ;;  %7028 = vmatprep.subr.bf16.mxu1 %v7529_v54 }
 0x1b4   : > { %6994 = vmatprep.subr.bf16.mxu0 %v7526_v38 }
 0x1b5   : > { %6685 = vmatmul.mubr.bf16.vlgmr.msra.gmra.mrb[0].mxu1 %v5657_v60 }
 0x1b6   : > { %7036 = vmatpush3.bf16.msra.mxu1 %v7529_v54  ;;  %6688 = vmatprep.mubr.bf16.mxu1 %v5658_v14 }
 0x1b7   : > { %6995 = vmatpush3.bf16.msra.mxu0 %v7526_v38  ;;  %7029 = vmatprep.subr.bf16.mxu1 %v7530_v3 }
 0x1b8   : > { %7004 = vmatprep.subr.bf16.mxu0 %v7529_v54 }
 0x1ba   : > { %6997 = vmatmul.mubr.bf16.vlgmr.msra.gmra.mrb[0].mxu0 %v8667_v58  ;;  %7037 = vmatpush3.bf16.msra.mxu1 %v7530_v3  ;;  %v7535_v58 = vld [vmem:[%s9208_s3 + $0x6a0] sm:$0xff]  }
 0x1bb   : > { %7005 = vmatpush3.bf16.msra.mxu0 %v7529_v54  ;;  %7000 = vmatprep.mubr.bf16.mxu0 %v8702_v23  ;;  %v7537_v23 = vld [vmem:[%s9208_s3 + $0x6b0] sm:$0xff]  }
 0x1bc   : > { %7006 = vmatprep.subr.bf16.mxu0 %v7530_v3  ;;  %7030 = vmatprep.subr.bf16.mxu1 %v7533_v26 }
 0x1bd   : > { %6689 = vmatmul.mubr.bf16.gmra.mrb[4].mxu1 %v5659_v47 }
 0x1be   : > { %7038 = vmatpush3.bf16.msra.mxu1 %v7533_v26  ;;  %7024 = vmatprep.mubr.bf16.mxu1 %v8802_v46  ;;  %v6028_v46 = vrot.slane %v9082_v40, 9 }
 0x1bf   : > { %7007 = vmatpush3.bf16.msra.mxu0 %v7530_v3  ;;  %7031 = vmatprep.subr.bf16.mxu1 %v7534_v44 }
 0x1c0   : > { %7008 = vmatprep.subr.bf16.mxu0 %v7533_v26 }
 0x1c2   : > { %7001 = vmatmul.mubr.bf16.gmra.mrb[4].mxu0 %v6019_v24  ;;  %7039 = vmatpush3.bf16.msra.mxu1 %v7534_v44 }
 0x1c3   : > { %7009 = vmatpush3.bf16.msra.mxu0 %v7533_v26  ;;  %7020 = vmatprep.mubr.bf16.mxu0 %v8763_v62  ;;  %v4892_v62 = vrot.slane %v9124_v8, 5 }
 0x1c4   : > { %7010 = vmatprep.subr.bf16.mxu0 %v7534_v44  ;;  %7032 = vmatprep.subr.bf16.mxu1 %v7535_v58 }
 0x1c5   : > { %v4893_v9 = vsel %vm8001_vm5, %v6028_v46, %v4892_v62 }
 0x1c6   : > { %7040 = vmatpush3.bf16.msra.mxu1 %v7535_v58  ;;  %v6045_v52 = vcombine.low %v9023_v5, %v4893_v9 }
 0x1c7   : > { %7011 = vmatpush3.bf16.msra.mxu0 %v7534_v44  ;;  %7033 = vmatprep.subr.bf16.mxu1 %v7536_v37 }
 0x1c8   : > { %7012 = vmatprep.subr.bf16.mxu0 %v7535_v58 }
 0x1ca   : > { %7041 = vmatpush3.bf16.msra.mxu1 %v7536_v37 }
 0x1cb   : > { %7013 = vmatpush3.bf16.msra.mxu0 %v7535_v58  ;;  %7034 = vmatprep.subr.bf16.mxu1 %v7537_v23 }
 0x1cc   : > { %7014 = vmatprep.subr.bf16.mxu0 %v7536_v37 }
 0x1ce   : > { %7042 = vmatpush3.bf16.msra.mxu1 %v7537_v23 }
 0x1cf   : > { %7015 = vmatpush3.bf16.msra.mxu0 %v7536_v37  ;;  %7035 = vmatprep.subr.bf16.mxu1 %v7538_v2 }
 0x1d0   : > { %7016 = vmatprep.subr.bf16.mxu0 %v7537_v23 }
 0x1d2   : > { %7043 = vmatpush3.bf16.msra.mxu1 %v7538_v2 }
 0x1d3   : > { %7017 = vmatpush3.bf16.msra.mxu0 %v7537_v23 }
 0x1d4   : > { %7018 = vmatprep.subr.bf16.mxu0 %v7538_v2 }
 0x1d5   : > { %7025 = vmatmul.mubr.bf16.vlgmr.msra.gmra.mrb[8].mxu1 %v6045_v52 }
 0x1d7   : > { %7019 = vmatpush3.bf16.msra.mxu0 %v7538_v2 }
 0x1da   : > { %7021 = vmatmul.mubr.bf16.vlgmr.msra.gmra.mrb[0].mxu0 %v8767_v12 }
 0x288   : > { %v6686_v55 = vpop.f32.mrb[0].mxu1 }
 0x289   : > { %v2694_v34 = vpop.f32.mrb[1].mxu1 }
 0x28a   : > { %v6687_v29 = vpop.f32.mrb[2].mxu1 }
 0x28b   : > { %v2697_v30 = vpop.f32.mrb[3].mxu1 }
 0x290   : > { %v6690_v35 = vpop.f32.mrb[4].mxu1 }
 0x291   : > { %v2710_v42 = vpop.f32.mrb[5].mxu1 }
 0x292   : > { %v6691_v32 = vpop.f32.mrb[6].mxu1 }
 0x293   : > { %v2713_v45 = vpop.f32.mrb[7].mxu1 }
 0x295   : > { %v7002_v25 = vpop.f32.mrb[4].mxu0 }
 0x296   : > { %v7048_v5 = vadd.f32 %v7002_v25, %v6690_v35  ;;  %v4866_v51 = vpop.f32.mrb[5].mxu0 }
 0x297   : > { %v7050_v18 = vadd.f32 %v4866_v51, %v2710_v42  ;;  %v7003_v28 = vpop.f32.mrb[6].mxu0 }
 0x298   : > { %v7052_v63 = vadd.f32 %v7003_v28, %v6691_v32  ;;  %v4869_v16 = vpop.f32.mrb[7].mxu0 }
 0x299   : > { %v7054_v7 = vadd.f32 %v4869_v16, %v2713_v45 }
 0x2a8   : > { %v7026_v12 = vpop.f32.mrb[8].mxu1 }
 0x2a9   : > { %v7049_v40 = vadd.f32 %v7048_v5, %v7026_v12  ;;  %v5012_v59 = vpop.f32.mrb[9].mxu1 }
 0x2aa   : > { %v7051_v15 = vadd.f32 %v7050_v18, %v5012_v59  ;;  %v7027_v53 = vpop.f32.mrb[10].mxu1 }
 0x2ab   : > { %5041 = vst [vmem:[%s392_s19 + $0x30] sm:$0xff] %v7049_v40  ;;  %v7053_v19 = vadd.f32 %v7052_v63, %v7027_v53  ;;  %v5015_v61 = vpop.f32.mrb[11].mxu1  ;;  %v5063_v17 = vmul.f32 %v7049_v40, %v7049_v40 }
 0x2ac   : > { %5039 = vst [vmem:[%s392_s19 + $0x20] sm:$0xff] %v7051_v15  ;;  %v7055_v31 = vadd.f32 %v7054_v7, %v5015_v61  ;;  %v5061_v36 = vmul.f32 %v7051_v15, %v7051_v15 }
 0x2ad   : > { %v7022_v56 = vpop.f32.mrb[0].mxu0  ;;  %5042 = vst [vmem:[%s392_s19 + $0x38] sm:$0xff] %v7053_v19  ;;  %v5064_v39 = vmul.f32 %v7053_v19, %v7053_v19 }
 0x2ae   : > { %v7044_v43 = vadd.f32 %v7022_v56, %v6686_v55  ;;  %v4996_v0 = vpop.f32.mrb[1].mxu0  ;;  %5040 = vst [vmem:[%s392_s19 + $0x28] sm:$0xff] %v7055_v31  ;;  %v5062_v10 = vmul.f32 %v7055_v31, %v7055_v31 }
 0x2af   : > { %v7045_v49 = vadd.f32 %v4996_v0, %v2694_v34  ;;  %v7023_v41 = vpop.f32.mrb[2].mxu0 }
 0x2b0   : > { %5037 = vst [vmem:[%s392_s19 + $0x10] sm:$0xff] %v7044_v43  ;;  %v7046_v48 = vadd.f32 %v7023_v41, %v6687_v29  ;;  %v4999_v20 = vpop.f32.mrb[3].mxu0  ;;  %v5059_v8 = vmul.f32 %v7044_v43, %v7044_v43 }
 0x2b1   : > { %5035 = vst [vmem:[%s392_s19] sm:$0xff] %v7045_v49  ;;  %v7047_v21 = vadd.f32 %v4999_v20, %v2697_v30  ;;  %v5057_v33 = vmul.f32 %v7045_v49, %v7045_v49 }
 0x2b2   : > { %5038 = vst [vmem:[%s392_s19 + $0x18] sm:$0xff] %v7046_v48  ;;  %v5060_v6 = vmul.f32 %v7046_v48, %v7046_v48 }
 0x2b3   : > { %5036 = vst [vmem:[%s392_s19 + $0x8] sm:$0xff] %v7047_v21  ;;  %v5043_v22 = vadd.f32 %v7047_v21, %v7045_v49  ;;  %v5058_v4 = vmul.f32 %v7047_v21, %v7047_v21 }
 0x2b5   : > { %v5044_v38 = vadd.f32 %v7044_v43, %v5043_v22  ;;  %v5065_v54 = vadd.f32 %v5058_v4, %v5057_v33 }
 0x2b7   : > { %v5066_v1 = vadd.f32 %v5065_v54, %v5059_v8  ;;  %v5045_v60 = vadd.f32 %v7046_v48, %v5044_v38 }
 0x2b9   : > { %v5046_v57 = vadd.f32 %v7051_v15, %v5045_v60  ;;  %v5067_v3 = vadd.f32 %v5066_v1, %v5060_v6 }
 0x2bb   : > { %v5047_v13 = vadd.f32 %v7055_v31, %v5046_v57  ;;  %v5068_v14 = vadd.f32 %v5067_v3, %v5061_v36 }
 0x2bd   : > { %v5048_v50 = vadd.f32 %v7049_v40, %v5047_v13  ;;  %v5069_v26 = vadd.f32 %v5068_v14, %v5062_v10 }
 0x2bf   : > { %v5049_v27 = vadd.f32 %v7053_v19, %v5048_v50  ;;  %v5070_v47 = vadd.f32 %v5069_v26, %v5063_v17 }
 0x2c1   : > { %v5050_v11 = vrot.slane %v5049_v27, 4  ;;  %v5071_v44 = vadd.f32 %v5070_v47, %v5064_v39 }
 0x2c3   : > { %v5051_v24 = vadd.f32 %v5050_v11, %v5049_v27  ;;  %v5072_v58 = vrot.slane %v5071_v44, 4 }
 0x2c5   : > { %v5052_v37 = vrot.slane %v5051_v24, 2  ;;  %v5073_v23 = vadd.f32 %v5072_v58, %v5071_v44 }
 0x2c7   : > { %v5053_v46 = vadd.f32 %v5052_v37, %v5051_v24  ;;  %v5074_v62 = vrot.slane %v5073_v23, 2 }
 0x2c9   : > { %v5054_v2 = vrot.slane %v5053_v46, 1  ;;  %v5075_v9 = vadd.f32 %v5074_v62, %v5073_v23 }
 0x2cb   : > { %v5055_v52 = vadd.f32 %v5054_v2, %v5053_v46  ;;  %v5076_v55 = vrot.slane %v5075_v9, 1 }
 0x2cd   : > { %5056 = vst [vmem:[%s399_s11] sm:$0x1] %v5055_v52  ;;  %v5077_v34 = vadd.f32 %v5076_v55, %v5075_v9 }
 0x2cf   : > { %5078 = vst [vmem:[%s406_s14] sm:$0x1] %v5077_v34 }
 0x2d0 PF: > { %s17_s25 = sadd.s32 1, %s7585_s25   ;;  %s9242_s21 = smov %s7577_s23 }
 0x2d1   : > { %p14_p10 = scmp.ge.s32.totalorder %s17_s25, 18   ;;  %s9243_s22 = smov %s7581_s24 }
 0x2d2   : > { %s9244_s23 = smov %s9247_s26  ;;  %s9245_s24 = smov %s9251_s27 }
 0x2d3   :  { %16 = sbr.rel (!%p14_p10) target bundleno = 3 (0x3), region = 122 }

</bundles_post_ra>
